<compile_context>
chip_gen: v5e
topology: v5e:2x2
jax: 0.10.0
libtpu: 0.0.40
codegen_flags: <defaults>
</compile_context>

<pallas_src>
import functools
import math

import jax
import jax.numpy as jnp
import numpy as np
from jax.experimental import pallas as pl
from jax.experimental.pallas import tpu as pltpu


_LAYER_KEYS = (
    "in_proj_w", "in_proj_b", "out_proj_w", "out_proj_b",
    "lin1_w", "lin1_b", "lin2_w", "lin2_b",
    "ln1_g", "ln1_b", "ln2_g", "ln2_b",
)


def _layer_norm(x, gamma, beta, eps=1e-5):
    mean = jnp.mean(x, axis=-1, keepdims=True)
    var = jnp.mean(jnp.square(x - mean), axis=-1, keepdims=True)
    return (x - mean) * jax.lax.rsqrt(var + eps) * gamma + beta


# ----------------------------------------------------------------------------
# Fused Pallas kernel: the entire PatchTST forward in one invocation.
# ----------------------------------------------------------------------------
def _fused_patchtst_kernel(*refs, num_layers, nhead, d_model, batch, n_patches):
    B, N, D = batch, n_patches, d_model
    hd = D // nhead
    scale = 1.0 / math.sqrt(hd)
    f32 = jnp.float32

    it = iter(refs)
    patches_ref = next(it)          # (N*B, P*C)   rows ordered n*B + s
    embed_w_ref = next(it)          # (P*C, D)
    embed_b_ref = next(it)          # (1, D)
    pe_ref = next(it)               # (N*B, D)     pre-broadcast PE
    layers = [tuple(next(it) for _ in range(len(_LAYER_KEYS)))
              for _ in range(num_layers)]
    fc_w_ref = next(it)             # (D, H*O)
    fc_b_ref = next(it)             # (1, H*O)
    o_ref = next(it)                # (B, H*O)

    # --- patch embedding (non-overlapping Conv1d == per-patch matmul) + PE ---
    h = jnp.dot(patches_ref[...], embed_w_ref[...], preferred_element_type=f32)
    h = h + embed_b_ref[...] + pe_ref[...]                       # (N*B, D)
    # TODO(synk): dropout layers omitted (inference / eval-mode forward).

    for (ipw, ipb, opw, opb, l1w, l1b, l2w, l2b, g1, b1, g2, b2) in layers:
        x2d = h

        # Packed QKV projection.
        qkv = jnp.dot(x2d, ipw[...], preferred_element_type=f32) + ipb[...]
        opw_v = opw[...]

        # Per-head scaled-dot-product attention.  Attention runs over the
        # input-batch axis (seq=B) with the patch axis (N) as the attention
        # batch, faithfully replicating PyTorch's batch_first=False default
        # when fed a (B, N, D) tensor.  Head outputs are folded through
        # out_proj by summing per-head partial matmuls (== concat @ W).
        attn_out = jnp.zeros_like(x2d)
        for hh in range(nhead):
            qh = qkv[:, hh * hd:(hh + 1) * hd].reshape(N, B, hd)
            kh = qkv[:, D + hh * hd:D + (hh + 1) * hd].reshape(N, B, hd)
            vh = qkv[:, 2 * D + hh * hd:2 * D + (hh + 1) * hd].reshape(N, B, hd)
            s = jnp.einsum("nsd,ntd->nst", qh, kh,
                           preferred_element_type=f32) * scale     # (N, B, B)
            s = s - jnp.max(s, axis=-1, keepdims=True)
            p = jnp.exp(s)
            p = p / jnp.sum(p, axis=-1, keepdims=True)
            ctx = jnp.einsum("nst,ntd->nsd", p, vh,
                             preferred_element_type=f32)           # (N, B, hd)
            attn_out = attn_out + jnp.dot(
                ctx.reshape(N * B, hd),
                opw_v[hh * hd:(hh + 1) * hd, :],
                preferred_element_type=f32)
        attn_out = attn_out + opb[...]

        # Post-norm residual blocks (norm_first=False, activation=relu).
        h1 = _layer_norm(x2d + attn_out, g1[...], b1[...])
        ff = jnp.dot(h1, l1w[...], preferred_element_type=f32) + l1b[...]
        ff = jnp.maximum(ff, 0.0)
        ff = jnp.dot(ff, l2w[...], preferred_element_type=f32) + l2b[...]
        h = _layer_norm(h1 + ff, g2[...], b2[...])

    # --- forecasting head on the last patch embedding ---
    x_last = h[(N - 1) * B:, :]                                    # (B, D)
    out = jnp.dot(x_last, fc_w_ref[...], preferred_element_type=f32)
    o_ref[...] = (out + fc_b_ref[...]).astype(o_ref.dtype)


# ----------------------------------------------------------------------------
# Wrapper: layout plumbing (pure reshapes/tiny transposes) + one pallas_call.
# ----------------------------------------------------------------------------
def patchtst_forward(params, x, *, cfg):
    """x: (B, L, C)  ->  (B, forecast_horizon, output_size)."""
    B, L, C = x.shape
    P, D = cfg["patch_size"], cfg["d_model"]
    nhead, H, O = cfg["nhead"], cfg["forecast_horizon"], cfg["output_size"]
    num_layers = cfg["num_layers"]
    N = (L - P) // P + 1                                 # number of patches
    dtype = jnp.float32

    # im2col for a stride==kernel Conv1d is a pure reshape (non-overlapping
    # windows).  Rows are laid out n*B + s so the attention batch (patch index)
    # is the leading axis inside the kernel and no in-kernel transposes are
    # needed.
    patches = x[:, :N * P, :].reshape(B, N, P * C)
    patches = jnp.transpose(patches, (1, 0, 2)).reshape(N * B, P * C)
    patches = patches.astype(dtype)
    pe_rep = jnp.repeat(params["pe"][:N], B, axis=0).astype(dtype)   # (N*B, D)

    flat = [patches, params["embed_w"], params["embed_b"], pe_rep]
    for layer in params["layers"]:
        flat += [layer[k] for k in _LAYER_KEYS]
    flat += [params["fc_w"], params["fc_b"]]

    # Everything (params + activations) must fit VMEM for the fused kernel.
    total_bytes = sum(int(np.prod(a.shape)) * a.dtype.itemsize for a in flat)
    assert total_bytes < 8 * 1024 * 1024, (
        "model too large for the fully-fused VMEM-resident kernel")
    # TODO(synk): add a row-tiled multi-call fallback for models/batches that
    # exceed VMEM; not needed at these sizes.

    kernel = functools.partial(
        _fused_patchtst_kernel, num_layers=num_layers, nhead=nhead,
        d_model=D, batch=B, n_patches=N)

    vmem_spec = pl.BlockSpec(memory_space=pltpu.MemorySpace.VMEM)
    out = pl.pallas_call(
        kernel,
        out_shape=jax.ShapeDtypeStruct((B, H * O), dtype),
        in_specs=[vmem_spec] * len(flat),
        out_specs=vmem_spec,
    )(*flat)
    return out.reshape(B, H, O)


# ----------------------------------------------------------------------------
# Pure-JAX reference (mirrors the PyTorch module, for the self-test).
# ----------------------------------------------------------------------------
def patchtst_forward_ref(params, x, *, cfg):
    B, L, C = x.shape
    P, D = cfg["patch_size"], cfg["d_model"]
    nhead, H, O = cfg["nhead"], cfg["forecast_horizon"], cfg["output_size"]
    N = (L - P) // P + 1
    hd = D // nhead

    patches = x[:, :N * P, :].reshape(B * N, P * C)
    emb = patches @ params["embed_w"] + params["embed_b"]
    h = emb.reshape(B, N, D) + params["pe"][None, :N, :]

    # PyTorch's TransformerEncoderLayer defaults to batch_first=False, so the
    # (B, N, D) tensor is interpreted as (seq=B, batch=N, D).
    src = h
    for layer in params["layers"]:
        S, Bt, _ = src.shape
        x2d = src.reshape(S * Bt, D)
        qkv = x2d @ layer["in_proj_w"] + layer["in_proj_b"]
        qkv = qkv.reshape(S, Bt, 3, nhead, hd)
        q = jnp.transpose(qkv[:, :, 0], (1, 2, 0, 3))          # (Bt, nh, S, hd)
        k = jnp.transpose(qkv[:, :, 1], (1, 2, 0, 3))
        v = jnp.transpose(qkv[:, :, 2], (1, 2, 0, 3))
        scores = jnp.einsum("bhsd,bhtd->bhst", q, k) / math.sqrt(hd)
        attn = jax.nn.softmax(scores, axis=-1)
        ctx = jnp.einsum("bhst,bhtd->bhsd", attn, v)
        ctx = jnp.transpose(ctx, (2, 0, 1, 3)).reshape(S * Bt, D)
        attn_out = ctx @ layer["out_proj_w"] + layer["out_proj_b"]
        h1 = _layer_norm(x2d + attn_out, layer["ln1_g"], layer["ln1_b"])
        ff = jnp.maximum(h1 @ layer["lin1_w"] + layer["lin1_b"], 0.0)
        ff = ff @ layer["lin2_w"] + layer["lin2_b"]
        h2 = _layer_norm(h1 + ff, layer["ln2_g"], layer["ln2_b"])
        src = h2.reshape(S, Bt, D)

    x_last = src[:, -1, :]
    out = x_last @ params["fc_w"] + params["fc_b"]
    return out.reshape(B, H, O)


# ----------------------------------------------------------------------------
# Parameter initialization (PyTorch-default-style uniform init, kernel-ready
# (in, out) layouts == torch weights transposed; biases stored as (1, n)).
# ----------------------------------------------------------------------------
def _sinusoidal_pe(max_len, d_model):
    position = jnp.arange(max_len, dtype=jnp.float32)[:, None]
    div_term = jnp.exp(jnp.arange(0, d_model, 2, dtype=jnp.float32)
                       * (-math.log(10000.0) / d_model))
    pe = jnp.zeros((max_len, d_model), jnp.float32)
    pe = pe.at[:, 0::2].set(jnp.sin(position * div_term))
    pe = pe.at[:, 1::2].set(jnp.cos(position * div_term))
    return pe


def init_params(key, cfg):
    C, P, D = cfg["input_channels"], cfg["patch_size"], cfg["d_model"]
    dff, H, O = cfg["dim_feedforward"], cfg["forecast_horizon"], cfg["output_size"]
    n_layers, max_len = cfg["num_layers"], cfg.get("max_len", 1000)

    def uniform(k, fan_in, shape):
        bound = 1.0 / math.sqrt(fan_in)
        return jax.random.uniform(k, shape, jnp.float32, -bound, bound)

    keys = iter(jax.random.split(key, 4 + 8 * n_layers))
    params = {}
    # Conv1d weight (D, C, P) maps to (P*C, D) with row index p*C + c, matching
    # the patch flatten order used by both the kernel and the reference.
    params["embed_w"] = uniform(next(keys), C * P, (P * C, D))
    params["embed_b"] = uniform(next(keys), C * P, (1, D))
    params["pe"] = _sinusoidal_pe(max_len, D)

    layers = []
    for _ in range(n_layers):
        layers.append({
            "in_proj_w": uniform(next(keys), D, (D, 3 * D)),
            "in_proj_b": uniform(next(keys), D, (1, 3 * D)),
            "out_proj_w": uniform(next(keys), D, (D, D)),
            "out_proj_b": uniform(next(keys), D, (1, D)),
            "lin1_w": uniform(next(keys), D, (D, dff)),
            "lin1_b": uniform(next(keys), D, (1, dff)),
            "lin2_w": uniform(next(keys), dff, (dff, D)),
            "lin2_b": uniform(next(keys), dff, (1, D)),
            "ln1_g": jnp.ones((1, D), jnp.float32),
            "ln1_b": jnp.zeros((1, D), jnp.float32),
            "ln2_g": jnp.ones((1, D), jnp.float32),
            "ln2_b": jnp.zeros((1, D), jnp.float32),
        })
    params["layers"] = layers
    params["fc_w"] = uniform(next(keys), D, (D, H * O))
    params["fc_b"] = uniform(next(keys), D, (1, H * O))
    return params


# ----------------------------------------------------------------------------
if __name__ == "__main__":
    cfg = dict(
        input_channels=4,
        patch_size=16,
        d_model=32,
        nhead=4,
        num_layers=2,
        dim_feedforward=64,
        forecast_horizon=8,
        output_size=1,
        max_len=1000,
    )
    B, L = 2, 64

    key = jax.random.PRNGKey(0)
    k_x, k_p = jax.random.split(key)
    x = jax.random.normal(k_x, (B, L, cfg["input_channels"]), jnp.float32)
    params = init_params(k_p, cfg)

    forward = jax.jit(functools.partial(patchtst_forward, cfg=cfg))
    out = jax.block_until_ready(forward(params, x))
    assert out.shape == (B, cfg["forecast_horizon"], cfg["output_size"])

    ref = jax.block_until_ready(patchtst_forward_ref(params, x, cfg=cfg))
    assert jnp.allclose(out, ref, atol=2e-3, rtol=2e-3), "mismatch vs JAX reference"

    print("KERNEL_OK")
</pallas_src>

<mosaic_0001>
module attributes {stable_mosaic.version = 11 : i64} {
  func.func @_fused_patchtst_kernel(%arg0: memref<8x64xf32, #tpu.memory_space<vmem>>, %arg1: memref<64x32xf32, #tpu.memory_space<vmem>>, %arg2: memref<1x32xf32, #tpu.memory_space<vmem>>, %arg3: memref<8x32xf32, #tpu.memory_space<vmem>>, %arg4: memref<32x96xf32, #tpu.memory_space<vmem>>, %arg5: memref<1x96xf32, #tpu.memory_space<vmem>>, %arg6: memref<32x32xf32, #tpu.memory_space<vmem>>, %arg7: memref<1x32xf32, #tpu.memory_space<vmem>>, %arg8: memref<32x64xf32, #tpu.memory_space<vmem>>, %arg9: memref<1x64xf32, #tpu.memory_space<vmem>>, %arg10: memref<64x32xf32, #tpu.memory_space<vmem>>, %arg11: memref<1x32xf32, #tpu.memory_space<vmem>>, %arg12: memref<1x32xf32, #tpu.memory_space<vmem>>, %arg13: memref<1x32xf32, #tpu.memory_space<vmem>>, %arg14: memref<1x32xf32, #tpu.memory_space<vmem>>, %arg15: memref<1x32xf32, #tpu.memory_space<vmem>>, %arg16: memref<32x96xf32, #tpu.memory_space<vmem>>, %arg17: memref<1x96xf32, #tpu.memory_space<vmem>>, %arg18: memref<32x32xf32, #tpu.memory_space<vmem>>, %arg19: memref<1x32xf32, #tpu.memory_space<vmem>>, %arg20: memref<32x64xf32, #tpu.memory_space<vmem>>, %arg21: memref<1x64xf32, #tpu.memory_space<vmem>>, %arg22: memref<64x32xf32, #tpu.memory_space<vmem>>, %arg23: memref<1x32xf32, #tpu.memory_space<vmem>>, %arg24: memref<1x32xf32, #tpu.memory_space<vmem>>, %arg25: memref<1x32xf32, #tpu.memory_space<vmem>>, %arg26: memref<1x32xf32, #tpu.memory_space<vmem>>, %arg27: memref<1x32xf32, #tpu.memory_space<vmem>>, %arg28: memref<32x8xf32, #tpu.memory_space<vmem>>, %arg29: memref<1x8xf32, #tpu.memory_space<vmem>>, %arg30: memref<2x8xf32, #tpu.memory_space<vmem>>) attributes {dimension_semantics = [], scalar_prefetch = 0 : i64, scratch_operands = 0 : i64, tpu.core_type = #tpu.core_type<tc>} {
    %c0 = arith.constant 0 : index
    %c0_0 = arith.constant 0 : index
    %0 = vector.load %arg0[%c0, %c0_0] : memref<8x64xf32, #tpu.memory_space<vmem>>, vector<8x64xf32>
    %c0_1 = arith.constant 0 : index
    %c0_2 = arith.constant 0 : index
    %1 = vector.load %arg1[%c0_1, %c0_2] : memref<64x32xf32, #tpu.memory_space<vmem>>, vector<64x32xf32>
    %cst = arith.constant dense<0.000000e+00> : vector<8x32xf32>
    %2 = tpu.matmul %0, %1, %cst {dimension_numbers = #tpu.dot_dimension_numbers<[1], [0], [0], [1], [0, 0, 1, 1], [], []>} : vector<8x64xf32>, vector<64x32xf32>, vector<8x32xf32> -> vector<8x32xf32>
    %c0_3 = arith.constant 0 : index
    %c0_4 = arith.constant 0 : index
    %3 = vector.load %arg2[%c0_3, %c0_4] : memref<1x32xf32, #tpu.memory_space<vmem>>, vector<1x32xf32>
    %4 = vector.broadcast %3 : vector<1x32xf32> to vector<8x32xf32>
    %5 = arith.addf %2, %4 : vector<8x32xf32>
    %c0_5 = arith.constant 0 : index
    %c0_6 = arith.constant 0 : index
    %6 = vector.load %arg3[%c0_5, %c0_6] : memref<8x32xf32, #tpu.memory_space<vmem>>, vector<8x32xf32>
    %7 = arith.addf %5, %6 : vector<8x32xf32>
    %c0_7 = arith.constant 0 : index
    %c0_8 = arith.constant 0 : index
    %8 = vector.load %arg4[%c0_7, %c0_8] : memref<32x96xf32, #tpu.memory_space<vmem>>, vector<32x96xf32>
    %cst_9 = arith.constant dense<0.000000e+00> : vector<8x96xf32>
    %9 = tpu.matmul %7, %8, %cst_9 {dimension_numbers = #tpu.dot_dimension_numbers<[1], [0], [0], [1], [0, 0, 1, 1], [], []>} : vector<8x32xf32>, vector<32x96xf32>, vector<8x96xf32> -> vector<8x96xf32>
    %c0_10 = arith.constant 0 : index
    %c0_11 = arith.constant 0 : index
    %10 = vector.load %arg5[%c0_10, %c0_11] : memref<1x96xf32, #tpu.memory_space<vmem>>, vector<1x96xf32>
    %11 = vector.broadcast %10 : vector<1x96xf32> to vector<8x96xf32>
    %12 = arith.addf %9, %11 : vector<8x96xf32>
    %c0_12 = arith.constant 0 : index
    %c0_13 = arith.constant 0 : index
    %13 = vector.load %arg6[%c0_12, %c0_13] : memref<32x32xf32, #tpu.memory_space<vmem>>, vector<32x32xf32>
    %cst_14 = arith.constant 0.000000e+00 : f32
    %14 = vector.broadcast %cst_14 : f32 to vector<8x32xf32>
    %15 = vector.extract_strided_slice %12 {offsets = [0, 0], sizes = [8, 8], strides = [1, 1]} : vector<8x96xf32> to vector<8x8xf32>
    %16 = vector.shape_cast %15 : vector<8x8xf32> to vector<4x2x8xf32>
    %17 = vector.extract_strided_slice %12 {offsets = [0, 32], sizes = [8, 8], strides = [1, 1]} : vector<8x96xf32> to vector<8x8xf32>
    %18 = vector.shape_cast %17 : vector<8x8xf32> to vector<4x2x8xf32>
    %19 = vector.extract_strided_slice %12 {offsets = [0, 64], sizes = [8, 8], strides = [1, 1]} : vector<8x96xf32> to vector<8x8xf32>
    %20 = vector.shape_cast %19 : vector<8x8xf32> to vector<4x2x8xf32>
    "tpu.trace_start"() <{level = 10 : i32, message = "nsd,ntd->nst"}> : () -> ()
    %cst_15 = arith.constant dense<0.000000e+00> : vector<4x2x2xf32>
    %21 = tpu.matmul %16, %18, %cst_15 {dimension_numbers = #tpu.dot_dimension_numbers<[2], [2], [1], [1], [0, 0, 0, 1, 1, 1], [0], [0]>} : vector<4x2x8xf32>, vector<4x2x8xf32>, vector<4x2x2xf32> -> vector<4x2x2xf32>
    "tpu.trace_stop"() : () -> ()
    %cst_16 = arith.constant 0.353553385 : f32
    %22 = vector.broadcast %cst_16 : f32 to vector<4x2x2xf32>
    %23 = arith.mulf %21, %22 : vector<4x2x2xf32>
    %cst_17 = arith.constant dense<0xFF800000> : vector<4x2xf32>
    %24 = vector.multi_reduction <maximumf>, %23, %cst_17 [2] : vector<4x2x2xf32> to vector<4x2xf32>
    %25 = vector.shape_cast %24 : vector<4x2xf32> to vector<4x2x1xf32>
    %26 = vector.broadcast %25 : vector<4x2x1xf32> to vector<4x2x2xf32>
    %27 = arith.subf %23, %26 : vector<4x2x2xf32>
    %28 = math.exp %27 : vector<4x2x2xf32>
    %cst_18 = arith.constant dense<0.000000e+00> : vector<4x2xf32>
    %29 = vector.multi_reduction <add>, %28, %cst_18 [2] : vector<4x2x2xf32> to vector<4x2xf32>
    %30 = vector.shape_cast %29 : vector<4x2xf32> to vector<4x2x1xf32>
    %31 = vector.broadcast %30 : vector<4x2x1xf32> to vector<4x2x2xf32>
    %32 = arith.divf %28, %31 : vector<4x2x2xf32>
    "tpu.trace_start"() <{level = 10 : i32, message = "nst,ntd->nsd"}> : () -> ()
    %cst_19 = arith.constant dense<0.000000e+00> : vector<4x2x8xf32>
    %33 = tpu.matmul %32, %20, %cst_19 {dimension_numbers = #tpu.dot_dimension_numbers<[2], [1], [1], [2], [0, 0, 0, 1, 1, 2], [0], [0]>} : vector<4x2x2xf32>, vector<4x2x8xf32>, vector<4x2x8xf32> -> vector<4x2x8xf32>
    "tpu.trace_stop"() : () -> ()
    %34 = vector.shape_cast %33 : vector<4x2x8xf32> to vector<8x8xf32>
    %35 = vector.extract_strided_slice %13 {offsets = [0, 0], sizes = [8, 32], strides = [1, 1]} : vector<32x32xf32> to vector<8x32xf32>
    %cst_20 = arith.constant dense<0.000000e+00> : vector<8x32xf32>
    %36 = tpu.matmul %34, %35, %cst_20 {dimension_numbers = #tpu.dot_dimension_numbers<[1], [0], [0], [1], [0, 0, 1, 1], [], []>} : vector<8x8xf32>, vector<8x32xf32>, vector<8x32xf32> -> vector<8x32xf32>
    %37 = arith.addf %14, %36 : vector<8x32xf32>
    %38 = vector.extract_strided_slice %12 {offsets = [0, 8], sizes = [8, 8], strides = [1, 1]} : vector<8x96xf32> to vector<8x8xf32>
    %39 = vector.shape_cast %38 : vector<8x8xf32> to vector<4x2x8xf32>
    %40 = vector.extract_strided_slice %12 {offsets = [0, 40], sizes = [8, 8], strides = [1, 1]} : vector<8x96xf32> to vector<8x8xf32>
    %41 = vector.shape_cast %40 : vector<8x8xf32> to vector<4x2x8xf32>
    %42 = vector.extract_strided_slice %12 {offsets = [0, 72], sizes = [8, 8], strides = [1, 1]} : vector<8x96xf32> to vector<8x8xf32>
    %43 = vector.shape_cast %42 : vector<8x8xf32> to vector<4x2x8xf32>
    "tpu.trace_start"() <{level = 10 : i32, message = "nsd,ntd->nst"}> : () -> ()
    %cst_21 = arith.constant dense<0.000000e+00> : vector<4x2x2xf32>
    %44 = tpu.matmul %39, %41, %cst_21 {dimension_numbers = #tpu.dot_dimension_numbers<[2], [2], [1], [1], [0, 0, 0, 1, 1, 1], [0], [0]>} : vector<4x2x8xf32>, vector<4x2x8xf32>, vector<4x2x2xf32> -> vector<4x2x2xf32>
    "tpu.trace_stop"() : () -> ()
    %cst_22 = arith.constant 0.353553385 : f32
    %45 = vector.broadcast %cst_22 : f32 to vector<4x2x2xf32>
    %46 = arith.mulf %44, %45 : vector<4x2x2xf32>
    %cst_23 = arith.constant dense<0xFF800000> : vector<4x2xf32>
    %47 = vector.multi_reduction <maximumf>, %46, %cst_23 [2] : vector<4x2x2xf32> to vector<4x2xf32>
    %48 = vector.shape_cast %47 : vector<4x2xf32> to vector<4x2x1xf32>
    %49 = vector.broadcast %48 : vector<4x2x1xf32> to vector<4x2x2xf32>
    %50 = arith.subf %46, %49 : vector<4x2x2xf32>
    %51 = math.exp %50 : vector<4x2x2xf32>
    %cst_24 = arith.constant dense<0.000000e+00> : vector<4x2xf32>
    %52 = vector.multi_reduction <add>, %51, %cst_24 [2] : vector<4x2x2xf32> to vector<4x2xf32>
    %53 = vector.shape_cast %52 : vector<4x2xf32> to vector<4x2x1xf32>
    %54 = vector.broadcast %53 : vector<4x2x1xf32> to vector<4x2x2xf32>
    %55 = arith.divf %51, %54 : vector<4x2x2xf32>
    "tpu.trace_start"() <{level = 10 : i32, message = "nst,ntd->nsd"}> : () -> ()
    %cst_25 = arith.constant dense<0.000000e+00> : vector<4x2x8xf32>
    %56 = tpu.matmul %55, %43, %cst_25 {dimension_numbers = #tpu.dot_dimension_numbers<[2], [1], [1], [2], [0, 0, 0, 1, 1, 2], [0], [0]>} : vector<4x2x2xf32>, vector<4x2x8xf32>, vector<4x2x8xf32> -> vector<4x2x8xf32>
    "tpu.trace_stop"() : () -> ()
    %57 = vector.shape_cast %56 : vector<4x2x8xf32> to vector<8x8xf32>
    %58 = vector.extract_strided_slice %13 {offsets = [8, 0], sizes = [8, 32], strides = [1, 1]} : vector<32x32xf32> to vector<8x32xf32>
    %cst_26 = arith.constant dense<0.000000e+00> : vector<8x32xf32>
    %59 = tpu.matmul %57, %58, %cst_26 {dimension_numbers = #tpu.dot_dimension_numbers<[1], [0], [0], [1], [0, 0, 1, 1], [], []>} : vector<8x8xf32>, vector<8x32xf32>, vector<8x32xf32> -> vector<8x32xf32>
    %60 = arith.addf %37, %59 : vector<8x32xf32>
    %61 = vector.extract_strided_slice %12 {offsets = [0, 16], sizes = [8, 8], strides = [1, 1]} : vector<8x96xf32> to vector<8x8xf32>
    %62 = vector.shape_cast %61 : vector<8x8xf32> to vector<4x2x8xf32>
    %63 = vector.extract_strided_slice %12 {offsets = [0, 48], sizes = [8, 8], strides = [1, 1]} : vector<8x96xf32> to vector<8x8xf32>
    %64 = vector.shape_cast %63 : vector<8x8xf32> to vector<4x2x8xf32>
    %65 = vector.extract_strided_slice %12 {offsets = [0, 80], sizes = [8, 8], strides = [1, 1]} : vector<8x96xf32> to vector<8x8xf32>
    %66 = vector.shape_cast %65 : vector<8x8xf32> to vector<4x2x8xf32>
    "tpu.trace_start"() <{level = 10 : i32, message = "nsd,ntd->nst"}> : () -> ()
    %cst_27 = arith.constant dense<0.000000e+00> : vector<4x2x2xf32>
    %67 = tpu.matmul %62, %64, %cst_27 {dimension_numbers = #tpu.dot_dimension_numbers<[2], [2], [1], [1], [0, 0, 0, 1, 1, 1], [0], [0]>} : vector<4x2x8xf32>, vector<4x2x8xf32>, vector<4x2x2xf32> -> vector<4x2x2xf32>
    "tpu.trace_stop"() : () -> ()
    %cst_28 = arith.constant 0.353553385 : f32
    %68 = vector.broadcast %cst_28 : f32 to vector<4x2x2xf32>
    %69 = arith.mulf %67, %68 : vector<4x2x2xf32>
    %cst_29 = arith.constant dense<0xFF800000> : vector<4x2xf32>
    %70 = vector.multi_reduction <maximumf>, %69, %cst_29 [2] : vector<4x2x2xf32> to vector<4x2xf32>
    %71 = vector.shape_cast %70 : vector<4x2xf32> to vector<4x2x1xf32>
    %72 = vector.broadcast %71 : vector<4x2x1xf32> to vector<4x2x2xf32>
    %73 = arith.subf %69, %72 : vector<4x2x2xf32>
    %74 = math.exp %73 : vector<4x2x2xf32>
    %cst_30 = arith.constant dense<0.000000e+00> : vector<4x2xf32>
    %75 = vector.multi_reduction <add>, %74, %cst_30 [2] : vector<4x2x2xf32> to vector<4x2xf32>
    %76 = vector.shape_cast %75 : vector<4x2xf32> to vector<4x2x1xf32>
    %77 = vector.broadcast %76 : vector<4x2x1xf32> to vector<4x2x2xf32>
    %78 = arith.divf %74, %77 : vector<4x2x2xf32>
    "tpu.trace_start"() <{level = 10 : i32, message = "nst,ntd->nsd"}> : () -> ()
    %cst_31 = arith.constant dense<0.000000e+00> : vector<4x2x8xf32>
    %79 = tpu.matmul %78, %66, %cst_31 {dimension_numbers = #tpu.dot_dimension_numbers<[2], [1], [1], [2], [0, 0, 0, 1, 1, 2], [0], [0]>} : vector<4x2x2xf32>, vector<4x2x8xf32>, vector<4x2x8xf32> -> vector<4x2x8xf32>
    "tpu.trace_stop"() : () -> ()
    %80 = vector.shape_cast %79 : vector<4x2x8xf32> to vector<8x8xf32>
    %81 = vector.extract_strided_slice %13 {offsets = [16, 0], sizes = [8, 32], strides = [1, 1]} : vector<32x32xf32> to vector<8x32xf32>
    %cst_32 = arith.constant dense<0.000000e+00> : vector<8x32xf32>
    %82 = tpu.matmul %80, %81, %cst_32 {dimension_numbers = #tpu.dot_dimension_numbers<[1], [0], [0], [1], [0, 0, 1, 1], [], []>} : vector<8x8xf32>, vector<8x32xf32>, vector<8x32xf32> -> vector<8x32xf32>
    %83 = arith.addf %60, %82 : vector<8x32xf32>
    %84 = vector.extract_strided_slice %12 {offsets = [0, 24], sizes = [8, 8], strides = [1, 1]} : vector<8x96xf32> to vector<8x8xf32>
    %85 = vector.shape_cast %84 : vector<8x8xf32> to vector<4x2x8xf32>
    %86 = vector.extract_strided_slice %12 {offsets = [0, 56], sizes = [8, 8], strides = [1, 1]} : vector<8x96xf32> to vector<8x8xf32>
    %87 = vector.shape_cast %86 : vector<8x8xf32> to vector<4x2x8xf32>
    %88 = vector.extract_strided_slice %12 {offsets = [0, 88], sizes = [8, 8], strides = [1, 1]} : vector<8x96xf32> to vector<8x8xf32>
    %89 = vector.shape_cast %88 : vector<8x8xf32> to vector<4x2x8xf32>
    "tpu.trace_start"() <{level = 10 : i32, message = "nsd,ntd->nst"}> : () -> ()
    %cst_33 = arith.constant dense<0.000000e+00> : vector<4x2x2xf32>
    %90 = tpu.matmul %85, %87, %cst_33 {dimension_numbers = #tpu.dot_dimension_numbers<[2], [2], [1], [1], [0, 0, 0, 1, 1, 1], [0], [0]>} : vector<4x2x8xf32>, vector<4x2x8xf32>, vector<4x2x2xf32> -> vector<4x2x2xf32>
    "tpu.trace_stop"() : () -> ()
    %cst_34 = arith.constant 0.353553385 : f32
    %91 = vector.broadcast %cst_34 : f32 to vector<4x2x2xf32>
    %92 = arith.mulf %90, %91 : vector<4x2x2xf32>
    %cst_35 = arith.constant dense<0xFF800000> : vector<4x2xf32>
    %93 = vector.multi_reduction <maximumf>, %92, %cst_35 [2] : vector<4x2x2xf32> to vector<4x2xf32>
    %94 = vector.shape_cast %93 : vector<4x2xf32> to vector<4x2x1xf32>
    %95 = vector.broadcast %94 : vector<4x2x1xf32> to vector<4x2x2xf32>
    %96 = arith.subf %92, %95 : vector<4x2x2xf32>
    %97 = math.exp %96 : vector<4x2x2xf32>
    %cst_36 = arith.constant dense<0.000000e+00> : vector<4x2xf32>
    %98 = vector.multi_reduction <add>, %97, %cst_36 [2] : vector<4x2x2xf32> to vector<4x2xf32>
    %99 = vector.shape_cast %98 : vector<4x2xf32> to vector<4x2x1xf32>
    %100 = vector.broadcast %99 : vector<4x2x1xf32> to vector<4x2x2xf32>
    %101 = arith.divf %97, %100 : vector<4x2x2xf32>
    "tpu.trace_start"() <{level = 10 : i32, message = "nst,ntd->nsd"}> : () -> ()
    %cst_37 = arith.constant dense<0.000000e+00> : vector<4x2x8xf32>
    %102 = tpu.matmul %101, %89, %cst_37 {dimension_numbers = #tpu.dot_dimension_numbers<[2], [1], [1], [2], [0, 0, 0, 1, 1, 2], [0], [0]>} : vector<4x2x2xf32>, vector<4x2x8xf32>, vector<4x2x8xf32> -> vector<4x2x8xf32>
    "tpu.trace_stop"() : () -> ()
    %103 = vector.shape_cast %102 : vector<4x2x8xf32> to vector<8x8xf32>
    %104 = vector.extract_strided_slice %13 {offsets = [24, 0], sizes = [8, 32], strides = [1, 1]} : vector<32x32xf32> to vector<8x32xf32>
    %cst_38 = arith.constant dense<0.000000e+00> : vector<8x32xf32>
    %105 = tpu.matmul %103, %104, %cst_38 {dimension_numbers = #tpu.dot_dimension_numbers<[1], [0], [0], [1], [0, 0, 1, 1], [], []>} : vector<8x8xf32>, vector<8x32xf32>, vector<8x32xf32> -> vector<8x32xf32>
    %106 = arith.addf %83, %105 : vector<8x32xf32>
    %c0_39 = arith.constant 0 : index
    %c0_40 = arith.constant 0 : index
    %107 = vector.load %arg7[%c0_39, %c0_40] : memref<1x32xf32, #tpu.memory_space<vmem>>, vector<1x32xf32>
    %108 = vector.broadcast %107 : vector<1x32xf32> to vector<8x32xf32>
    %109 = arith.addf %106, %108 : vector<8x32xf32>
    %110 = arith.addf %7, %109 : vector<8x32xf32>
    %c0_41 = arith.constant 0 : index
    %c0_42 = arith.constant 0 : index
    %111 = vector.load %arg12[%c0_41, %c0_42] : memref<1x32xf32, #tpu.memory_space<vmem>>, vector<1x32xf32>
    %c0_43 = arith.constant 0 : index
    %c0_44 = arith.constant 0 : index
    %112 = vector.load %arg13[%c0_43, %c0_44] : memref<1x32xf32, #tpu.memory_space<vmem>>, vector<1x32xf32>
    %cst_45 = arith.constant dense<0.000000e+00> : vector<8xf32>
    %113 = vector.multi_reduction <add>, %110, %cst_45 [1] : vector<8x32xf32> to vector<8xf32>
    %114 = vector.shape_cast %113 : vector<8xf32> to vector<8x1xf32>
    %cst_46 = arith.constant 3.200000e+01 : f32
    %115 = vector.broadcast %cst_46 : f32 to vector<8x1xf32>
    %116 = arith.divf %114, %115 : vector<8x1xf32>
    %117 = vector.broadcast %116 : vector<8x1xf32> to vector<8x32xf32>
    %118 = arith.subf %110, %117 : vector<8x32xf32>
    %119 = arith.mulf %118, %118 : vector<8x32xf32>
    %cst_47 = arith.constant dense<0.000000e+00> : vector<8xf32>
    %120 = vector.multi_reduction <add>, %119, %cst_47 [1] : vector<8x32xf32> to vector<8xf32>
    %121 = vector.shape_cast %120 : vector<8xf32> to vector<8x1xf32>
    %cst_48 = arith.constant 3.200000e+01 : f32
    %122 = vector.broadcast %cst_48 : f32 to vector<8x1xf32>
    %123 = arith.divf %121, %122 : vector<8x1xf32>
    %124 = vector.broadcast %116 : vector<8x1xf32> to vector<8x32xf32>
    %125 = arith.subf %110, %124 : vector<8x32xf32>
    %cst_49 = arith.constant 9.99999974E-6 : f32
    %126 = vector.broadcast %cst_49 : f32 to vector<8x1xf32>
    %127 = arith.addf %123, %126 : vector<8x1xf32>
    %128 = math.rsqrt %127 : vector<8x1xf32>
    %129 = vector.broadcast %128 : vector<8x1xf32> to vector<8x32xf32>
    %130 = arith.mulf %125, %129 : vector<8x32xf32>
    %131 = vector.broadcast %111 : vector<1x32xf32> to vector<8x32xf32>
    %132 = arith.mulf %130, %131 : vector<8x32xf32>
    %133 = vector.broadcast %112 : vector<1x32xf32> to vector<8x32xf32>
    %134 = arith.addf %132, %133 : vector<8x32xf32>
    %c0_50 = arith.constant 0 : index
    %c0_51 = arith.constant 0 : index
    %135 = vector.load %arg8[%c0_50, %c0_51] : memref<32x64xf32, #tpu.memory_space<vmem>>, vector<32x64xf32>
    %cst_52 = arith.constant dense<0.000000e+00> : vector<8x64xf32>
    %136 = tpu.matmul %134, %135, %cst_52 {dimension_numbers = #tpu.dot_dimension_numbers<[1], [0], [0], [1], [0, 0, 1, 1], [], []>} : vector<8x32xf32>, vector<32x64xf32>, vector<8x64xf32> -> vector<8x64xf32>
    %c0_53 = arith.constant 0 : index
    %c0_54 = arith.constant 0 : index
    %137 = vector.load %arg9[%c0_53, %c0_54] : memref<1x64xf32, #tpu.memory_space<vmem>>, vector<1x64xf32>
    %138 = vector.broadcast %137 : vector<1x64xf32> to vector<8x64xf32>
    %139 = arith.addf %136, %138 : vector<8x64xf32>
    %cst_55 = arith.constant 0.000000e+00 : f32
    %140 = vector.broadcast %cst_55 : f32 to vector<8x64xf32>
    %141 = arith.maximumf %139, %140 : vector<8x64xf32>
    %c0_56 = arith.constant 0 : index
    %c0_57 = arith.constant 0 : index
    %142 = vector.load %arg10[%c0_56, %c0_57] : memref<64x32xf32, #tpu.memory_space<vmem>>, vector<64x32xf32>
    %cst_58 = arith.constant dense<0.000000e+00> : vector<8x32xf32>
    %143 = tpu.matmul %141, %142, %cst_58 {dimension_numbers = #tpu.dot_dimension_numbers<[1], [0], [0], [1], [0, 0, 1, 1], [], []>} : vector<8x64xf32>, vector<64x32xf32>, vector<8x32xf32> -> vector<8x32xf32>
    %c0_59 = arith.constant 0 : index
    %c0_60 = arith.constant 0 : index
    %144 = vector.load %arg11[%c0_59, %c0_60] : memref<1x32xf32, #tpu.memory_space<vmem>>, vector<1x32xf32>
    %145 = vector.broadcast %144 : vector<1x32xf32> to vector<8x32xf32>
    %146 = arith.addf %143, %145 : vector<8x32xf32>
    %147 = arith.addf %134, %146 : vector<8x32xf32>
    %c0_61 = arith.constant 0 : index
    %c0_62 = arith.constant 0 : index
    %148 = vector.load %arg14[%c0_61, %c0_62] : memref<1x32xf32, #tpu.memory_space<vmem>>, vector<1x32xf32>
    %c0_63 = arith.constant 0 : index
    %c0_64 = arith.constant 0 : index
    %149 = vector.load %arg15[%c0_63, %c0_64] : memref<1x32xf32, #tpu.memory_space<vmem>>, vector<1x32xf32>
    %cst_65 = arith.constant dense<0.000000e+00> : vector<8xf32>
    %150 = vector.multi_reduction <add>, %147, %cst_65 [1] : vector<8x32xf32> to vector<8xf32>
    %151 = vector.shape_cast %150 : vector<8xf32> to vector<8x1xf32>
    %cst_66 = arith.constant 3.200000e+01 : f32
    %152 = vector.broadcast %cst_66 : f32 to vector<8x1xf32>
    %153 = arith.divf %151, %152 : vector<8x1xf32>
    %154 = vector.broadcast %153 : vector<8x1xf32> to vector<8x32xf32>
    %155 = arith.subf %147, %154 : vector<8x32xf32>
    %156 = arith.mulf %155, %155 : vector<8x32xf32>
    %cst_67 = arith.constant dense<0.000000e+00> : vector<8xf32>
    %157 = vector.multi_reduction <add>, %156, %cst_67 [1] : vector<8x32xf32> to vector<8xf32>
    %158 = vector.shape_cast %157 : vector<8xf32> to vector<8x1xf32>
    %cst_68 = arith.constant 3.200000e+01 : f32
    %159 = vector.broadcast %cst_68 : f32 to vector<8x1xf32>
    %160 = arith.divf %158, %159 : vector<8x1xf32>
    %161 = vector.broadcast %153 : vector<8x1xf32> to vector<8x32xf32>
    %162 = arith.subf %147, %161 : vector<8x32xf32>
    %cst_69 = arith.constant 9.99999974E-6 : f32
    %163 = vector.broadcast %cst_69 : f32 to vector<8x1xf32>
    %164 = arith.addf %160, %163 : vector<8x1xf32>
    %165 = math.rsqrt %164 : vector<8x1xf32>
    %166 = vector.broadcast %165 : vector<8x1xf32> to vector<8x32xf32>
    %167 = arith.mulf %162, %166 : vector<8x32xf32>
    %168 = vector.broadcast %148 : vector<1x32xf32> to vector<8x32xf32>
    %169 = arith.mulf %167, %168 : vector<8x32xf32>
    %170 = vector.broadcast %149 : vector<1x32xf32> to vector<8x32xf32>
    %171 = arith.addf %169, %170 : vector<8x32xf32>
    %c0_70 = arith.constant 0 : index
    %c0_71 = arith.constant 0 : index
    %172 = vector.load %arg16[%c0_70, %c0_71] : memref<32x96xf32, #tpu.memory_space<vmem>>, vector<32x96xf32>
    %cst_72 = arith.constant dense<0.000000e+00> : vector<8x96xf32>
    %173 = tpu.matmul %171, %172, %cst_72 {dimension_numbers = #tpu.dot_dimension_numbers<[1], [0], [0], [1], [0, 0, 1, 1], [], []>} : vector<8x32xf32>, vector<32x96xf32>, vector<8x96xf32> -> vector<8x96xf32>
    %c0_73 = arith.constant 0 : index
    %c0_74 = arith.constant 0 : index
    %174 = vector.load %arg17[%c0_73, %c0_74] : memref<1x96xf32, #tpu.memory_space<vmem>>, vector<1x96xf32>
    %175 = vector.broadcast %174 : vector<1x96xf32> to vector<8x96xf32>
    %176 = arith.addf %173, %175 : vector<8x96xf32>
    %c0_75 = arith.constant 0 : index
    %c0_76 = arith.constant 0 : index
    %177 = vector.load %arg18[%c0_75, %c0_76] : memref<32x32xf32, #tpu.memory_space<vmem>>, vector<32x32xf32>
    %cst_77 = arith.constant 0.000000e+00 : f32
    %178 = vector.broadcast %cst_77 : f32 to vector<8x32xf32>
    %179 = vector.extract_strided_slice %176 {offsets = [0, 0], sizes = [8, 8], strides = [1, 1]} : vector<8x96xf32> to vector<8x8xf32>
    %180 = vector.shape_cast %179 : vector<8x8xf32> to vector<4x2x8xf32>
    %181 = vector.extract_strided_slice %176 {offsets = [0, 32], sizes = [8, 8], strides = [1, 1]} : vector<8x96xf32> to vector<8x8xf32>
    %182 = vector.shape_cast %181 : vector<8x8xf32> to vector<4x2x8xf32>
    %183 = vector.extract_strided_slice %176 {offsets = [0, 64], sizes = [8, 8], strides = [1, 1]} : vector<8x96xf32> to vector<8x8xf32>
    %184 = vector.shape_cast %183 : vector<8x8xf32> to vector<4x2x8xf32>
    "tpu.trace_start"() <{level = 10 : i32, message = "nsd,ntd->nst"}> : () -> ()
    %cst_78 = arith.constant dense<0.000000e+00> : vector<4x2x2xf32>
    %185 = tpu.matmul %180, %182, %cst_78 {dimension_numbers = #tpu.dot_dimension_numbers<[2], [2], [1], [1], [0, 0, 0, 1, 1, 1], [0], [0]>} : vector<4x2x8xf32>, vector<4x2x8xf32>, vector<4x2x2xf32> -> vector<4x2x2xf32>
    "tpu.trace_stop"() : () -> ()
    %cst_79 = arith.constant 0.353553385 : f32
    %186 = vector.broadcast %cst_79 : f32 to vector<4x2x2xf32>
    %187 = arith.mulf %185, %186 : vector<4x2x2xf32>
    %cst_80 = arith.constant dense<0xFF800000> : vector<4x2xf32>
    %188 = vector.multi_reduction <maximumf>, %187, %cst_80 [2] : vector<4x2x2xf32> to vector<4x2xf32>
    %189 = vector.shape_cast %188 : vector<4x2xf32> to vector<4x2x1xf32>
    %190 = vector.broadcast %189 : vector<4x2x1xf32> to vector<4x2x2xf32>
    %191 = arith.subf %187, %190 : vector<4x2x2xf32>
    %192 = math.exp %191 : vector<4x2x2xf32>
    %cst_81 = arith.constant dense<0.000000e+00> : vector<4x2xf32>
    %193 = vector.multi_reduction <add>, %192, %cst_81 [2] : vector<4x2x2xf32> to vector<4x2xf32>
    %194 = vector.shape_cast %193 : vector<4x2xf32> to vector<4x2x1xf32>
    %195 = vector.broadcast %194 : vector<4x2x1xf32> to vector<4x2x2xf32>
    %196 = arith.divf %192, %195 : vector<4x2x2xf32>
    "tpu.trace_start"() <{level = 10 : i32, message = "nst,ntd->nsd"}> : () -> ()
    %cst_82 = arith.constant dense<0.000000e+00> : vector<4x2x8xf32>
    %197 = tpu.matmul %196, %184, %cst_82 {dimension_numbers = #tpu.dot_dimension_numbers<[2], [1], [1], [2], [0, 0, 0, 1, 1, 2], [0], [0]>} : vector<4x2x2xf32>, vector<4x2x8xf32>, vector<4x2x8xf32> -> vector<4x2x8xf32>
    "tpu.trace_stop"() : () -> ()
    %198 = vector.shape_cast %197 : vector<4x2x8xf32> to vector<8x8xf32>
    %199 = vector.extract_strided_slice %177 {offsets = [0, 0], sizes = [8, 32], strides = [1, 1]} : vector<32x32xf32> to vector<8x32xf32>
    %cst_83 = arith.constant dense<0.000000e+00> : vector<8x32xf32>
    %200 = tpu.matmul %198, %199, %cst_83 {dimension_numbers = #tpu.dot_dimension_numbers<[1], [0], [0], [1], [0, 0, 1, 1], [], []>} : vector<8x8xf32>, vector<8x32xf32>, vector<8x32xf32> -> vector<8x32xf32>
    %201 = arith.addf %178, %200 : vector<8x32xf32>
    %202 = vector.extract_strided_slice %176 {offsets = [0, 8], sizes = [8, 8], strides = [1, 1]} : vector<8x96xf32> to vector<8x8xf32>
    %203 = vector.shape_cast %202 : vector<8x8xf32> to vector<4x2x8xf32>
    %204 = vector.extract_strided_slice %176 {offsets = [0, 40], sizes = [8, 8], strides = [1, 1]} : vector<8x96xf32> to vector<8x8xf32>
    %205 = vector.shape_cast %204 : vector<8x8xf32> to vector<4x2x8xf32>
    %206 = vector.extract_strided_slice %176 {offsets = [0, 72], sizes = [8, 8], strides = [1, 1]} : vector<8x96xf32> to vector<8x8xf32>
    %207 = vector.shape_cast %206 : vector<8x8xf32> to vector<4x2x8xf32>
    "tpu.trace_start"() <{level = 10 : i32, message = "nsd,ntd->nst"}> : () -> ()
    %cst_84 = arith.constant dense<0.000000e+00> : vector<4x2x2xf32>
    %208 = tpu.matmul %203, %205, %cst_84 {dimension_numbers = #tpu.dot_dimension_numbers<[2], [2], [1], [1], [0, 0, 0, 1, 1, 1], [0], [0]>} : vector<4x2x8xf32>, vector<4x2x8xf32>, vector<4x2x2xf32> -> vector<4x2x2xf32>
    "tpu.trace_stop"() : () -> ()
    %cst_85 = arith.constant 0.353553385 : f32
    %209 = vector.broadcast %cst_85 : f32 to vector<4x2x2xf32>
    %210 = arith.mulf %208, %209 : vector<4x2x2xf32>
    %cst_86 = arith.constant dense<0xFF800000> : vector<4x2xf32>
    %211 = vector.multi_reduction <maximumf>, %210, %cst_86 [2] : vector<4x2x2xf32> to vector<4x2xf32>
    %212 = vector.shape_cast %211 : vector<4x2xf32> to vector<4x2x1xf32>
    %213 = vector.broadcast %212 : vector<4x2x1xf32> to vector<4x2x2xf32>
    %214 = arith.subf %210, %213 : vector<4x2x2xf32>
    %215 = math.exp %214 : vector<4x2x2xf32>
    %cst_87 = arith.constant dense<0.000000e+00> : vector<4x2xf32>
    %216 = vector.multi_reduction <add>, %215, %cst_87 [2] : vector<4x2x2xf32> to vector<4x2xf32>
    %217 = vector.shape_cast %216 : vector<4x2xf32> to vector<4x2x1xf32>
    %218 = vector.broadcast %217 : vector<4x2x1xf32> to vector<4x2x2xf32>
    %219 = arith.divf %215, %218 : vector<4x2x2xf32>
    "tpu.trace_start"() <{level = 10 : i32, message = "nst,ntd->nsd"}> : () -> ()
    %cst_88 = arith.constant dense<0.000000e+00> : vector<4x2x8xf32>
    %220 = tpu.matmul %219, %207, %cst_88 {dimension_numbers = #tpu.dot_dimension_numbers<[2], [1], [1], [2], [0, 0, 0, 1, 1, 2], [0], [0]>} : vector<4x2x2xf32>, vector<4x2x8xf32>, vector<4x2x8xf32> -> vector<4x2x8xf32>
    "tpu.trace_stop"() : () -> ()
    %221 = vector.shape_cast %220 : vector<4x2x8xf32> to vector<8x8xf32>
    %222 = vector.extract_strided_slice %177 {offsets = [8, 0], sizes = [8, 32], strides = [1, 1]} : vector<32x32xf32> to vector<8x32xf32>
    %cst_89 = arith.constant dense<0.000000e+00> : vector<8x32xf32>
    %223 = tpu.matmul %221, %222, %cst_89 {dimension_numbers = #tpu.dot_dimension_numbers<[1], [0], [0], [1], [0, 0, 1, 1], [], []>} : vector<8x8xf32>, vector<8x32xf32>, vector<8x32xf32> -> vector<8x32xf32>
    %224 = arith.addf %201, %223 : vector<8x32xf32>
    %225 = vector.extract_strided_slice %176 {offsets = [0, 16], sizes = [8, 8], strides = [1, 1]} : vector<8x96xf32> to vector<8x8xf32>
    %226 = vector.shape_cast %225 : vector<8x8xf32> to vector<4x2x8xf32>
    %227 = vector.extract_strided_slice %176 {offsets = [0, 48], sizes = [8, 8], strides = [1, 1]} : vector<8x96xf32> to vector<8x8xf32>
    %228 = vector.shape_cast %227 : vector<8x8xf32> to vector<4x2x8xf32>
    %229 = vector.extract_strided_slice %176 {offsets = [0, 80], sizes = [8, 8], strides = [1, 1]} : vector<8x96xf32> to vector<8x8xf32>
    %230 = vector.shape_cast %229 : vector<8x8xf32> to vector<4x2x8xf32>
    "tpu.trace_start"() <{level = 10 : i32, message = "nsd,ntd->nst"}> : () -> ()
    %cst_90 = arith.constant dense<0.000000e+00> : vector<4x2x2xf32>
    %231 = tpu.matmul %226, %228, %cst_90 {dimension_numbers = #tpu.dot_dimension_numbers<[2], [2], [1], [1], [0, 0, 0, 1, 1, 1], [0], [0]>} : vector<4x2x8xf32>, vector<4x2x8xf32>, vector<4x2x2xf32> -> vector<4x2x2xf32>
    "tpu.trace_stop"() : () -> ()
    %cst_91 = arith.constant 0.353553385 : f32
    %232 = vector.broadcast %cst_91 : f32 to vector<4x2x2xf32>
    %233 = arith.mulf %231, %232 : vector<4x2x2xf32>
    %cst_92 = arith.constant dense<0xFF800000> : vector<4x2xf32>
    %234 = vector.multi_reduction <maximumf>, %233, %cst_92 [2] : vector<4x2x2xf32> to vector<4x2xf32>
    %235 = vector.shape_cast %234 : vector<4x2xf32> to vector<4x2x1xf32>
    %236 = vector.broadcast %235 : vector<4x2x1xf32> to vector<4x2x2xf32>
    %237 = arith.subf %233, %236 : vector<4x2x2xf32>
    %238 = math.exp %237 : vector<4x2x2xf32>
    %cst_93 = arith.constant dense<0.000000e+00> : vector<4x2xf32>
    %239 = vector.multi_reduction <add>, %238, %cst_93 [2] : vector<4x2x2xf32> to vector<4x2xf32>
    %240 = vector.shape_cast %239 : vector<4x2xf32> to vector<4x2x1xf32>
    %241 = vector.broadcast %240 : vector<4x2x1xf32> to vector<4x2x2xf32>
    %242 = arith.divf %238, %241 : vector<4x2x2xf32>
    "tpu.trace_start"() <{level = 10 : i32, message = "nst,ntd->nsd"}> : () -> ()
    %cst_94 = arith.constant dense<0.000000e+00> : vector<4x2x8xf32>
    %243 = tpu.matmul %242, %230, %cst_94 {dimension_numbers = #tpu.dot_dimension_numbers<[2], [1], [1], [2], [0, 0, 0, 1, 1, 2], [0], [0]>} : vector<4x2x2xf32>, vector<4x2x8xf32>, vector<4x2x8xf32> -> vector<4x2x8xf32>
    "tpu.trace_stop"() : () -> ()
    %244 = vector.shape_cast %243 : vector<4x2x8xf32> to vector<8x8xf32>
    %245 = vector.extract_strided_slice %177 {offsets = [16, 0], sizes = [8, 32], strides = [1, 1]} : vector<32x32xf32> to vector<8x32xf32>
    %cst_95 = arith.constant dense<0.000000e+00> : vector<8x32xf32>
    %246 = tpu.matmul %244, %245, %cst_95 {dimension_numbers = #tpu.dot_dimension_numbers<[1], [0], [0], [1], [0, 0, 1, 1], [], []>} : vector<8x8xf32>, vector<8x32xf32>, vector<8x32xf32> -> vector<8x32xf32>
    %247 = arith.addf %224, %246 : vector<8x32xf32>
    %248 = vector.extract_strided_slice %176 {offsets = [0, 24], sizes = [8, 8], strides = [1, 1]} : vector<8x96xf32> to vector<8x8xf32>
    %249 = vector.shape_cast %248 : vector<8x8xf32> to vector<4x2x8xf32>
    %250 = vector.extract_strided_slice %176 {offsets = [0, 56], sizes = [8, 8], strides = [1, 1]} : vector<8x96xf32> to vector<8x8xf32>
    %251 = vector.shape_cast %250 : vector<8x8xf32> to vector<4x2x8xf32>
    %252 = vector.extract_strided_slice %176 {offsets = [0, 88], sizes = [8, 8], strides = [1, 1]} : vector<8x96xf32> to vector<8x8xf32>
    %253 = vector.shape_cast %252 : vector<8x8xf32> to vector<4x2x8xf32>
    "tpu.trace_start"() <{level = 10 : i32, message = "nsd,ntd->nst"}> : () -> ()
    %cst_96 = arith.constant dense<0.000000e+00> : vector<4x2x2xf32>
    %254 = tpu.matmul %249, %251, %cst_96 {dimension_numbers = #tpu.dot_dimension_numbers<[2], [2], [1], [1], [0, 0, 0, 1, 1, 1], [0], [0]>} : vector<4x2x8xf32>, vector<4x2x8xf32>, vector<4x2x2xf32> -> vector<4x2x2xf32>
    "tpu.trace_stop"() : () -> ()
    %cst_97 = arith.constant 0.353553385 : f32
    %255 = vector.broadcast %cst_97 : f32 to vector<4x2x2xf32>
    %256 = arith.mulf %254, %255 : vector<4x2x2xf32>
    %cst_98 = arith.constant dense<0xFF800000> : vector<4x2xf32>
    %257 = vector.multi_reduction <maximumf>, %256, %cst_98 [2] : vector<4x2x2xf32> to vector<4x2xf32>
    %258 = vector.shape_cast %257 : vector<4x2xf32> to vector<4x2x1xf32>
    %259 = vector.broadcast %258 : vector<4x2x1xf32> to vector<4x2x2xf32>
    %260 = arith.subf %256, %259 : vector<4x2x2xf32>
    %261 = math.exp %260 : vector<4x2x2xf32>
    %cst_99 = arith.constant dense<0.000000e+00> : vector<4x2xf32>
    %262 = vector.multi_reduction <add>, %261, %cst_99 [2] : vector<4x2x2xf32> to vector<4x2xf32>
    %263 = vector.shape_cast %262 : vector<4x2xf32> to vector<4x2x1xf32>
    %264 = vector.broadcast %263 : vector<4x2x1xf32> to vector<4x2x2xf32>
    %265 = arith.divf %261, %264 : vector<4x2x2xf32>
    "tpu.trace_start"() <{level = 10 : i32, message = "nst,ntd->nsd"}> : () -> ()
    %cst_100 = arith.constant dense<0.000000e+00> : vector<4x2x8xf32>
    %266 = tpu.matmul %265, %253, %cst_100 {dimension_numbers = #tpu.dot_dimension_numbers<[2], [1], [1], [2], [0, 0, 0, 1, 1, 2], [0], [0]>} : vector<4x2x2xf32>, vector<4x2x8xf32>, vector<4x2x8xf32> -> vector<4x2x8xf32>
    "tpu.trace_stop"() : () -> ()
    %267 = vector.shape_cast %266 : vector<4x2x8xf32> to vector<8x8xf32>
    %268 = vector.extract_strided_slice %177 {offsets = [24, 0], sizes = [8, 32], strides = [1, 1]} : vector<32x32xf32> to vector<8x32xf32>
    %cst_101 = arith.constant dense<0.000000e+00> : vector<8x32xf32>
    %269 = tpu.matmul %267, %268, %cst_101 {dimension_numbers = #tpu.dot_dimension_numbers<[1], [0], [0], [1], [0, 0, 1, 1], [], []>} : vector<8x8xf32>, vector<8x32xf32>, vector<8x32xf32> -> vector<8x32xf32>
    %270 = arith.addf %247, %269 : vector<8x32xf32>
    %c0_102 = arith.constant 0 : index
    %c0_103 = arith.constant 0 : index
    %271 = vector.load %arg19[%c0_102, %c0_103] : memref<1x32xf32, #tpu.memory_space<vmem>>, vector<1x32xf32>
    %272 = vector.broadcast %271 : vector<1x32xf32> to vector<8x32xf32>
    %273 = arith.addf %270, %272 : vector<8x32xf32>
    %274 = arith.addf %171, %273 : vector<8x32xf32>
    %c0_104 = arith.constant 0 : index
    %c0_105 = arith.constant 0 : index
    %275 = vector.load %arg24[%c0_104, %c0_105] : memref<1x32xf32, #tpu.memory_space<vmem>>, vector<1x32xf32>
    %c0_106 = arith.constant 0 : index
    %c0_107 = arith.constant 0 : index
    %276 = vector.load %arg25[%c0_106, %c0_107] : memref<1x32xf32, #tpu.memory_space<vmem>>, vector<1x32xf32>
    %cst_108 = arith.constant dense<0.000000e+00> : vector<8xf32>
    %277 = vector.multi_reduction <add>, %274, %cst_108 [1] : vector<8x32xf32> to vector<8xf32>
    %278 = vector.shape_cast %277 : vector<8xf32> to vector<8x1xf32>
    %cst_109 = arith.constant 3.200000e+01 : f32
    %279 = vector.broadcast %cst_109 : f32 to vector<8x1xf32>
    %280 = arith.divf %278, %279 : vector<8x1xf32>
    %281 = vector.broadcast %280 : vector<8x1xf32> to vector<8x32xf32>
    %282 = arith.subf %274, %281 : vector<8x32xf32>
    %283 = arith.mulf %282, %282 : vector<8x32xf32>
    %cst_110 = arith.constant dense<0.000000e+00> : vector<8xf32>
    %284 = vector.multi_reduction <add>, %283, %cst_110 [1] : vector<8x32xf32> to vector<8xf32>
    %285 = vector.shape_cast %284 : vector<8xf32> to vector<8x1xf32>
    %cst_111 = arith.constant 3.200000e+01 : f32
    %286 = vector.broadcast %cst_111 : f32 to vector<8x1xf32>
    %287 = arith.divf %285, %286 : vector<8x1xf32>
    %288 = vector.broadcast %280 : vector<8x1xf32> to vector<8x32xf32>
    %289 = arith.subf %274, %288 : vector<8x32xf32>
    %cst_112 = arith.constant 9.99999974E-6 : f32
    %290 = vector.broadcast %cst_112 : f32 to vector<8x1xf32>
    %291 = arith.addf %287, %290 : vector<8x1xf32>
    %292 = math.rsqrt %291 : vector<8x1xf32>
    %293 = vector.broadcast %292 : vector<8x1xf32> to vector<8x32xf32>
    %294 = arith.mulf %289, %293 : vector<8x32xf32>
    %295 = vector.broadcast %275 : vector<1x32xf32> to vector<8x32xf32>
    %296 = arith.mulf %294, %295 : vector<8x32xf32>
    %297 = vector.broadcast %276 : vector<1x32xf32> to vector<8x32xf32>
    %298 = arith.addf %296, %297 : vector<8x32xf32>
    %c0_113 = arith.constant 0 : index
    %c0_114 = arith.constant 0 : index
    %299 = vector.load %arg20[%c0_113, %c0_114] : memref<32x64xf32, #tpu.memory_space<vmem>>, vector<32x64xf32>
    %cst_115 = arith.constant dense<0.000000e+00> : vector<8x64xf32>
    %300 = tpu.matmul %298, %299, %cst_115 {dimension_numbers = #tpu.dot_dimension_numbers<[1], [0], [0], [1], [0, 0, 1, 1], [], []>} : vector<8x32xf32>, vector<32x64xf32>, vector<8x64xf32> -> vector<8x64xf32>
    %c0_116 = arith.constant 0 : index
    %c0_117 = arith.constant 0 : index
    %301 = vector.load %arg21[%c0_116, %c0_117] : memref<1x64xf32, #tpu.memory_space<vmem>>, vector<1x64xf32>
    %302 = vector.broadcast %301 : vector<1x64xf32> to vector<8x64xf32>
    %303 = arith.addf %300, %302 : vector<8x64xf32>
    %cst_118 = arith.constant 0.000000e+00 : f32
    %304 = vector.broadcast %cst_118 : f32 to vector<8x64xf32>
    %305 = arith.maximumf %303, %304 : vector<8x64xf32>
    %c0_119 = arith.constant 0 : index
    %c0_120 = arith.constant 0 : index
    %306 = vector.load %arg22[%c0_119, %c0_120] : memref<64x32xf32, #tpu.memory_space<vmem>>, vector<64x32xf32>
    %cst_121 = arith.constant dense<0.000000e+00> : vector<8x32xf32>
    %307 = tpu.matmul %305, %306, %cst_121 {dimension_numbers = #tpu.dot_dimension_numbers<[1], [0], [0], [1], [0, 0, 1, 1], [], []>} : vector<8x64xf32>, vector<64x32xf32>, vector<8x32xf32> -> vector<8x32xf32>
    %c0_122 = arith.constant 0 : index
    %c0_123 = arith.constant 0 : index
    %308 = vector.load %arg23[%c0_122, %c0_123] : memref<1x32xf32, #tpu.memory_space<vmem>>, vector<1x32xf32>
    %309 = vector.broadcast %308 : vector<1x32xf32> to vector<8x32xf32>
    %310 = arith.addf %307, %309 : vector<8x32xf32>
    %311 = arith.addf %298, %310 : vector<8x32xf32>
    %c0_124 = arith.constant 0 : index
    %c0_125 = arith.constant 0 : index
    %312 = vector.load %arg26[%c0_124, %c0_125] : memref<1x32xf32, #tpu.memory_space<vmem>>, vector<1x32xf32>
    %c0_126 = arith.constant 0 : index
    %c0_127 = arith.constant 0 : index
    %313 = vector.load %arg27[%c0_126, %c0_127] : memref<1x32xf32, #tpu.memory_space<vmem>>, vector<1x32xf32>
    %cst_128 = arith.constant dense<0.000000e+00> : vector<8xf32>
    %314 = vector.multi_reduction <add>, %311, %cst_128 [1] : vector<8x32xf32> to vector<8xf32>
    %315 = vector.shape_cast %314 : vector<8xf32> to vector<8x1xf32>
    %cst_129 = arith.constant 3.200000e+01 : f32
    %316 = vector.broadcast %cst_129 : f32 to vector<8x1xf32>
    %317 = arith.divf %315, %316 : vector<8x1xf32>
    %318 = vector.broadcast %317 : vector<8x1xf32> to vector<8x32xf32>
    %319 = arith.subf %311, %318 : vector<8x32xf32>
    %320 = arith.mulf %319, %319 : vector<8x32xf32>
    %cst_130 = arith.constant dense<0.000000e+00> : vector<8xf32>
    %321 = vector.multi_reduction <add>, %320, %cst_130 [1] : vector<8x32xf32> to vector<8xf32>
    %322 = vector.shape_cast %321 : vector<8xf32> to vector<8x1xf32>
    %cst_131 = arith.constant 3.200000e+01 : f32
    %323 = vector.broadcast %cst_131 : f32 to vector<8x1xf32>
    %324 = arith.divf %322, %323 : vector<8x1xf32>
    %325 = vector.broadcast %317 : vector<8x1xf32> to vector<8x32xf32>
    %326 = arith.subf %311, %325 : vector<8x32xf32>
    %cst_132 = arith.constant 9.99999974E-6 : f32
    %327 = vector.broadcast %cst_132 : f32 to vector<8x1xf32>
    %328 = arith.addf %324, %327 : vector<8x1xf32>
    %329 = math.rsqrt %328 : vector<8x1xf32>
    %330 = vector.broadcast %329 : vector<8x1xf32> to vector<8x32xf32>
    %331 = arith.mulf %326, %330 : vector<8x32xf32>
    %332 = vector.broadcast %312 : vector<1x32xf32> to vector<8x32xf32>
    %333 = arith.mulf %331, %332 : vector<8x32xf32>
    %334 = vector.broadcast %313 : vector<1x32xf32> to vector<8x32xf32>
    %335 = arith.addf %333, %334 : vector<8x32xf32>
    %336 = vector.extract_strided_slice %335 {offsets = [6, 0], sizes = [2, 32], strides = [1, 1]} : vector<8x32xf32> to vector<2x32xf32>
    %c0_133 = arith.constant 0 : index
    %c0_134 = arith.constant 0 : index
    %337 = vector.load %arg28[%c0_133, %c0_134] : memref<32x8xf32, #tpu.memory_space<vmem>>, vector<32x8xf32>
    %cst_135 = arith.constant dense<0.000000e+00> : vector<2x8xf32>
    %338 = tpu.matmul %336, %337, %cst_135 {dimension_numbers = #tpu.dot_dimension_numbers<[1], [0], [0], [1], [0, 0, 1, 1], [], []>} : vector<2x32xf32>, vector<32x8xf32>, vector<2x8xf32> -> vector<2x8xf32>
    %c0_136 = arith.constant 0 : index
    %c0_137 = arith.constant 0 : index
    %339 = vector.load %arg29[%c0_136, %c0_137] : memref<1x8xf32, #tpu.memory_space<vmem>>, vector<1x8xf32>
    %340 = vector.broadcast %339 : vector<1x8xf32> to vector<2x8xf32>
    %341 = arith.addf %338, %340 : vector<2x8xf32>
    %c0_138 = arith.constant 0 : index
    %c0_139 = arith.constant 0 : index
    %342 = vector.load %arg30[%c0_138, %c0_139] : memref<2x8xf32, #tpu.memory_space<vmem>>, vector<2x8xf32>
    tpu.vector_store %arg30[%c0_138, %c0_139], %341 {strides = array<i32>} : memref<2x8xf32, #tpu.memory_space<vmem>>, vector<2x8xf32>,
    return
  }
}

</mosaic_0001>

<bundles_post_ra>
// kernel: patchtst_forward.1
= control target key start
LH: loop header
LB: loop body
LE: loop exit
PB: predicated region body
PF: predicated region fallthrough
CT: control target
= control target key end

     0   :  { %s3977_s6 = smov 1   ;;  %s3978_s10 = smov 2   ;;  %s4954_s0 = inlined_call_operand.smem [shape: u32[31], index: -1, kind: input, shape index: {}] }
   0x1   :  { %s4028_s5 = sld [smem:[%s4954_s0]]   ;;  %s3979_s14 = smov 3  }
   0x2   :  { %s4033_s9 = sld [smem:[%s4954_s0 + %s3977_s6]]   ;;  %s3980_s18 = smov 4  }
   0x3   :  { %s4038_s13 = sld [smem:[%s4954_s0 + %s3978_s10]]   ;;  %s3981_s22 = smov 5  }
   0x4   :  { %s4043_s17 = sld [smem:[%s4954_s0 + %s3979_s14]]   ;;  %s3982_s26 = smov 6  }
   0x5   :  { %s4048_s21 = sld [smem:[%s4954_s0 + %s3980_s18]]   ;;  %s3983_s30 = smov 7  }
   0x6   :  { %s4053_s25 = sld [smem:[%s4954_s0 + %s3981_s22]]   ;;  %s3984_s4 = smov 8  }
   0x7   :  { %s4058_s29 = sld [smem:[%s4954_s0 + %s3982_s26]]   ;;  %s3985_s10 = smov 9  }
   0x8   :  { %s4063_s3 = sld [smem:[%s4954_s0 + %s3983_s30]]   ;;  %s3986_s15 = smov 10  }
   0x9   :  { %s4068_s8 = sld [smem:[%s4954_s0 + %s3984_s4]]   ;;  %s3987_s20 = smov 11  }
   0xa   :  { %s4073_s14 = sld [smem:[%s4954_s0 + %s3985_s10]]   ;;  %s3988_s26 = smov 12  }
   0xb   :  { %s4078_s19 = sld [smem:[%s4954_s0 + %s3986_s15]]   ;;  %s3989_s1 = smov 13  }
   0xc   :  { %s4083_s24 = sld [smem:[%s4954_s0 + %s3987_s20]]   ;;  %s3990_s7 = smov 14  }
   0xd   :  { %s4088_s30 = sld [smem:[%s4954_s0 + %s3988_s26]]   ;;  %s3991_s15 = smov 15  }
   0xe   :  { %s4093_s6 = sld [smem:[%s4954_s0 + %s3989_s1]]   ;;  %s3992_s22 = smov 16  }
   0xf   :  { %s4098_s12 = sld [smem:[%s4954_s0 + %s3990_s7]]   ;;  %s3993_s28 = smov 17  }
  0x10   :  { %s4103_s20 = sld [smem:[%s4954_s0 + %s3991_s15]]   ;;  %s3994_s7 = smov 18  }
  0x11   :  { %s4108_s27 = sld [smem:[%s4954_s0 + %s3992_s22]]   ;;  %s3995_s15 = smov 19  }
  0x12   :  { %s4113_s4 = sld [smem:[%s4954_s0 + %s3993_s28]]   ;;  %s3996_s22 = smov 20  }
  0x13   :  { %s3997_s28 = smov 21  }
  0x15   :  { %4960 = sst [smem:[#allocation5_spill]] %s4098_s12 }
  0x16   :  { %4961 = sst [smem:[#allocation6_spill]] %s4103_s20 }
  0x17   :  { %4962 = sst [smem:[#allocation7_spill]] %s4108_s27 }
  0x18   :  { %4963 = sst [smem:[#allocation8_spill]] %s4113_s4 }
  0x19   :  { %s4118_s12 = sld [smem:[%s4954_s0 + %s3994_s7]]   ;;  %s3998_s7 = smov 22  }
  0x1a   :  { %s4123_s20 = sld [smem:[%s4954_s0 + %s3995_s15]]   ;;  %s3999_s15 = smov 23  }
  0x1b   :  { %s4128_s27 = sld [smem:[%s4954_s0 + %s3996_s22]]   ;;  %s4000_s22 = smov 24  }
  0x1c   :  { %s4133_s4 = sld [smem:[%s4954_s0 + %s3997_s28]]   ;;  %s4001_s28 = smov 25  }
  0x1f   :  { %4964 = sst [smem:[#allocation9_spill]] %s4118_s12 }
  0x20   :  { %4965 = sst [smem:[#allocation10_spill]] %s4123_s20 }
  0x21   :  { %4966 = sst [smem:[#allocation11_spill]] %s4128_s27 }
  0x22   :  { %4967 = sst [smem:[#allocation12_spill]] %s4133_s4 }
  0x23   :  { %s4138_s12 = sld [smem:[%s4954_s0 + %s3998_s7]]   ;;  %s4002_s7 = smov 26  }
  0x24   :  { %s4143_s20 = sld [smem:[%s4954_s0 + %s3999_s15]]   ;;  %s4003_s15 = smov 27  }
  0x25   :  { %s4148_s27 = sld [smem:[%s4954_s0 + %s4000_s22]]   ;;  %s4004_s22 = smov 28  }
  0x26   :  { %s4153_s4 = sld [smem:[%s4954_s0 + %s4001_s28]]   ;;  %s4005_s28 = smov 29  }
  0x29   :  { %4968 = sst [smem:[#allocation13_spill]] %s4138_s12 }
  0x2a   :  { %4969 = sst [smem:[#allocation14_spill]] %s4143_s20 }
  0x2b   :  { %4970 = sst [smem:[#allocation15_spill]] %s4148_s27 }
  0x2c   :  { %4971 = sst [smem:[#allocation16_spill]] %s4153_s4 }
  0x2d   :  { %s4158_s12 = sld [smem:[%s4954_s0 + %s4002_s7]]   ;;  %s4006_s7 = smov 30  }
  0x2e   :  { %s4163_s20 = sld [smem:[%s4954_s0 + %s4003_s15]]  }
  0x2f   :  { %s4168_s27 = sld [smem:[%s4954_s0 + %s4004_s22]]  }
  0x30   :  { %s4173_s4 = sld [smem:[%s4954_s0 + %s4005_s28]]  }
  0x33   :  { %4972 = sst [smem:[#allocation17_spill]] %s4158_s12 }
  0x34   :  { %s4178_s12 = sld [smem:[%s4954_s0 + %s4006_s7]]  }
  0x35   :  { %v135_v0 = vld [vmem:[%s4033_s9 + $0x38] sm:$0xff]  ;;  %v134_v1 = vld [vmem:[%s4033_s9 + $0x30] sm:$0xff]  ;;  %v133_v2 = vld [vmem:[%s4033_s9 + $0x28] sm:$0xff] }
  0x36   :  { %152 = vmatpush.msra.mxu0 %v135_v0  ;;  %v132_v3 = vld [vmem:[%s4033_s9 + $0x20] sm:$0xff]  ;;  %v169_v4 = vld [vmem:[%s4048_s21 + $0x18] sm:$0xff]  ;;  %v130_v6 = vld [vmem:[%s4033_s9 + $0x10] sm:$0xff] }
  0x37   :  { %v131_v5 = vld [vmem:[%s4033_s9 + $0x18] sm:$0xff]  ;;  %190 = vmatpush.msra.mxu1 %v169_v4 }
  0x38   :  { %153 = vmatpush.msra.mxu0 %v134_v1 }
  0x3a   :  { %154 = vmatpush.msra.mxu0 %v133_v2 }
  0x3c   :  { %155 = vmatpush.msra.mxu0 %v132_v3 }
  0x3e   :  { %156 = vmatpush.msra.mxu0 %v131_v5 }
  0x3f   :  { %66 = vsyncpa [#allocation3], 0  ;;  %v129_v7 = vld [vmem:[%s4033_s9 + $0x8] sm:$0xff]  ;;  %v128_v8 = vld [vmem:[%s4033_s9] sm:$0xff]  ;;  %vm140_vm0 = vcmask 523264   ;;  %vm174_vm1 = vcmask 261120  }
  0x40   :  { %157 = vmatpush.msra.mxu0 %v130_v6  ;;  %v127_v9 = vld [vmem:[%s4028_s5] sm:$0xff]  ;;  %v168_v10 = vld [vmem:[%s4048_s21 + $0x10] sm:$0xff]  ;;  %v167_v11 = vld [vmem:[%s4048_s21 + $0x8] sm:$0xff]  ;;  %s4007_s0 = smov 96   ;;  %vm210_vm2 = vcmask 64512   ;;  %vm4959_vm3 = vcmask 9216  }
  0x41   :  { %191 = vmatpush.msra.mxu1 %v168_v10  ;;  %v166_v12 = vld [vmem:[%s4048_s21] sm:$0xff]  ;;  %s4008_s5 = smov 64   ;;  %s4009_s9 = smov 88   ;;  %vm428_vm4 = vcmask 1041408   ;;  %vm424_vm9 = vcmask 15360  }
  0x42   :  { %158 = vmatpush.msra.mxu0 %v129_v7  ;;  %v3795_v13 = vld [vmem:[%s4038_s13] ss:$0 sm:$0xff]  ;;  %s4010_s13 = smov 120   ;;  %s4012_s21 = smov 112  }
  0x43   :  { %192 = vmatpush.msra.mxu1 %v167_v11  ;;  %v164_v15 = vld [vmem:[%s4043_s17] sm:$0xff]  ;;  %s4011_s17 = smov 56   ;;  %s4014_s15 = smov 48  }
  0x44   :  { %159 = vmatpush.msra.mxu0 %v128_v8  ;;  %v3796_v18 = vld [vmem:[%s4053_s25] ss:$0 sm:$0xff]  ;;  %s4013_s25 = smov 80   ;;  %s4015_s16 = smov 104  }
  0x45   :  { %3608 = vmatmul.msk.f32.vlgmr.msra.gmra.mxu0 %vm140_vm0, %v127_v9  ;;  %193 = vmatpush.msra.mxu1 %v166_v12  ;;  %s4016_s18 = smov 72   ;;  %s4017_s22 = smov 40  }
  0x46   :  { %s5017_s23 = sld [smem:[#allocation15_spill]]  ;;  %s3569_s10 = sshll.u32 %s4178_s12, 4  ;;  %s3570_s10 = int_to_ptr.hbm [resolvable:$true] %s3569_s10 }
  0x47   :  { %s5018_s26 = sld [smem:[#allocation16_spill]]  ;;  %s3963_s11 = sshra.s32 %s3570_s10, 4  ;;  %s3964_s11 = int_to_ptr.hbm [resolvable:$true] %s3963_s11 }
  0x48   :  { %s5019_s28 = sld [smem:[#allocation12_spill]]  ;;  %p3968_p1 = scmp.lt.s32.totalorder %s3964_s11, %s4178_s12 }
  0x49   :  { %s5020_s1 = sld [smem:[#allocation14_spill]] }
  0x4a   :  { %s5021_s2 = sld [smem:[#allocation17_spill]] }
  0xc2   :  { %v161_v14 = vpop.f32.mrf.mxu0 }
  0xc3   :  { %v162_v16 = vadd.f32 %v3795_v13, %v161_v14 }
  0xc5   :  { %v4196_v17 = vadd.f32 %v164_v15, %v162_v16 }
  0xc7   :  { %3609 = vmatmul.msk.f32.vlgmr.msra.gmra.mxu1 %vm174_vm1, %v4196_v17 }
 0x144   :  { %v195_v19 = vpop.f32.mrf.mxu1 }
 0x145   :  { %v4201_v20 = vadd.f32 %v3796_v18, %v195_v19 }
 0x147   :  { %206 = vst [vmem:[#allocation1] ss:$4 sm:$0xff] %v4201_v20  ;;  %v4205_v21 = vrot.slane %v4201_v20, 2  ;;  %v4209_v23 = vrot.slane %v4201_v20, 4  ;;  %v4214_v25 = vrot.slane %v4201_v20, 6 }
 0x14e   :  { %v207_v22 = vld.sshfl [vmem:[#allocation1] sm:$0xff pattern:$0x73625140] }
 0x14f   :  { %235 = vst [vmem:[#allocation1] ss:$4 sm:$0xff] %v4205_v21 }
 0x156   :  { %v236_v24 = vld.sshfl [vmem:[#allocation1] sm:$0xff pattern:$0x73625140] }
 0x157   :  { %263 = vst [vmem:[#allocation1] ss:$4 sm:$0xff] %v4209_v23  ;;  %237 = vrot.lane.b32.xlu0 %v236_v24, %s4007_s0 }
 0x15e   :  { %v264_v26 = vld.sshfl [vmem:[#allocation1] sm:$0xff pattern:$0x73625140] }
 0x15f   :  { %291 = vst [vmem:[#allocation1] ss:$4 sm:$0xff] %v4214_v25  ;;  %265 = vrot.lane.b32.xlu0 %v264_v26, %s4007_s0 }
 0x166   :  { %v292_v27 = vld.sshfl [vmem:[#allocation1] sm:$0xff pattern:$0x73625140] }
 0x167   :  { %420 = vst [vmem:[#allocation1] ss:$4 sm:$0xff] %v4201_v20  ;;  %293 = vrot.lane.b32.xlu1 %v292_v27, %s4007_s0 }
 0x16e   :  { %v4220_v28 = vld.sshfl [vmem:[#allocation1] sm:$0xff pattern:$0x73625140] }
 0x16f   :  { %451 = vst [vmem:[#allocation1] ss:$4 sm:$0xff] %v4205_v21  ;;  %208 = vrot.lane.b32.xlu1 %v207_v22, %s4007_s0 }
 0x176   :  { %v452_v29 = vld.sshfl [vmem:[#allocation1] sm:$0xff pattern:$0x73625140] }
 0x177   :  { %480 = vst [vmem:[#allocation1] ss:$4 sm:$0xff] %v4209_v23 }
 0x17e   :  { %v481_v30 = vld.sshfl [vmem:[#allocation1] sm:$0xff pattern:$0x73625140] }
 0x17f   :  { %509 = vst [vmem:[#allocation1] ss:$4 sm:$0xff] %v4214_v25 }
 0x186   :  { %v4226_v31 = vld.sshfl [vmem:[#allocation1] sm:$0xff pattern:$0x73625140] }
 0x187   :  { %538 = vst [vmem:[#allocation1] ss:$4 sm:$0xff] %v4201_v20 }
 0x18e   :  { %v4229_v32 = vld.sshfl [vmem:[#allocation1] sm:$0xff pattern:$0x73625140] }
 0x18f   :  { %542 = vst [vmem:[#allocation1] ss:$4 sm:$0xff] %v4201_v20 }
 0x196   :  { %v543_v33 = vld.sshfl [vmem:[#allocation1] sm:$0xff pattern:$0x73625140] }
 0x197   :  { %570 = vst [vmem:[#allocation1] ss:$4 sm:$0xff] %v4205_v21 }
 0x19e   :  { %v571_v34 = vld.sshfl [vmem:[#allocation1] sm:$0xff pattern:$0x73625140] }
 0x19f   :  { %574 = vst [vmem:[#allocation1] ss:$4 sm:$0xff] %v4205_v21 }
 0x1a6   :  { %v575_v35 = vld.sshfl [vmem:[#allocation1] sm:$0xff pattern:$0x73625140] }
 0x1a7   :  { %602 = vst [vmem:[#allocation1] ss:$4 sm:$0xff] %v4209_v23 }
 0x1ae   :  { %v603_v36 = vld.sshfl [vmem:[#allocation1] sm:$0xff pattern:$0x73625140] }
 0x1af   :  { %606 = vst [vmem:[#allocation1] ss:$4 sm:$0xff] %v4209_v23 }
 0x1b6   :  { %v607_v37 = vld.sshfl [vmem:[#allocation1] sm:$0xff pattern:$0x73625140] }
 0x1b7   :  { %634 = vst [vmem:[#allocation1] ss:$4 sm:$0xff] %v4214_v25 }
 0x1be   :  { %v4237_v38 = vld.sshfl [vmem:[#allocation1] sm:$0xff pattern:$0x73625140] }
 0x1bf   :  { %638 = vst [vmem:[#allocation1] ss:$4 sm:$0xff] %v4214_v25 }
 0x1c6   :  { %v639_v39 = vld.sshfl [vmem:[#allocation1] sm:$0xff pattern:$0x73625140] }
 0x1c7   :  { %766 = vst [vmem:[#allocation1] ss:$4 sm:$0xff] %v4201_v20 }
 0x1c9   :  { %v238_v40 = vpop.permute.xlu0 %237 }
 0x1ca   :  { %3612 = vmatpush.xpose.msk.msra.mxu3 %vm210_vm2, %v238_v40 }
 0x1cd   :  { %3613 = vmatmul.msk.f32.vlgmr.msra.gmra.mxu3 %vm210_vm2, %v4205_v21 }
 0x1ce   :  { %v4244_v41 = vld.sshfl [vmem:[#allocation1] sm:$0xff pattern:$0x73625140] }
 0x1cf   :  { %795 = vst [vmem:[#allocation1] ss:$4 sm:$0xff] %v4205_v21 }
 0x1d1   :  { %v266_v42 = vpop.permute.xlu0 %265 }
 0x1d2   :  { %3614 = vmatpush.xpose.msk.msra.mxu2 %vm210_vm2, %v266_v42 }
 0x1d5   :  { %3615 = vmatmul.msk.f32.vlgmr.msra.gmra.mxu2 %vm210_vm2, %v4209_v23 }
 0x1d6   :  { %v4250_v43 = vld.sshfl [vmem:[#allocation1] sm:$0xff pattern:$0x73625140] }
 0x1d7   :  { %824 = vst [vmem:[#allocation1] ss:$4 sm:$0xff] %v4209_v23 }
 0x1d9   :  { %v294_v44 = vpop.permute.xlu1 %293 }
 0x1da   :  { %3616 = vmatpush.xpose.msk.msrb.mxu3 %vm210_vm2, %v294_v44 }
 0x1dd   :  { %3617 = vmatmul.msk.f32.vlgmr.msrb.gmra.mxu3 %vm210_vm2, %v4214_v25 }
 0x1de   :  { %v4256_v45 = vld.sshfl [vmem:[#allocation1] sm:$0xff pattern:$0x73625140] }
 0x1df   :  { %853 = vst [vmem:[#allocation1] ss:$4 sm:$0xff] %v4214_v25 }
 0x1e1   :  { %v209_v46 = vpop.permute.xlu1 %208 }
 0x1e2   :  { %3610 = vmatpush.xpose.msk.msrb.mxu0 %vm210_vm2, %v209_v46 }
 0x1e5   :  { %3611 = vmatmul.msk.f32.vlgmr.msrb.gmra.mxu0 %vm210_vm2, %v4201_v20 }
 0x250   :  { %v260_v47 = vpop.f32.mrf.mxu3 }
 0x251   :  { %v320_v48 = vmul.f32 0.35355338, %v260_v47 }
 0x253   :  { %v327_v49 = vsel %vm4959_vm3, %v320_v48, -inf }
 0x254   :  { %328 = vmax.xlane.f32.xlu2 %v327_v49 }
 0x258   :  { %v288_v50 = vpop.f32.mrf.mxu2 }
 0x259   :  { %v321_v51 = vmul.f32 0.35355338, %v288_v50 }
 0x25b   :  { %v330_v52 = vsel %vm4959_vm3, %v321_v51, -inf }
 0x25c   :  { %331 = vmax.xlane.f32.xlu2 %v330_v52 }
 0x260   :  { %v316_v53 = vpop.f32.mrf.mxu3 }
 0x261   :  { %v322_v54 = vmul.f32 0.35355338, %v316_v53 }
 0x262   :  { %v232_v55 = vpop.f32.mrf.mxu0 }
 0x263   :  { %v319_v56 = vmul.f32 0.35355338, %v232_v55  ;;  %v333_v57 = vsel %vm4959_vm3, %v322_v54, -inf }
 0x264   :  { %334 = vmax.xlane.f32.xlu1 %v333_v57 }
 0x265   :  { %v324_v58 = vsel %vm4959_vm3, %v319_v56, -inf }
 0x266   :  { %325 = vmax.xlane.f32.xlu0 %v324_v58 }
 0x274   :  { %453 = vrot.lane.b32.xlu2 %v452_v29, %s4008_s5 }
 0x27a   :  { %482 = vrot.lane.b32.xlu0 %v481_v30, %s4008_s5 }
 0x27c   :  { %608 = vrot.lane.b32.xlu2 %v607_v37, %s4009_s9 }
 0x27d   :  { %576 = vrot.lane.b32.xlu1 %v575_v35, %s4009_s9 }
 0x282   :  { %572 = vrot.lane.b32.xlu0 %v571_v34, %s4010_s13 }
 0x284   :  { %604 = vrot.lane.b32.xlu2 %v603_v36, %s4010_s13 }
 0x285   :  { %422 = vrot.lane.b32.xlu1 %v4220_v28, %s4008_s5 }
 0x28a   :  { %511 = vrot.lane.b32.xlu0 %v4226_v31, %s4008_s5 }
 0x28c   :  { %544 = vrot.lane.b32.xlu2 %v543_v33, %s4009_s9 }
 0x28d   :  { %640 = vrot.lane.b32.xlu1 %v639_v39, %s4009_s9 }
 0x292   :  { %540 = vrot.lane.b32.xlu0 %v4229_v32, %s4010_s13 }
 0x2c7   :  { %v329_v59 = vpop.xlane.xlu2 %328 }
 0x2c8   :  { %v337_v0 = vsub.f32 %v320_v48, %v329_v59 }
 0x2ca   :  { %v342_v2 = vmul.f32 1.442695, %v337_v0 }
 0x2cf   :  { %v332_v60 = vpop.xlane.xlu2 %331 }
 0x2d0   :  { %v338_v4 = vsub.f32 %v321_v51, %v332_v60 }
 0x2d2   :  { %v344_v8 = vmul.f32 1.442695, %v338_v4 }
 0x2d7   :  { %v454_v61 = vpop.permute.xlu2 %453  ;;  %v335_v7 = vpop.xlane.xlu1 %334 }
 0x2d8   :  { %3620 = vmatpush.msk.msrb.mxu2 %vm428_vm4, %v454_v61  ;;  %v339_v10 = vsub.f32 %v322_v54, %v335_v7 }
 0x2d9   :  { %v326_v62 = vpop.xlane.xlu0 %325 }
 0x2da   :  { %v336_v63 = vsub.f32 %v319_v56, %v326_v62  ;;  %v346_v15 = vmul.f32 1.442695, %v339_v10 }
 0x2dc   :  { %v340_v1 = vmul.f32 1.442695, %v336_v63 }
 0x2de   :  { %3813 = vpow2.f32 %v340_v1 }
 0x2df   :  { %3815 = vpow2.f32 %v342_v2  ;;  %v609_v5 = vpop.permute.xlu2 %608 }
 0x2e0   :  { %3817 = vpow2.f32 %v344_v8 }
 0x2e1   :  { %3819 = vpow2.f32 %v346_v15 }
 0x2e4   :  { %v3814_v3 = vpop.eup %3813 }
 0x2e5   :  { %v348_v6 = vsel %vm4959_vm3, %v3814_v3, 0.0  ;;  %v4282_v9 = vpop.eup %3815 }
 0x2e6   :  { %349 = vadd.xlane.f32.xlu2 %v348_v6  ;;  %v351_v12 = vsel %vm4959_vm3, %v4282_v9, 0.0  ;;  %v4291_v16 = vpop.eup %3817 }
 0x2e7   :  { %v4287_v13 = vpop.permute.xlu2 %604  ;;  %v354_v19 = vsel %vm4959_vm3, %v4291_v16, 0.0  ;;  %v4299_v26 = vpop.eup %3819 }
 0x2e8   :  { %v357_v28 = vsel %vm4959_vm3, %v4299_v26, 0.0 }
 0x2ec   :  { %v483_v11 = vpop.permute.xlu0 %482 }
 0x2ed   :  { %3622 = vmatpush.msk.msra.mxu3 %vm428_vm4, %v483_v11 }
 0x2ee   :  { %352 = vadd.xlane.f32.xlu2 %v351_v12 }
 0x2ef   :  { %3630 = vmatpush.xpose.msk.msrb.mxu3 %vm210_vm2, %v609_v5  ;;  %v577_v14 = vpop.permute.xlu1 %576  ;;  %v545_v24 = vpop.permute.xlu2 %544 }
 0x2f0   :  { %3628 = vmatpush.xpose.msk.msra.mxu2 %vm210_vm2, %v577_v14 }
 0x2f4   :  { %v4293_v18 = vpop.permute.xlu0 %572 }
 0x2f6   :  { %355 = vadd.xlane.f32.xlu2 %v354_v19 }
 0x2f7   :  { %v423_v22 = vpop.permute.xlu1 %422 }
 0x2f8   :  { %3618 = vmatpush.msk.msrb.mxu1 %vm428_vm4, %v423_v22 }
 0x2fa   :  { %3626 = vmatpush.xpose.msk.msra.mxu1 %vm210_vm2, %v545_v24 }
 0x2fc   :  { %v512_v27 = vpop.permute.xlu0 %511 }
 0x2fd   :  { %3624 = vmatpush.msk.msra.mxu0 %vm428_vm4, %v512_v27 }
 0x2fe   :  { %358 = vadd.xlane.f32.xlu2 %v357_v28 }
 0x2ff   :  { %v641_v29 = vpop.permute.xlu1 %640 }
 0x300   :  { %3632 = vmatpush.xpose.msk.msrb.mxu0 %vm210_vm2, %v641_v29 }
 0x304   :  { %v541_v63 = vpop.permute.xlu0 %540 }
 0x316   :  { %636 = vrot.lane.b32.xlu2 %v4237_v38, %s4010_s13 }
 0x359   :  { %v350_v30 = vpop.xlane.xlu2 %349 }
 0x35a   :  { %3821 = vrcp.f32 %v350_v30  ;;  %v371_v36 = vand.u32 2147483648, %v350_v30  ;;  %v369_v37 = vand.u32 2147483647, %v350_v30  ;;  %vm365_vm6 = vweird.f32 %v350_v30 }
 0x35c   :  { %v372_v42 = vor.u32 1.1754944e-38, %v371_v36  ;;  %vm370_vm8 = vcmp.eq.f32.partialorder %v369_v37, 8.507059e+37 }
 0x360   :  { %v3822_v31 = vpop.eup %3821 }
 0x361   :  { %v361_v32 = vmul.f32 %v3822_v31, %v350_v30  ;;  %v353_v33 = vpop.xlane.xlu2 %352  ;;  %vm366_vm5 = vweird.f32 %v3822_v31 }
 0x362   :  { %3823 = vrcp.f32 %v353_v33  ;;  %vm367_vm7 = vmor %vm365_vm6, %vm366_vm5  ;;  %v386_v51 = vand.u32 2147483648, %v353_v33  ;;  %v384_v52 = vand.u32 2147483647, %v353_v33  ;;  %vm380_vm11 = vweird.f32 %v353_v33 }
 0x363   :  { %v362_v34 = vsub.f32 1.0, %v361_v32 }
 0x364   :  { %v387_v55 = vor.u32 1.1754944e-38, %v386_v51  ;;  %vm385_vm13 = vcmp.eq.f32.partialorder %v384_v52, 8.507059e+37 }
 0x365   :  { %v363_v35 = vmul.f32 %v3822_v31, %v362_v34 }
 0x367   :  { %v364_v39 = vadd.f32 %v3822_v31, %v363_v35 }
 0x368   :  { %v3824_v40 = vpop.eup %3823 }
 0x369   :  { %v376_v44 = vmul.f32 %v3824_v40, %v353_v33  ;;  %v356_v46 = vpop.xlane.xlu2 %355  ;;  %v368_v47 = vsel %vm367_vm7, %v3822_v31, %v364_v39  ;;  %vm381_vm10 = vweird.f32 %v3824_v40 }
 0x36a   :  { %3825 = vrcp.f32 %v356_v46  ;;  %v373_v48 = vsel %vm370_vm8, %v372_v42, %v368_v47  ;;  %vm382_vm12 = vmor %vm380_vm11, %vm381_vm10  ;;  %v401_v61 = vand.u32 2147483648, %v356_v46  ;;  %v399_v1 = vand.u32 2147483647, %v356_v46 }
 0x36b   :  { %v377_v38 = vsub.f32 1.0, %v376_v44  ;;  %v374_v49 = vmul.f32 %v3814_v3, %v373_v48  ;;  %vm395_vm15 = vweird.f32 %v356_v46 }
 0x36c   :  { %v402_v4 = vor.u32 1.1754944e-38, %v401_v61  ;;  %vm400_vm6 = vcmp.eq.f32.partialorder %v399_v1, 8.507059e+37 }
 0x36d   :  { %v378_v50 = vmul.f32 %v3824_v40, %v377_v38  ;;  %3619 = vmatmul.msk.f32.vlgmr.msrb.gmra.mxu1 %vm424_vm9, %v374_v49 }
 0x36f   :  { %v379_v53 = vadd.f32 %v3824_v40, %v378_v50 }
 0x370   :  { %v3826_v54 = vpop.eup %3825 }
 0x371   :  { %v391_v56 = vmul.f32 %v3826_v54, %v356_v46  ;;  %v359_v57 = vpop.xlane.xlu2 %358  ;;  %v383_v58 = vsel %vm382_vm12, %v3824_v40, %v379_v53  ;;  %vm396_vm14 = vweird.f32 %v3826_v54 }
 0x372   :  { %3827 = vrcp.f32 %v359_v57  ;;  %v388_v60 = vsel %vm385_vm13, %v387_v55, %v383_v58  ;;  %vm397_vm5 = vmor %vm395_vm15, %vm396_vm14  ;;  %v416_v10 = vand.u32 2147483648, %v359_v57  ;;  %v414_v12 = vand.u32 2147483647, %v359_v57 }
 0x373   :  { %v392_v59 = vsub.f32 1.0, %v391_v56  ;;  %v389_v62 = vmul.f32 %v4282_v9, %v388_v60  ;;  %vm410_vm8 = vweird.f32 %v359_v57 }
 0x374   :  { %v417_v15 = vor.u32 1.1754944e-38, %v416_v10  ;;  %vm415_vm11 = vcmp.eq.f32.partialorder %v414_v12, 8.507059e+37 }
 0x375   :  { %v393_v0 = vmul.f32 %v3826_v54, %v392_v59  ;;  %3621 = vmatmul.msk.f32.vlgmr.msrb.gmra.mxu2 %vm424_vm9, %v389_v62  ;;  %3627 = vmatmul.msk.f32.vlgmr.msra.gmra.mxu1 %vm210_vm2, %v541_v63  ;;  %v854_v63 = vld.sshfl [vmem:[#allocation1] sm:$0xff pattern:$0x73625140] }
 0x377   :  { %v394_v2 = vadd.f32 %v3826_v54, %v393_v0 }
 0x378   :  { %v3828_v3 = vpop.eup %3827 }
 0x379   :  { %v398_v5 = vsel %vm397_vm5, %v3826_v54, %v394_v2  ;;  %v406_v6 = vmul.f32 %v3828_v3, %v359_v57  ;;  %vm411_vm7 = vweird.f32 %v3828_v3 }
 0x37a   :  { %v403_v7 = vsel %vm400_vm6, %v402_v4, %v398_v5  ;;  %vm412_vm10 = vmor %vm410_vm8, %vm411_vm7 }
 0x37b   :  { %v407_v8 = vsub.f32 1.0, %v406_v6  ;;  %v404_v9 = vmul.f32 %v4291_v16, %v403_v7  ;;  %v637_v16 = vpop.permute.xlu2 %636 }
 0x37d   :  { %v408_v11 = vmul.f32 %v3828_v3, %v407_v8  ;;  %3623 = vmatmul.msk.f32.vlgmr.msra.gmra.mxu3 %vm424_vm9, %v404_v9  ;;  %3629 = vmatmul.msk.f32.vlgmr.msra.gmra.mxu2 %vm210_vm2, %v4293_v18 }
 0x37f   :  { %v409_v14 = vadd.f32 %v3828_v3, %v408_v11 }
 0x381   :  { %v413_v19 = vsel %vm412_vm10, %v3828_v3, %v409_v14 }
 0x382   :  { %v418_v22 = vsel %vm415_vm11, %v417_v15, %v413_v19 }
 0x383   :  { %v419_v24 = vmul.f32 %v4299_v26, %v418_v22 }
 0x385   :  { %3625 = vmatmul.msk.f32.vlgmr.msra.gmra.mxu0 %vm424_vm9, %v419_v24  ;;  %3631 = vmatmul.msk.f32.vlgmr.msrb.gmra.mxu3 %vm210_vm2, %v4287_v13 }
 0x38d   :  { %3633 = vmatmul.msk.f32.vlgmr.msrb.gmra.mxu0 %vm210_vm2, %v637_v16 }
 0x3ea   :  { %v4320_v27 = vpop.f32.mrf.mxu1 }
 0x3f2   :  { %v567_v18 = vpop.f32.mrf.mxu1 }
 0x3f3   :  { %v666_v28 = vmul.f32 0.35355338, %v567_v18 }
 0x3f5   :  { %v670_v29 = vsel %vm4959_vm3, %v666_v28, -inf }
 0x3f6   :  { %671 = vmax.xlane.f32.xlu2 %v670_v29 }
 0x3f8   :  { %v4323_v30 = vpop.f32.mrf.mxu2 }
 0x400   :  { %v4325_v31 = vpop.f32.mrf.mxu3  ;;  %v599_v26 = vpop.f32.mrf.mxu2 }
 0x401   :  { %v667_v32 = vmul.f32 0.35355338, %v599_v26 }
 0x402   :  { %v4327_v33 = vpop.f32.mrf.mxu0 }
 0x403   :  { %v673_v13 = vsel %vm4959_vm3, %v667_v32, -inf }
 0x404   :  { %674 = vmax.xlane.f32.xlu1 %v673_v13 }
 0x408   :  { %v631_v34 = vpop.f32.mrf.mxu3 }
 0x409   :  { %v668_v35 = vmul.f32 0.35355338, %v631_v34 }
 0x40a   :  { %v663_v36 = vpop.f32.mrf.mxu0 }
 0x40b   :  { %v669_v37 = vmul.f32 0.35355338, %v663_v36  ;;  %v676_v39 = vsel %vm4959_vm3, %v668_v35, -inf }
 0x40c   :  { %677 = vmax.xlane.f32.xlu0 %v676_v39 }
 0x40d   :  { %v679_v40 = vsel %vm4959_vm3, %v669_v37, -inf }
 0x40e   :  { %680 = vmax.xlane.f32.xlu1 %v679_v40  ;;  %797 = vrot.lane.b32.xlu2 %v4250_v43, %s4011_s17 }
 0x469   :  { %v672_v42 = vpop.xlane.xlu2 %671 }
 0x46a   :  { %v682_v44 = vsub.f32 %v666_v28, %v672_v42 }
 0x46c   :  { %v686_v46 = vmul.f32 1.442695, %v682_v44 }
 0x46e   :  { %3829 = vpow2.f32 %v686_v46 }
 0x471   :  { %v798_v47 = vpop.permute.xlu2 %797 }
 0x472   :  { %3636 = vmatpush.msk.msrb.mxu2 %vm428_vm4, %v798_v47 }
 0x474   :  { %v4335_v38 = vpop.eup %3829 }
 0x475   :  { %v694_v48 = vsel %vm4959_vm3, %v4335_v38, 0.0 }
 0x476   :  { %695 = vadd.xlane.f32.xlu1 %v694_v48 }
 0x477   :  { %v675_v49 = vpop.xlane.xlu1 %674 }
 0x478   :  { %v683_v50 = vsub.f32 %v667_v32, %v675_v49 }
 0x47a   :  { %v688_v51 = vmul.f32 1.442695, %v683_v50 }
 0x47c   :  { %3831 = vpow2.f32 %v688_v51 }
 0x47f   :  { %v678_v52 = vpop.xlane.xlu0 %677 }
 0x480   :  { %v684_v53 = vsub.f32 %v668_v35, %v678_v52 }
 0x481   :  { %v681_v43 = vpop.xlane.xlu1 %680 }
 0x482   :  { %v690_v54 = vmul.f32 1.442695, %v684_v53  ;;  %v685_v55 = vsub.f32 %v669_v37, %v681_v43  ;;  %v3832_v56 = vpop.eup %3831 }
 0x483   :  { %v697_v58 = vsel %vm4959_vm3, %v3832_v56, 0.0 }
 0x484   :  { %3833 = vpow2.f32 %v690_v54  ;;  %v692_v57 = vmul.f32 1.442695, %v685_v55  ;;  %698 = vadd.xlane.f32.xlu0 %v697_v58 }
 0x486   :  { %3835 = vpow2.f32 %v692_v57 }
 0x48a   :  { %v4340_v59 = vpop.eup %3833 }
 0x48b   :  { %v700_v60 = vsel %vm4959_vm3, %v4340_v59, 0.0 }
 0x48c   :  { %v4344_v61 = vpop.eup %3835  ;;  %701 = vadd.xlane.f32.xlu2 %v700_v60 }
 0x48d   :  { %v703_v62 = vsel %vm4959_vm3, %v4344_v61, 0.0 }
 0x48e   :  { %704 = vadd.xlane.f32.xlu0 %v703_v62 }
 0x48f   :  { %826 = vrot.lane.b32.xlu1 %v4256_v45, %s4011_s17 }
 0x4a2   :  { %768 = vrot.lane.b32.xlu0 %v4244_v41, %s4011_s17 }
 0x4a4   :  { %855 = vrot.lane.b32.xlu2 %v854_v63, %s4011_s17 }
 0x4e9   :  { %v696_v0 = vpop.xlane.xlu1 %695 }
 0x4ea   :  { %3837 = vrcp.f32 %v696_v0  ;;  %v717_v28 = vand.u32 2147483648, %v696_v0  ;;  %vm711_vm7 = vweird.f32 %v696_v0  ;;  %v715_v40 = vand.u32 2147483647, %v696_v0 }
 0x4ec   :  { %v718_v50 = vor.u32 1.1754944e-38, %v717_v28 }
 0x4f0   :  { %v4353_v2 = vpop.eup %3837 }
 0x4f1   :  { %v707_v3 = vmul.f32 %v4353_v2, %v696_v0  ;;  %vm712_vm5 = vweird.f32 %v4353_v2  ;;  %v199_v0 = vld [vmem:[%s4058_s29 + $0x8] sm:$0xff] }
 0x4f2   :  { %vm4362_vm10 = vmor %vm711_vm7, %vm712_vm5 }
 0x4f3   :  { %v708_v45 = vsub.f32 1.0, %v707_v3 }
 0x4f5   :  { %v709_v14 = vmul.f32 %v4353_v2, %v708_v45 }
 0x4f7   :  { %v699_v1 = vpop.xlane.xlu0 %698  ;;  %v710_v13 = vadd.f32 %v4353_v2, %v709_v14 }
 0x4f8   :  { %3839 = vrcp.f32 %v699_v1  ;;  %v732_v9 = vand.u32 2147483648, %v699_v1  ;;  %v730_v11 = vand.u32 2147483647, %v699_v1  ;;  %vm726_vm13 = vweird.f32 %v699_v1 }
 0x4f9   :  { %v714_v49 = vsel %vm4362_vm10, %v4353_v2, %v710_v13 }
 0x4fa   :  { %v733_v19 = vor.u32 1.1754944e-38, %v732_v9  ;;  %vm731_vm15 = vcmp.eq.f32.partialorder %v730_v11, 8.507059e+37 }
 0x4fe   :  { %v3840_v4 = vpop.eup %3839 }
 0x4ff   :  { %v702_v5 = vpop.xlane.xlu2 %701  ;;  %v722_v6 = vmul.f32 %v3840_v4, %v699_v1  ;;  %vm727_vm12 = vweird.f32 %v3840_v4  ;;  %v198_v1 = vld [vmem:[%s4058_s29] sm:$0xff] }
 0x500   :  { %3841 = vrcp.f32 %v702_v5  ;;  %vm728_vm14 = vmor %vm726_vm13, %vm727_vm12  ;;  %v747_v34 = vand.u32 2147483648, %v702_v5  ;;  %v745_v37 = vand.u32 2147483647, %v702_v5  ;;  %vm741_vm8 = vweird.f32 %v702_v5  ;;  %945 = vmatpush.msra.mxu2 %v198_v1 }
 0x501   :  { %v705_v7 = vpop.xlane.xlu0 %704  ;;  %v723_v8 = vsub.f32 1.0, %v722_v6  ;;  %v827_v41 = vpop.permute.xlu1 %826 }
 0x502   :  { %3843 = vrcp.f32 %v705_v7  ;;  %3638 = vmatpush.msk.msra.mxu3 %vm428_vm4, %v827_v41  ;;  %v762_v42 = vand.u32 2147483648, %v705_v7  ;;  %v760_v48 = vand.u32 2147483647, %v705_v7  ;;  %v748_v51 = vor.u32 1.1754944e-38, %v747_v34 }
 0x503   :  { %v724_v10 = vmul.f32 %v3840_v4, %v723_v8  ;;  %vm746_vm13 = vcmp.eq.f32.partialorder %v745_v37, 8.507059e+37 }
 0x504   :  { %v763_v54 = vor.u32 1.1754944e-38, %v762_v42  ;;  %vm761_vm7 = vcmp.eq.f32.partialorder %v760_v48, 8.507059e+37 }
 0x505   :  { %v725_v15 = vadd.f32 %v3840_v4, %v724_v10 }
 0x506   :  { %v3842_v12 = vpop.eup %3841 }
 0x507   :  { %v737_v22 = vmul.f32 %v3842_v12, %v702_v5  ;;  %v856_v24 = vpop.permute.xlu2 %855  ;;  %v729_v18 = vsel %vm728_vm14, %v3840_v4, %v725_v15  ;;  %vm742_vm6 = vweird.f32 %v3842_v12  ;;  %vm756_vm14 = vweird.f32 %v705_v7 }
 0x508   :  { %v3844_v16 = vpop.eup %3843  ;;  %3640 = vmatpush.msk.msra.mxu0 %vm428_vm4, %v856_v24  ;;  %v734_v29 = vsel %vm731_vm15, %v733_v19, %v729_v18  ;;  %vm743_vm12 = vmor %vm741_vm8, %vm742_vm6  ;;  %vm716_vm15 = vcmp.eq.f32.partialorder %v715_v40, 8.507059e+37 }
 0x509   :  { %v738_v26 = vsub.f32 1.0, %v737_v22  ;;  %v752_v32 = vmul.f32 %v3844_v16, %v705_v7  ;;  %v735_v35 = vmul.f32 %v3832_v56, %v734_v29  ;;  %vm757_vm11 = vweird.f32 %v3844_v16 }
 0x50a   :  { %vm758_vm5 = vmor %vm756_vm14, %vm757_vm11  ;;  %v719_v55 = vsel %vm716_vm15, %v718_v50, %v714_v49 }
 0x50b   :  { %v739_v36 = vmul.f32 %v3842_v12, %v738_v26  ;;  %v753_v39 = vsub.f32 1.0, %v752_v32  ;;  %3637 = vmatmul.msk.f32.vlgmr.msrb.gmra.mxu2 %vm424_vm9, %v735_v35  ;;  %v720_v63 = vmul.f32 %v4335_v38, %v719_v55 }
 0x50d   :  { %v740_v46 = vadd.f32 %v3842_v12, %v739_v36  ;;  %v754_v47 = vmul.f32 %v3844_v16, %v753_v39 }
 0x50f   :  { %v744_v52 = vsel %vm743_vm12, %v3842_v12, %v740_v46  ;;  %v755_v53 = vadd.f32 %v3844_v16, %v754_v47 }
 0x510   :  { %v749_v43 = vsel %vm746_vm13, %v748_v51, %v744_v52 }
 0x511   :  { %v759_v56 = vsel %vm758_vm5, %v3844_v16, %v755_v53  ;;  %v750_v57 = vmul.f32 %v4340_v59, %v749_v43 }
 0x512   :  { %v764_v58 = vsel %vm761_vm7, %v763_v54, %v759_v56 }
 0x513   :  { %3639 = vmatmul.msk.f32.vlgmr.msra.gmra.mxu3 %vm424_vm9, %v750_v57  ;;  %v765_v60 = vmul.f32 %v4344_v61, %v764_v58 }
 0x514   :  { %v769_v62 = vpop.permute.xlu0 %768 }
 0x515   :  { %3634 = vmatpush.msk.msrb.mxu1 %vm428_vm4, %v769_v62  ;;  %3641 = vmatmul.msk.f32.vlgmr.msra.gmra.mxu0 %vm424_vm9, %v765_v60 }
 0x516   :  { %3635 = vmatmul.msk.f32.vlgmr.msrb.gmra.mxu1 %vm424_vm9, %v720_v63 }
 0x517   :  { %911 = vmatpush.msra.mxu1 %v199_v0 }
 0x58e   :  { %v821_v2 = vpop.f32.mrf.mxu2 }
 0x58f   :  { %888 = vst [vmem:[#allocation1 + $0x1] ss:$4 sm:$0xff] %v821_v2 }
 0x592   :  { %v879_v59 = vpop.f32.mrf.mxu0 }
 0x593   :  { %892 = vst [vmem:[#allocation1 + $0x3] ss:$4 sm:$0xff] %v879_v59  ;;  %v792_v3 = vpop.f32.mrf.mxu1 }
 0x594   :  { %886 = vst [vmem:[#allocation1] ss:$4 sm:$0xff] %v792_v3 }
 0x596   :  { %v850_v61 = vpop.f32.mrf.mxu3 }
 0x597   :  { %890 = vst [vmem:[#allocation1 + $0x2] ss:$4 sm:$0xff] %v850_v61 }
 0x59e   :  { %v893_v4 = vld.sshfl [vmem:[#allocation1] sm:$0xff pattern:$0x73625140] }
 0x59f   :  { %920 = vst [vmem:[#allocation1] ss:$4 sm:$0xff] %v4320_v27  ;;  %3642 = vmatmul.msk.f32.vlgmr.msra.gmra.mxu1 %vm210_vm2, %v893_v4 }
 0x5a0   :  { %922 = vst [vmem:[#allocation1 + $0x1] ss:$4 sm:$0xff] %v4323_v30 }
 0x5a1   :  { %924 = vst [vmem:[#allocation1 + $0x2] ss:$4 sm:$0xff] %v4325_v31 }
 0x5a2   :  { %926 = vst [vmem:[#allocation1 + $0x3] ss:$4 sm:$0xff] %v4327_v33 }
 0x5a9   :  { %v927_v38 = vld.sshfl [vmem:[#allocation1] sm:$0xff pattern:$0x73625140] }
 0x5aa   :  { %950 = vst [vmem:[#allocation1] ss:$4 sm:$0xff] %v4201_v20  ;;  %3643 = vmatmul.msk.f32.vlgmr.msra.gmra.mxu2 %vm210_vm2, %v927_v38 }
 0x5b1   :  { %v951_v5 = vld.sshfl [vmem:[#allocation1] sm:$0xff pattern:$0x73625140] }
 0x5b2   :  { %954 = vst [vmem:[#allocation1] ss:$4 sm:$0xff] %v4201_v20  ;;  %952 = vrot.lane.b32.xlu2 %v951_v5, %s4012_s21 }
 0x5b9   :  { %v955_v27 = vld.sshfl [vmem:[#allocation1] sm:$0xff pattern:$0x73625140] }
 0x5ba   :  { %982 = vst [vmem:[#allocation1] ss:$4 sm:$0xff] %v4205_v21  ;;  %956 = vrot.lane.b32.xlu0 %v955_v27, %s4013_s25 }
 0x5c1   :  { %v983_v30 = vld.sshfl [vmem:[#allocation1] sm:$0xff pattern:$0x73625140] }
 0x5c2   :  { %986 = vst [vmem:[#allocation1] ss:$4 sm:$0xff] %v4205_v21 }
 0x5c9   :  { %v987_v31 = vld.sshfl [vmem:[#allocation1] sm:$0xff pattern:$0x73625140] }
 0x5ca   :  { %1014 = vst [vmem:[#allocation1] ss:$4 sm:$0xff] %v4209_v23 }
 0x5d1   :  { %v1015_v33 = vld.sshfl [vmem:[#allocation1] sm:$0xff pattern:$0x73625140] }
 0x5d2   :  { %1018 = vst [vmem:[#allocation1] ss:$4 sm:$0xff] %v4209_v23 }
 0x5d9   :  { %v1019_v6 = vld.sshfl [vmem:[#allocation1] sm:$0xff pattern:$0x73625140] }
 0x5da   :  { %1046 = vst [vmem:[#allocation1] ss:$4 sm:$0xff] %v4214_v25  ;;  %1020 = vrot.lane.b32.xlu2 %v1019_v6, %s4013_s25 }
 0x5e1   :  { %v1047_v7 = vld.sshfl [vmem:[#allocation1] sm:$0xff pattern:$0x73625140] }
 0x5e2   :  { %1050 = vst [vmem:[#allocation1] ss:$4 sm:$0xff] %v4214_v25  ;;  %1048 = vrot.lane.b32.xlu0 %v1047_v7, %s4012_s21 }
 0x5e9   :  { %v1051_v45 = vld.sshfl [vmem:[#allocation1] sm:$0xff pattern:$0x73625140] }
 0x5ea   :  { %1178 = vst [vmem:[#allocation1] ss:$4 sm:$0xff] %v4201_v20  ;;  %984 = vrot.lane.b32.xlu0 %v983_v30, %s4012_s21  ;;  %1052 = vrot.lane.b32.xlu1 %v1051_v45, %s4013_s25 }
 0x5f1   :  { %v1179_v8 = vld.sshfl [vmem:[#allocation1] sm:$0xff pattern:$0x73625140] }
 0x5f2   :  { %1207 = vst [vmem:[#allocation1] ss:$4 sm:$0xff] %v4205_v21  ;;  %988 = vrot.lane.b32.xlu1 %v987_v31, %s4013_s25 }
 0x5f9   :  { %v4402_v41 = vld.sshfl [vmem:[#allocation1] sm:$0xff pattern:$0x73625140] }
 0x5fa   :  { %1236 = vst [vmem:[#allocation1] ss:$4 sm:$0xff] %v4209_v23  ;;  %1016 = vrot.lane.b32.xlu1 %v1015_v33, %s4012_s21 }
 0x601   :  { %v4406_v9 = vld.sshfl [vmem:[#allocation1] sm:$0xff pattern:$0x73625140] }
 0x602   :  { %1265 = vst [vmem:[#allocation1] ss:$4 sm:$0xff] %v4214_v25 }
 0x609   :  { %v1266_v59 = vld.sshfl [vmem:[#allocation1] sm:$0xff pattern:$0x73625140] }
 0x60c   :  { %v953_v10 = vpop.permute.xlu2 %952 }
 0x61c   :  { %v4420_v26 = vpop.f32.mrf.mxu1 }
 0x62c   :  { %v957_v11 = vpop.permute.xlu0 %956 }
 0x62d   :  { %3644 = vmatpush.xpose.msk.msrb.mxu3 %vm210_vm2, %v957_v11  ;;  %v4418_v29 = vpop.f32.mrf.mxu2 }
 0x630   :  { %3645 = vmatmul.msk.f32.vlgmr.msrb.gmra.mxu3 %vm210_vm2, %v953_v10 }
 0x634   :  { %v1021_v12 = vpop.permute.xlu2 %1020 }
 0x635   :  { %3648 = vmatpush.xpose.msk.msrb.mxu1 %vm210_vm2, %v1021_v12 }
 0x654   :  { %v1049_v15 = vpop.permute.xlu0 %1048 }
 0x65c   :  { %v1053_v14 = vpop.permute.xlu1 %1052  ;;  %v985_v22 = vpop.permute.xlu0 %984 }
 0x65d   :  { %3650 = vmatpush.xpose.msk.msrb.mxu2 %vm210_vm2, %v1053_v14 }
 0x660   :  { %3651 = vmatmul.msk.f32.vlgmr.msrb.gmra.mxu2 %vm210_vm2, %v1049_v15 }
 0x664   :  { %v989_v19 = vpop.permute.xlu1 %988 }
 0x665   :  { %3646 = vmatpush.xpose.msk.msrb.mxu0 %vm210_vm2, %v989_v19 }
 0x668   :  { %3647 = vmatmul.msk.f32.vlgmr.msrb.gmra.mxu0 %vm210_vm2, %v985_v22 }
 0x66c   :  { %v1017_v24 = vpop.permute.xlu1 %1016 }
 0x66d   :  { %3649 = vmatmul.msk.f32.vlgmr.msrb.gmra.mxu1 %vm210_vm2, %v1017_v24 }
 0x6b3   :  { %v979_v16 = vpop.f32.mrf.mxu3 }
 0x6b4   :  { %v1078_v18 = vmul.f32 0.35355338, %v979_v16 }
 0x6b6   :  { %v1082_v28 = vsel %vm4959_vm3, %v1078_v18, -inf }
 0x6b7   :  { %1083 = vmax.xlane.f32.xlu2 %v1082_v28 }
 0x6e3   :  { %v1075_v32 = vpop.f32.mrf.mxu2 }
 0x6e4   :  { %v1081_v13 = vmul.f32 0.35355338, %v1075_v32 }
 0x6e5   :  { %v1011_v34 = vpop.f32.mrf.mxu0 }
 0x6e6   :  { %v1079_v35 = vmul.f32 0.35355338, %v1011_v34  ;;  %v1091_v36 = vsel %vm4959_vm3, %v1081_v13, -inf }
 0x6e7   :  { %1092 = vmax.xlane.f32.xlu0 %v1091_v36 }
 0x6e8   :  { %v1085_v37 = vsel %vm4959_vm3, %v1079_v35, -inf }
 0x6e9   :  { %1086 = vmax.xlane.f32.xlu1 %v1085_v37 }
 0x6ea   :  { %v1043_v39 = vpop.f32.mrf.mxu1 }
 0x6eb   :  { %v1080_v40 = vmul.f32 0.35355338, %v1043_v39 }
 0x6ed   :  { %v1088_v42 = vsel %vm4959_vm3, %v1080_v40, -inf }
 0x6ee   :  { %1089 = vmax.xlane.f32.xlu2 %v1088_v42 }
 0x702   :  { %1180 = vrot.lane.b32.xlu1 %v1179_v8, %s4014_s15 }
 0x72a   :  { %v1084_v44 = vpop.xlane.xlu2 %1083 }
 0x72b   :  { %v1094_v46 = vsub.f32 %v1078_v18, %v1084_v44 }
 0x72d   :  { %v1098_v47 = vmul.f32 1.442695, %v1094_v46 }
 0x72f   :  { %3845 = vpow2.f32 %v1098_v47 }
 0x735   :  { %v3846_v48 = vpop.eup %3845 }
 0x736   :  { %v1106_v49 = vsel %vm4959_vm3, %v3846_v48, 0.0 }
 0x737   :  { %1107 = vadd.xlane.f32.xlu0 %v1106_v49 }
 0x75a   :  { %v1093_v50 = vpop.xlane.xlu0 %1092 }
 0x75b   :  { %v1097_v51 = vsub.f32 %v1081_v13, %v1093_v50 }
 0x75c   :  { %v1087_v52 = vpop.xlane.xlu1 %1086 }
 0x75d   :  { %v1104_v53 = vmul.f32 1.442695, %v1097_v51  ;;  %v1095_v43 = vsub.f32 %v1079_v35, %v1087_v52 }
 0x75f   :  { %3847 = vpow2.f32 %v1104_v53  ;;  %v1100_v54 = vmul.f32 1.442695, %v1095_v43 }
 0x761   :  { %3849 = vpow2.f32 %v1100_v54  ;;  %v1090_v55 = vpop.xlane.xlu2 %1089 }
 0x762   :  { %v1096_v56 = vsub.f32 %v1080_v40, %v1090_v55 }
 0x764   :  { %v1102_v57 = vmul.f32 1.442695, %v1096_v56 }
 0x765   :  { %v4427_v58 = vpop.eup %3847 }
 0x766   :  { %3851 = vpow2.f32 %v1102_v57  ;;  %v1115_v60 = vsel %vm4959_vm3, %v4427_v58, 0.0 }
 0x767   :  { %v4431_v62 = vpop.eup %3849  ;;  %1116 = vadd.xlane.f32.xlu1 %v1115_v60 }
 0x768   :  { %v1109_v63 = vsel %vm4959_vm3, %v4431_v62, 0.0 }
 0x769   :  { %1110 = vadd.xlane.f32.xlu2 %v1109_v63 }
 0x76c   :  { %v4435_v0 = vpop.eup %3851 }
 0x76d   :  { %v1112_v1 = vsel %vm4959_vm3, %v4435_v0, 0.0 }
 0x76e   :  { %1113 = vadd.xlane.f32.xlu0 %v1112_v1  ;;  %v200_v1 = vld [vmem:[%s4058_s29 + $0x10] sm:$0xff] }
 0x774   :  { %v1181_v2 = vpop.permute.xlu1 %1180 }
 0x775   :  { %3652 = vmatpush.msk.msra.mxu3 %vm428_vm4, %v1181_v2 }
 0x777   :  { %1323 = vmatpush.msrb.mxu3 %v200_v1 }
 0x780   :  { %1238 = vrot.lane.b32.xlu1 %v4406_v9, %s4014_s15 }
 0x781   :  { %1267 = vrot.lane.b32.xlu2 %v1266_v59, %s4014_s15 }
 0x782   :  { %1209 = vrot.lane.b32.xlu0 %v4402_v41, %s4014_s15 }
 0x7aa   :  { %v1108_v3 = vpop.xlane.xlu0 %1107 }
 0x7ab   :  { %3853 = vrcp.f32 %v1108_v3  ;;  %v1129_v5 = vand.u32 2147483648, %v1108_v3  ;;  %v1127_v30 = vand.u32 2147483647, %v1108_v3  ;;  %vm1123_vm8 = vweird.f32 %v1108_v3 }
 0x7ad   :  { %v1130_v33 = vor.u32 1.1754944e-38, %v1129_v5  ;;  %vm1128_vm11 = vcmp.eq.f32.partialorder %v1127_v30, 8.507059e+37 }
 0x7b1   :  { %v3854_v61 = vpop.eup %3853 }
 0x7b2   :  { %v1119_v4 = vmul.f32 %v3854_v61, %v1108_v3  ;;  %vm1124_vm6 = vweird.f32 %v3854_v61 }
 0x7b3   :  { %vm1125_vm10 = vmor %vm1123_vm8, %vm1124_vm6 }
 0x7b4   :  { %v1120_v38 = vsub.f32 1.0, %v1119_v4 }
 0x7b6   :  { %v1121_v27 = vmul.f32 %v3854_v61, %v1120_v38 }
 0x7b8   :  { %v1122_v31 = vadd.f32 %v3854_v61, %v1121_v27 }
 0x7ba   :  { %v1126_v6 = vsel %vm1125_vm10, %v3854_v61, %v1122_v31 }
 0x7bb   :  { %v1131_v7 = vsel %vm1128_vm11, %v1130_v33, %v1126_v6 }
 0x7bc   :  { %v1132_v45 = vmul.f32 %v3846_v48, %v1131_v7 }
 0x7be   :  { %3653 = vmatmul.msk.f32.vlgmr.msra.gmra.mxu3 %vm424_vm9, %v1132_v45 }
 0x7da   :  { %v1117_v8 = vpop.xlane.xlu1 %1116 }
 0x7db   :  { %3855 = vrcp.f32 %v1117_v8  ;;  %v1174_v22 = vand.u32 2147483648, %v1117_v8  ;;  %v1172_v16 = vand.u32 2147483647, %v1117_v8  ;;  %vm1168_vm13 = vweird.f32 %v1117_v8 }
 0x7dc   :  { %v1111_v41 = vpop.xlane.xlu2 %1110 }
 0x7dd   :  { %3857 = vrcp.f32 %v1111_v41  ;;  %v1175_v34 = vor.u32 1.1754944e-38, %v1174_v22  ;;  %vm1173_vm15 = vcmp.eq.f32.partialorder %v1172_v16, 8.507059e+37  ;;  %v1144_v40 = vand.u32 2147483648, %v1111_v41 }
 0x7de   :  { %vm1138_vm7 = vweird.f32 %v1111_v41  ;;  %v1142_v44 = vand.u32 2147483647, %v1111_v41 }
 0x7df   :  { %v1145_v51 = vor.u32 1.1754944e-38, %v1144_v40 }
 0x7e0   :  { %vm1143_vm11 = vcmp.eq.f32.partialorder %v1142_v44, 8.507059e+37 }
 0x7e1   :  { %v3856_v9 = vpop.eup %3855  ;;  %v1114_v10 = vpop.xlane.xlu0 %1113 }
 0x7e2   :  { %v1164_v11 = vmul.f32 %v3856_v9, %v1117_v8  ;;  %3859 = vrcp.f32 %v1114_v10  ;;  %vm1169_vm12 = vweird.f32 %v3856_v9  ;;  %v1159_v46 = vand.u32 2147483648, %v1114_v10 }
 0x7e3   :  { %v3858_v12 = vpop.eup %3857  ;;  %vm1170_vm14 = vmor %vm1168_vm13, %vm1169_vm12  ;;  %v1157_v49 = vand.u32 2147483647, %v1114_v10  ;;  %vm1153_vm10 = vweird.f32 %v1114_v10 }
 0x7e4   :  { %v1165_v14 = vsub.f32 1.0, %v1164_v11  ;;  %v1134_v15 = vmul.f32 %v3858_v12, %v1111_v41  ;;  %v1268_v19 = vpop.permute.xlu2 %1267  ;;  %vm1139_vm5 = vweird.f32 %v3858_v12  ;;  %v1160_v53 = vor.u32 1.1754944e-38, %v1159_v46 }
 0x7e5   :  { %3658 = vmatpush.msk.msra.mxu2 %vm428_vm4, %v1268_v19  ;;  %vm1140_vm6 = vmor %vm1138_vm7, %vm1139_vm5  ;;  %vm1158_vm13 = vcmp.eq.f32.partialorder %v1157_v49, 8.507059e+37 }
 0x7e6   :  { %v1166_v24 = vmul.f32 %v3856_v9, %v1165_v14  ;;  %v1135_v18 = vsub.f32 1.0, %v1134_v15 }
 0x7e8   :  { %v3860_v28 = vpop.eup %3859  ;;  %v1167_v32 = vadd.f32 %v3856_v9, %v1166_v24  ;;  %v1136_v13 = vmul.f32 %v3858_v12, %v1135_v18 }
 0x7e9   :  { %v1149_v35 = vmul.f32 %v3860_v28, %v1114_v10  ;;  %vm1154_vm8 = vweird.f32 %v3860_v28 }
 0x7ea   :  { %v1171_v36 = vsel %vm1170_vm14, %v3856_v9, %v1167_v32  ;;  %v1137_v37 = vadd.f32 %v3858_v12, %v1136_v13  ;;  %vm1155_vm12 = vmor %vm1153_vm10, %vm1154_vm8 }
 0x7eb   :  { %v1176_v39 = vsel %vm1173_vm15, %v1175_v34, %v1171_v36  ;;  %v1150_v42 = vsub.f32 1.0, %v1149_v35 }
 0x7ec   :  { %v1177_v47 = vmul.f32 %v4427_v58, %v1176_v39  ;;  %v1141_v50 = vsel %vm1140_vm6, %v3858_v12, %v1137_v37 }
 0x7ed   :  { %v1151_v48 = vmul.f32 %v3860_v28, %v1150_v42  ;;  %v1146_v43 = vsel %vm1143_vm11, %v1145_v51, %v1141_v50 }
 0x7ee   :  { %3659 = vmatmul.msk.f32.vlgmr.msra.gmra.mxu2 %vm424_vm9, %v1177_v47  ;;  %v1147_v60 = vmul.f32 %v4431_v62, %v1146_v43 }
 0x7ef   :  { %v1152_v52 = vadd.f32 %v3860_v28, %v1151_v48 }
 0x7f1   :  { %v1156_v54 = vsel %vm1155_vm12, %v3860_v28, %v1152_v52 }
 0x7f2   :  { %v1161_v55 = vsel %vm1158_vm13, %v1160_v53, %v1156_v54  ;;  %v1239_v56 = vpop.permute.xlu1 %1238 }
 0x7f3   :  { %3656 = vmatpush.msk.msra.mxu1 %vm428_vm4, %v1239_v56  ;;  %v1162_v57 = vmul.f32 %v4435_v0, %v1161_v55 }
 0x7f4   :  { %v1210_v58 = vpop.permute.xlu0 %1209 }
 0x7f5   :  { %3654 = vmatpush.msk.msra.mxu0 %vm428_vm4, %v1210_v58  ;;  %3657 = vmatmul.msk.f32.vlgmr.msra.gmra.mxu1 %vm424_vm9, %v1162_v57 }
 0x7f6   :  { %3655 = vmatmul.msk.f32.vlgmr.msra.gmra.mxu0 %vm424_vm9, %v1147_v60 }
 0x841   :  { %v1204_v63 = vpop.f32.mrf.mxu3 }
 0x842   :  { %1298 = vst [vmem:[#allocation1] ss:$4 sm:$0xff] %v1204_v63 }
 0x871   :  { %v1291_v2 = vpop.f32.mrf.mxu2 }
 0x872   :  { %1304 = vst [vmem:[#allocation1 + $0x3] ss:$4 sm:$0xff] %v1291_v2  ;;  %v1262_v59 = vpop.f32.mrf.mxu1 }
 0x873   :  { %1302 = vst [vmem:[#allocation1 + $0x2] ss:$4 sm:$0xff] %v1262_v59  ;;  %v1233_v3 = vpop.f32.mrf.mxu0 }
 0x874   :  { %1300 = vst [vmem:[#allocation1 + $0x1] ss:$4 sm:$0xff] %v1233_v3 }
 0x87b   :  { %v1305_v0 = vld.sshfl [vmem:[#allocation1] sm:$0xff pattern:$0x73625140] }
 0x87c   :  { %1329 = vst [vmem:[#allocation1] ss:$4 sm:$0xff] %v4201_v20  ;;  %3660 = vmatmul.msk.f32.vlgmr.msrb.gmra.mxu3 %vm210_vm2, %v1305_v0 }
 0x883   :  { %v1330_v62 = vld.sshfl [vmem:[#allocation1] sm:$0xff pattern:$0x73625140] }
 0x884   :  { %1333 = vst [vmem:[#allocation1] ss:$4 sm:$0xff] %v4201_v20 }
 0x88b   :  { %v1334_v61 = vld.sshfl [vmem:[#allocation1] sm:$0xff pattern:$0x73625140] }
 0x88c   :  { %1361 = vst [vmem:[#allocation1] ss:$4 sm:$0xff] %v4205_v21 }
 0x893   :  { %v1362_v4 = vld.sshfl [vmem:[#allocation1] sm:$0xff pattern:$0x73625140] }
 0x894   :  { %1365 = vst [vmem:[#allocation1] ss:$4 sm:$0xff] %v4205_v21 }
 0x89b   :  { %v1366_v38 = vld.sshfl [vmem:[#allocation1] sm:$0xff pattern:$0x73625140] }
 0x89c   :  { %1393 = vst [vmem:[#allocation1] ss:$4 sm:$0xff] %v4209_v23 }
 0x8a3   :  { %v1394_v5 = vld.sshfl [vmem:[#allocation1] sm:$0xff pattern:$0x73625140] }
 0x8a4   :  { %1397 = vst [vmem:[#allocation1] ss:$4 sm:$0xff] %v4209_v23  ;;  %1395 = vrot.lane.b32.xlu1 %v1394_v5, %s4015_s16 }
 0x8ab   :  { %v1398_v27 = vld.sshfl [vmem:[#allocation1] sm:$0xff pattern:$0x73625140] }
 0x8ac   :  { %1425 = vst [vmem:[#allocation1] ss:$4 sm:$0xff] %v4214_v25  ;;  %1367 = vrot.lane.b32.xlu1 %v1366_v38, %s4016_s18  ;;  %1399 = vrot.lane.b32.xlu0 %v1398_v27, %s4016_s18 }
 0x8b3   :  { %v1426_v30 = vld.sshfl [vmem:[#allocation1] sm:$0xff pattern:$0x73625140] }
 0x8b4   :  { %1429 = vst [vmem:[#allocation1] ss:$4 sm:$0xff] %v4214_v25  ;;  %1427 = vrot.lane.b32.xlu0 %v1426_v30, %s4015_s16 }
 0x8bb   :  { %v1430_v31 = vld.sshfl [vmem:[#allocation1] sm:$0xff pattern:$0x73625140] }
 0x8bc   :  { %1557 = vst [vmem:[#allocation1] ss:$4 sm:$0xff] %v4201_v20  ;;  %1331 = vrot.lane.b32.xlu0 %v1330_v62, %s4015_s16  ;;  %1431 = vrot.lane.b32.xlu2 %v1430_v31, %s4016_s18 }
 0x8c3   :  { %v4472_v33 = vld.sshfl [vmem:[#allocation1] sm:$0xff pattern:$0x73625140] }
 0x8c4   :  { %1586 = vst [vmem:[#allocation1] ss:$4 sm:$0xff] %v4205_v21  ;;  %1335 = vrot.lane.b32.xlu2 %v1334_v61, %s4016_s18 }
 0x8cb   :  { %v4476_v6 = vld.sshfl [vmem:[#allocation1] sm:$0xff pattern:$0x73625140] }
 0x8cc   :  { %1615 = vst [vmem:[#allocation1] ss:$4 sm:$0xff] %v4209_v23  ;;  %1363 = vrot.lane.b32.xlu2 %v1362_v4, %s4015_s16 }
 0x8d3   :  { %v1616_v7 = vld.sshfl [vmem:[#allocation1] sm:$0xff pattern:$0x73625140] }
 0x8d4   :  { %1644 = vst [vmem:[#allocation1] ss:$4 sm:$0xff] %v4214_v25 }
 0x8db   :  { %v1645_v58 = vld.sshfl [vmem:[#allocation1] sm:$0xff pattern:$0x73625140] }
 0x8ff   :  { %v4489_v10 = vpop.f32.mrf.mxu3 }
 0x916   :  { %v1396_v20 = vpop.permute.xlu1 %1395  ;;  %v1432_v45 = vpop.permute.xlu2 %1431 }
 0x917   :  { %3667 = vmatpush.xpose.msk.msra.mxu3 %vm210_vm2, %v1432_v45 }
 0x91e   :  { %v1368_v8 = vpop.permute.xlu1 %1367  ;;  %v1400_v41 = vpop.permute.xlu0 %1399 }
 0x91f   :  { %v1336_v9 = vpop.permute.xlu2 %1335  ;;  %3663 = vmatpush.xpose.msk.msrb.mxu1 %vm210_vm2, %v1368_v8  ;;  %3665 = vmatpush.xpose.msk.msrb.mxu2 %vm210_vm2, %v1400_v41 }
 0x920   :  { %3661 = vmatpush.xpose.msk.msrb.mxu0 %vm210_vm2, %v1336_v9 }
 0x922   :  { %3666 = vmatmul.msk.f32.vlgmr.msrb.gmra.mxu2 %vm210_vm2, %v1396_v20 }
 0x926   :  { %v1428_v21 = vpop.permute.xlu0 %1427 }
 0x927   :  { %v1364_v23 = vpop.permute.xlu2 %1363  ;;  %3668 = vmatmul.msk.f32.vlgmr.msra.gmra.mxu3 %vm210_vm2, %v1428_v21 }
 0x928   :  { %3664 = vmatmul.msk.f32.vlgmr.msrb.gmra.mxu1 %vm210_vm2, %v1364_v23 }
 0x92e   :  { %v1332_v25 = vpop.permute.xlu0 %1331 }
 0x92f   :  { %3662 = vmatmul.msk.f32.vlgmr.msrb.gmra.mxu0 %vm210_vm2, %v1332_v25 }
 0x9a5   :  { %v1422_v11 = vpop.f32.mrf.mxu2  ;;  %v1390_v15 = vpop.f32.mrf.mxu1 }
 0x9a6   :  { %v1459_v12 = vmul.f32 0.35355338, %v1422_v11  ;;  %v1458_v24 = vmul.f32 0.35355338, %v1390_v15 }
 0x9a8   :  { %v1467_v14 = vsel %vm4959_vm3, %v1459_v12, -inf  ;;  %v1464_v13 = vsel %vm4959_vm3, %v1458_v24, -inf }
 0x9a9   :  { %1468 = vmax.xlane.f32.xlu1 %v1467_v14 }
 0x9aa   :  { %v1454_v19 = vpop.f32.mrf.mxu3 }
 0x9ab   :  { %v1460_v22 = vmul.f32 0.35355338, %v1454_v19 }
 0x9ac   :  { %v1358_v16 = vpop.f32.mrf.mxu0 }
 0x9ad   :  { %v1457_v18 = vmul.f32 0.35355338, %v1358_v16  ;;  %v1470_v28 = vsel %vm4959_vm3, %v1460_v22, -inf }
 0x9ae   :  { %1471 = vmax.xlane.f32.xlu0 %v1470_v28 }
 0x9af   :  { %v1461_v32 = vsel %vm4959_vm3, %v1457_v18, -inf }
 0x9b0   :  { %1462 = vmax.xlane.f32.xlu2 %v1461_v32 }
 0x9b1   :  { %1465 = vmax.xlane.f32.xlu1 %v1464_v13 }
 0x9c2   :  { %1617 = vrot.lane.b32.xlu0 %v1616_v7, %s4017_s22 }
 0xa1c   :  { %v1469_v34 = vpop.xlane.xlu1 %1468 }
 0xa1d   :  { %v1475_v47 = vsub.f32 %v1459_v12, %v1469_v34 }
 0xa1f   :  { %v1481_v49 = vmul.f32 1.442695, %v1475_v47 }
 0xa21   :  { %v1472_v35 = vpop.xlane.xlu0 %1471 }
 0xa22   :  { %v1476_v36 = vsub.f32 %v1460_v22, %v1472_v35 }
 0xa23   :  { %v1463_v37 = vpop.xlane.xlu2 %1462 }
 0xa24   :  { %v1483_v39 = vmul.f32 1.442695, %v1476_v36  ;;  %v1473_v40 = vsub.f32 %v1457_v18, %v1463_v37  ;;  %v1466_v42 = vpop.xlane.xlu1 %1465 }
 0xa25   :  { %v1474_v44 = vsub.f32 %v1458_v24, %v1466_v42 }
 0xa26   :  { %3861 = vpow2.f32 %v1483_v39  ;;  %v1477_v46 = vmul.f32 1.442695, %v1473_v40 }
 0xa27   :  { %v1479_v48 = vmul.f32 1.442695, %v1474_v44 }
 0xa28   :  { %3863 = vpow2.f32 %v1477_v46 }
 0xa29   :  { %3865 = vpow2.f32 %v1479_v48 }
 0xa2a   :  { %3867 = vpow2.f32 %v1481_v49 }
 0xa2c   :  { %v4496_v50 = vpop.eup %3861 }
 0xa2d   :  { %v1494_v51 = vsel %vm4959_vm3, %v4496_v50, 0.0 }
 0xa2e   :  { %v4500_v52 = vpop.eup %3863  ;;  %1495 = vadd.xlane.f32.xlu0 %v1494_v51 }
 0xa2f   :  { %v4502_v53 = vpop.eup %3865  ;;  %v1485_v43 = vsel %vm4959_vm3, %v4500_v52, 0.0 }
 0xa30   :  { %1486 = vadd.xlane.f32.xlu1 %v1485_v43  ;;  %v1488_v54 = vsel %vm4959_vm3, %v4502_v53, 0.0  ;;  %v4508_v56 = vpop.eup %3867 }
 0xa31   :  { %1489 = vadd.xlane.f32.xlu2 %v1488_v54  ;;  %v1491_v57 = vsel %vm4959_vm3, %v4508_v56, 0.0 }
 0xa34   :  { %v1618_v55 = vpop.permute.xlu0 %1617 }
 0xa35   :  { %3673 = vmatpush.msk.msra.mxu2 %vm428_vm4, %v1618_v55 }
 0xa39   :  { %1492 = vadd.xlane.f32.xlu2 %v1491_v57 }
 0xa42   :  { %1588 = vrot.lane.b32.xlu0 %v4476_v6, %s4017_s22 }
 0xa49   :  { %1646 = vrot.lane.b32.xlu1 %v1645_v58, %s4017_s22  ;;  %v948_v58 = vadd.f32 %v4418_v29, %v4420_v26 }
 0xa51   :  { %1559 = vrot.lane.b32.xlu2 %v4472_v33, %s4017_s22 }
 0xaa1   :  { %v1496_v60 = vpop.xlane.xlu0 %1495 }
 0xaa2   :  { %3869 = vrcp.f32 %v1496_v60  ;;  %vm1547_vm15 = vweird.f32 %v1496_v60  ;;  %v1553_v9 = vand.u32 2147483648, %v1496_v60  ;;  %v1551_v11 = vand.u32 2147483647, %v1496_v60 }
 0xaa3   :  { %v1487_v63 = vpop.xlane.xlu1 %1486 }
 0xaa4   :  { %3871 = vrcp.f32 %v1487_v63  ;;  %v1490_v1 = vpop.xlane.xlu2 %1489  ;;  %v1508_v30 = vand.u32 2147483648, %v1487_v63  ;;  %v1506_v6 = vand.u32 2147483647, %v1487_v63  ;;  %vm1502_vm6 = vweird.f32 %v1487_v63 }
 0xaa5   :  { %3873 = vrcp.f32 %v1490_v1  ;;  %v1523_v7 = vand.u32 2147483648, %v1490_v1  ;;  %v1521_v45 = vand.u32 2147483647, %v1490_v1  ;;  %vm1517_vm10 = vweird.f32 %v1490_v1 }
 0xaa6   :  { %v1509_v21 = vor.u32 1.1754944e-38, %v1508_v30  ;;  %vm1507_vm11 = vcmp.eq.f32.partialorder %v1506_v6, 8.507059e+37  ;;  %v1554_v34 = vor.u32 1.1754944e-38, %v1553_v9  ;;  %v1754_v6 = vld [vmem:[%s4068_s8 + $0x8] sm:$0xff] }
 0xaa7   :  { %v1524_v14 = vor.u32 1.1754944e-38, %v1523_v7  ;;  %vm1522_vm3 = vcmp.eq.f32.partialorder %v1521_v45, 8.507059e+37  ;;  %v1753_v7 = vld [vmem:[%s4068_s8] sm:$0xff]  ;;  %v1791_v45 = vld [vmem:[%s4078_s19 + $0x30] sm:$0xff] }
 0xaa8   :  { %v3870_v2 = vpop.eup %3869 }
 0xaa9   :  { %v1543_v59 = vmul.f32 %v3870_v2, %v1496_v60  ;;  %vm1548_vm7 = vweird.f32 %v3870_v2  ;;  %v3797_v60 = vld [vmem:[%s4063_s3] ss:$0 sm:$0xff]  ;;  %s4978_s3 = sld [smem:[#allocation5_spill]] }
 0xaaa   :  { %v3872_v3 = vpop.eup %3871  ;;  %vm4520_vm13 = vmor %vm1547_vm15, %vm1548_vm7 }
 0xaab   :  { %v3874_v0 = vpop.eup %3873  ;;  %v1544_v62 = vsub.f32 1.0, %v1543_v59  ;;  %v1498_v61 = vmul.f32 %v3872_v3, %v1487_v63  ;;  %vm1503_vm14 = vweird.f32 %v3872_v3 }
 0xaac   :  { %v1513_v4 = vmul.f32 %v3874_v0, %v1490_v1  ;;  %v1493_v38 = vpop.xlane.xlu2 %1492  ;;  %vm1518_vm5 = vweird.f32 %v3874_v0  ;;  %vm1504_vm8 = vmor %vm1502_vm6, %vm1503_vm14  ;;  %vm1552_vm14 = vcmp.eq.f32.partialorder %v1551_v11, 8.507059e+37 }
 0xaad   :  { %v1545_v5 = vmul.f32 %v3870_v2, %v1544_v62  ;;  %v1499_v27 = vsub.f32 1.0, %v1498_v61  ;;  %3875 = vrcp.f32 %v1493_v38  ;;  %vm1519_vm12 = vmor %vm1517_vm10, %vm1518_vm5  ;;  %v1538_v37 = vand.u32 2147483648, %v1493_v38 }
 0xaae   :  { %v1514_v31 = vsub.f32 1.0, %v1513_v4  ;;  %v1536_v42 = vand.u32 2147483647, %v1493_v38 }
 0xaaf   :  { %v1500_v33 = vmul.f32 %v3872_v3, %v1499_v27  ;;  %v1546_v8 = vadd.f32 %v3870_v2, %v1545_v5  ;;  %v1539_v46 = vor.u32 1.1754944e-38, %v1538_v37  ;;  %v3800_v37 = vld [vmem:[%s4073_s14] ss:$0 sm:$0xff]  ;;  %s4980_s14 = sld [smem:[#allocation8_spill]] }
 0xab0   :  { %v1515_v20 = vmul.f32 %v3874_v0, %v1514_v31  ;;  %vm1537_vm7 = vcmp.eq.f32.partialorder %v1536_v42, 8.507059e+37  ;;  %v1756_v31 = vld [vmem:[%s4068_s8 + $0x18] sm:$0xff] }
 0xab1   :  { %v1501_v41 = vadd.f32 %v3872_v3, %v1500_v33  ;;  %v1550_v28 = vsel %vm4520_vm13, %v3870_v2, %v1546_v8  ;;  %v1755_v33 = vld [vmem:[%s4068_s8 + $0x10] sm:$0xff]  ;;  %v1790_v8 = vld [vmem:[%s4078_s19 + $0x28] sm:$0xff]  ;;  %s4979_s8 = sld [smem:[#allocation6_spill]] }
 0xab2   :  { %v1516_v23 = vadd.f32 %v3874_v0, %v1515_v20  ;;  %v1555_v39 = vsel %vm1552_vm14, %v1554_v34, %v1550_v28  ;;  %v1792_v20 = vld [vmem:[%s4078_s19 + $0x38] sm:$0xff]  ;;  %v3799_v28 = vld [vmem:[%s4093_s6] ss:$0 sm:$0xff]  ;;  %v1787_v34 = vld [vmem:[%s4078_s19 + $0x10] sm:$0xff]  ;;  %s5016_s6 = sld [smem:[#allocation13_spill]] }
 0xab3   :  { %v3876_v25 = vpop.eup %3875  ;;  %v1505_v12 = vsel %vm1504_vm8, %v3872_v3, %v1501_v41  ;;  %v1556_v48 = vmul.f32 %v4496_v50, %v1555_v39  ;;  %1808 = vmatpush.msrb.mxu2 %v1792_v20 }
 0xab4   :  { %v1510_v19 = vsel %vm1507_vm11, %v1509_v21, %v1505_v12  ;;  %v1520_v22 = vsel %vm1519_vm12, %v3874_v0, %v1516_v23  ;;  %v1528_v24 = vmul.f32 %v3876_v25, %v1493_v38  ;;  %v1560_v16 = vpop.permute.xlu2 %1559  ;;  %v1589_v18 = vpop.permute.xlu0 %1588  ;;  %vm1533_vm15 = vweird.f32 %v3876_v25  ;;  %v1789_v21 = vld [vmem:[%s4078_s19 + $0x20] sm:$0xff] }
 0xab5   :  { %v1525_v32 = vsel %vm1522_vm3, %v1524_v14, %v1520_v22  ;;  %3669 = vmatpush.msk.msra.mxu0 %vm428_vm4, %v1560_v16  ;;  %3671 = vmatpush.msk.msra.mxu1 %vm428_vm4, %v1589_v18  ;;  %v1511_v13 = vmul.f32 %v4500_v52, %v1510_v19  ;;  %vm1532_vm3 = vweird.f32 %v1493_v38  ;;  %v4018_v0 = vmov 32.0  }
 0xab6   :  { %v1529_v35 = vsub.f32 1.0, %v1528_v24  ;;  %v1526_v36 = vmul.f32 %v4502_v53, %v1525_v32  ;;  %vm1534_vm5 = vmor %vm1532_vm3, %vm1533_vm15  ;;  %v201_v53 = vld [vmem:[%s4058_s29 + $0x18] sm:$0xff]  ;;  %3877 = vrcp.f32 %v4018_v0  ;;  %1809 = vmatpush.msrb.mxu2 %v1791_v45  ;;  %v3798_v24 = vld [vmem:[%s4088_s30] ss:$0 sm:$0xff]  ;;  %s4977_s29 = sld [smem:[#allocation7_spill]]  ;;  %vm4981_vm15 = vcmask 9216  }
 0xab7   :  { %3670 = vmatmul.msk.f32.vlgmr.msra.gmra.mxu0 %vm424_vm9, %v1511_v13  ;;  %1776 = vmatpush.msrb.mxu1 %v1756_v31  ;;  %vm4982_vm3 = vmmov %vm4981_vm15  ;;  %s5015_s30 = sld [smem:[#allocation11_spill]] }
 0xab8   :  { %v1530_v40 = vmul.f32 %v3876_v25, %v1529_v35  ;;  %3672 = vmatmul.msk.f32.vlgmr.msra.gmra.mxu1 %vm424_vm9, %v1526_v36  ;;  %1702 = vmatpush.msrb.mxu0 %v201_v53  ;;  %v1786_v35 = vld [vmem:[%s4078_s19 + $0x8] sm:$0xff]  ;;  %v1785_v36 = vld [vmem:[%s4078_s19] sm:$0xff] }
 0xab9   :  { %1777 = vmatpush.msrb.mxu1 %v1755_v33  ;;  %1810 = vmatpush.msrb.mxu2 %v1790_v8 }
 0xaba   :  { %v1531_v44 = vadd.f32 %v3876_v25, %v1530_v40 }
 0xabb   :  { %v1647_v47 = vpop.permute.xlu1 %1646  ;;  %1778 = vmatpush.msrb.mxu1 %v1754_v6  ;;  %1811 = vmatpush.msrb.mxu2 %v1789_v21 }
 0xabc   :  { %v1535_v49 = vsel %vm1534_vm5, %v3876_v25, %v1531_v44  ;;  %3675 = vmatpush.msk.msrb.mxu3 %vm428_vm4, %v1647_v47  ;;  %v3878_v62 = vpop.eup %3877  ;;  %v1788_v25 = vld [vmem:[%s4078_s19 + $0x18] sm:$0xff]  ;;  %v3801_v44 = vld [vmem:[%s4083_s24] ss:$0 sm:$0xff]  ;;  %vm4983_vm5 = vmmov %vm4982_vm3  ;;  %s4997_s19 = sld [smem:[#allocation9_spill]] }
 0xabd   :  { %v1540_v51 = vsel %vm1537_vm7, %v1539_v46, %v1535_v49  ;;  %3676 = vmatmul.msk.f32.vlgmr.msrb.gmra.mxu3 %vm424_vm9, %v1556_v48  ;;  %v1720_v61 = vmul.f32 32.0, %v3878_v62  ;;  %vm1724_vm6 = vweird.f32 %v3878_v62  ;;  %1779 = vmatpush.msrb.mxu1 %v1753_v7  ;;  %vm4984_vm7 = vmmov %vm4982_vm3  ;;  %s5014_s24 = sld [smem:[#allocation10_spill]] }
 0xabe   :  { %v1541_v52 = vmul.f32 %v4508_v56, %v1540_v51  ;;  %v1328_v56 = vadd.f32 %v4489_v10, %v948_v58  ;;  %1812 = vmatpush.msrb.mxu2 %v1788_v25  ;;  %v1853_v58 = vld [vmem:[%s4977_s29] sm:$0xff] }
 0xabf   :  { %v1721_v4 = vsub.f32 1.0, %v1720_v61  ;;  %v3802_v61 = vld [vmem:[%s4978_s3] ss:$0 sm:$0xff] }
 0xac0   :  { %3674 = vmatmul.msk.f32.vlgmr.msra.gmra.mxu2 %vm424_vm9, %v1541_v52 }
 0xac1   :  { %v1722_v29 = vmul.f32 %v3878_v62, %v1721_v4  ;;  %1813 = vmatpush.msrb.mxu2 %v1787_v34 }
 0xac3   :  { %v1723_v26 = vadd.f32 %v3878_v62, %v1722_v29  ;;  %1814 = vmatpush.msrb.mxu2 %v1786_v35 }
 0xac5   :  { %v4545_v10 = vsel %vm1724_vm6, %v3878_v62, %v1723_v26  ;;  %1815 = vmatpush.msrb.mxu2 %v1785_v36  ;;  %v3803_v26 = vld [vmem:[%s4979_s8] ss:$0 sm:$0xff]  ;;  %vm4985_vm6 = vmmov %vm4982_vm3 }
 0xb34   :  { %v1583_v43 = vpop.f32.mrf.mxu0 }
 0xb35   :  { %1677 = vst [vmem:[#allocation1] ss:$4 sm:$0xff] %v1583_v43  ;;  %v1612_v54 = vpop.f32.mrf.mxu1 }
 0xb36   :  { %1679 = vst [vmem:[#allocation1 + $0x1] ss:$4 sm:$0xff] %v1612_v54 }
 0xb40   :  { %v1670_v55 = vpop.f32.mrf.mxu3 }
 0xb41   :  { %1683 = vst [vmem:[#allocation1 + $0x3] ss:$4 sm:$0xff] %v1670_v55  ;;  %v1856_v55 = vld [vmem:[%s4977_s29 + $0x18] sm:$0xff] }
 0xb42   :  { %1876 = vmatpush.msra.mxu3 %v1856_v55 }
 0xb43   :  { %v1641_v50 = vpop.f32.mrf.mxu2 }
 0xb44   :  { %1681 = vst [vmem:[#allocation1 + $0x2] ss:$4 sm:$0xff] %v1641_v50  ;;  %v1855_v50 = vld [vmem:[%s4977_s29 + $0x10] sm:$0xff] }
 0xb45   :  { %1877 = vmatpush.msra.mxu3 %v1855_v50 }
 0xb4b   :  { %v1684_v57 = vld.sshfl [vmem:[#allocation1] sm:$0xff pattern:$0x73625140] }
 0xb4c   :  { %3677 = vmatmul.msk.f32.vlgmr.msrb.gmra.mxu0 %vm210_vm2, %v1684_v57  ;;  %v1854_v57 = vld [vmem:[%s4977_s29 + $0x8] sm:$0xff] }
 0xb4d   :  { %1878 = vmatpush.msra.mxu3 %v1854_v57 }
 0xb4f   :  { %1879 = vmatpush.msra.mxu3 %v1853_v58 }
 0xbc9   :  { %v1704_v63 = vpop.f32.mrf.mxu0 }
 0xbca   :  { %v1707_v1 = vadd.f32 %v1704_v63, %v1328_v56 }
 0xbcc   :  { %v1712_v2 = vadd.f32 %v3797_v60, %v1707_v1 }
 0xbce   :  { %v1713_v59 = vadd.f32 %v1712_v2, %v4196_v17 }
 0xbd0   :  { %v1716_v3 = vsel %vm174_vm1, %v1713_v59, 0.0 }
 0xbd1   :  { %1717 = vadd.xlane.f32.xlu0 %v1716_v3 }
 0xc44   :  { %v1718_v17 = vpop.xlane.xlu0 %1717 }
 0xc45   :  { %v1726_v38 = vmul.f32 %v4545_v10, %v1718_v17 }
 0xc47   :  { %v1727_v5 = vsub.f32 %v1713_v59, %v1726_v38 }
 0xc49   :  { %v1728_v27 = vmul.f32 %v1727_v5, %v1727_v5 }
 0xc4b   :  { %v1729_v30 = vsel %vm174_vm1, %v1728_v27, 0.0 }
 0xc4c   :  { %1730 = vadd.xlane.f32.xlu2 %v1729_v30 }
 0xcbf   :  { %v1731_v41 = vpop.xlane.xlu2 %1730 }
 0xcc0   :  { %v1732_v9 = vmul.f32 %v1731_v41, %v4545_v10 }
 0xcc2   :  { %v1733_v23 = vadd.f32 1e-05, %v1732_v9 }
 0xcc4   :  { %3879 = vrsqrt.f32 %v1733_v23  ;;  %vm1740_vm10 = vweird.f32 %v1733_v23 }
 0xcca   :  { %v3880_v11 = vpop.eup %3879 }
 0xccb   :  { %v1735_v12 = vmul.f32 %v3880_v11, %v1733_v23  ;;  %vm1741_vm8 = vweird.f32 %v3880_v11 }
 0xccc   :  { %vm1742_vm11 = vmor %vm1740_vm10, %vm1741_vm8 }
 0xccd   :  { %v1736_v14 = vmul.f32 %v3880_v11, %v1735_v12  ;;  %vm4986_vm8 = vmmov %vm4982_vm3 }
 0xcce   :  { %vm4987_vm10 = vmmov %vm4982_vm3 }
 0xccf   :  { %v1737_v15 = vmul.f32 0.5, %v1736_v14 }
 0xcd1   :  { %v1738_v19 = vsub.f32 1.5, %v1737_v15 }
 0xcd3   :  { %v1739_v22 = vmul.f32 %v3880_v11, %v1738_v19 }
 0xcd5   :  { %v1743_v16 = vsel %vm1742_vm11, %v3880_v11, %v1739_v22  ;;  %vm4988_vm11 = vmmov %vm4982_vm3 }
 0xcd6   :  { %v1744_v18 = vmul.f32 %v1743_v16, %v1727_v5  ;;  %v3804_v5 = vld [vmem:[%s4980_s14] ss:$0 sm:$0xff] }
 0xcd8   :  { %v1748_v32 = vmul.f32 %v3798_v24, %v1744_v18 }
 0xcda   :  { %v1752_v13 = vadd.f32 %v3799_v28, %v1748_v32 }
 0xcdc   :  { %3678 = vmatmul.msk.f32.vlgmr.msrb.gmra.mxu1 %vm174_vm1, %v1752_v13 }
 0xd59   :  { %v1781_v39 = vpop.f32.mrf.mxu1 }
 0xd5a   :  { %v1782_v40 = vadd.f32 %v3800_v37, %v1781_v39 }
 0xd5c   :  { %v1784_v42 = vmax.f32 %v1782_v40, 0.0 }
 0xd5e   :  { %3679 = vmatmul.msk.f32.vlgmr.msrb.gmra.mxu2 %vm140_vm0, %v1784_v42 }
 0xde1   :  { %v1817_v46 = vpop.f32.mrf.mxu2 }
 0xde2   :  { %v1818_v47 = vadd.f32 %v3801_v44, %v1817_v46 }
 0xde4   :  { %v1820_v48 = vadd.f32 %v1818_v47, %v1752_v13 }
 0xde6   :  { %v1823_v49 = vsel %vm174_vm1, %v1820_v48, 0.0 }
 0xde7   :  { %1824 = vadd.xlane.f32.xlu1 %v1823_v49 }
 0xe5a   :  { %v1825_v51 = vpop.xlane.xlu1 %1824 }
 0xe5b   :  { %v1826_v52 = vmul.f32 %v1825_v51, %v4545_v10 }
 0xe5d   :  { %v1827_v53 = vsub.f32 %v1820_v48, %v1826_v52 }
 0xe5f   :  { %v1828_v43 = vmul.f32 %v1827_v53, %v1827_v53 }
 0xe61   :  { %v1829_v54 = vsel %vm174_vm1, %v1828_v43, 0.0 }
 0xe62   :  { %1830 = vadd.xlane.f32.xlu0 %v1829_v54 }
 0xed5   :  { %v1831_v56 = vpop.xlane.xlu0 %1830 }
 0xed6   :  { %v1832_v60 = vmul.f32 %v1831_v56, %v4545_v10 }
 0xed8   :  { %v1833_v63 = vadd.f32 1e-05, %v1832_v60 }
 0xeda   :  { %3881 = vrsqrt.f32 %v1833_v63  ;;  %vm1840_vm13 = vweird.f32 %v1833_v63 }
 0xee0   :  { %v3882_v1 = vpop.eup %3881 }
 0xee1   :  { %v1835_v2 = vmul.f32 %v3882_v1, %v1833_v63  ;;  %vm1841_vm12 = vweird.f32 %v3882_v1 }
 0xee2   :  { %vm1842_vm14 = vmor %vm1840_vm13, %vm1841_vm12 }
 0xee3   :  { %v1836_v59 = vmul.f32 %v3882_v1, %v1835_v2 }
 0xee5   :  { %v1837_v3 = vmul.f32 0.5, %v1836_v59 }
 0xee7   :  { %v1838_v0 = vsub.f32 1.5, %v1837_v3 }
 0xee9   :  { %v1839_v62 = vmul.f32 %v3882_v1, %v1838_v0 }
 0xeeb   :  { %v1843_v4 = vsel %vm1842_vm14, %v3882_v1, %v1839_v62 }
 0xeec   :  { %v1844_v29 = vmul.f32 %v1843_v4, %v1827_v53 }
 0xeee   :  { %v1848_v17 = vmul.f32 %v3802_v61, %v1844_v29 }
 0xef0   :  { %v4578_v38 = vadd.f32 %v3803_v26, %v1848_v17 }
 0xef2   :  { %3680 = vmatmul.msk.f32.vlgmr.msra.gmra.mxu3 %vm174_vm1, %v4578_v38 }
 0xf75   :  { %v1881_v27 = vpop.f32.mrf.mxu3 }
 0xf76   :  { %v4583_v30 = vadd.f32 %v3804_v5, %v1881_v27 }
 0xf78   :  { %1892 = vst [vmem:[#allocation1] ss:$4 sm:$0xff] %v4583_v30  ;;  %v4587_v31 = vrot.slane %v4583_v30, 2  ;;  %v4592_v6 = vrot.slane %v4583_v30, 4  ;;  %v4597_v20 = vrot.slane %v4583_v30, 6 }
 0xf7f   :  { %v1893_v33 = vld.sshfl [vmem:[#allocation1] sm:$0xff pattern:$0x73625140] }
 0xf80   :  { %1894 = vrot.lane.b32.xlu0 %v1893_v33, %s4007_s0  ;;  %1920 = vst [vmem:[#allocation1] ss:$4 sm:$0xff] %v4587_v31 }
 0xf87   :  { %v1921_v7 = vld.sshfl [vmem:[#allocation1] sm:$0xff pattern:$0x73625140] }
 0xf88   :  { %1922 = vrot.lane.b32.xlu1 %v1921_v7, %s4007_s0  ;;  %1948 = vst [vmem:[#allocation1] ss:$4 sm:$0xff] %v4592_v6 }
 0xf8f   :  { %v1949_v45 = vld.sshfl [vmem:[#allocation1] sm:$0xff pattern:$0x73625140] }
 0xf90   :  { %1950 = vrot.lane.b32.xlu2 %v1949_v45, %s4007_s0  ;;  %1976 = vst [vmem:[#allocation1] ss:$4 sm:$0xff] %v4597_v20 }
 0xf97   :  { %v1977_v8 = vld.sshfl [vmem:[#allocation1] sm:$0xff pattern:$0x73625140] }
 0xf98   :  { %1978 = vrot.lane.b32.xlu2 %v1977_v8, %s4007_s0  ;;  %2104 = vst [vmem:[#allocation1] ss:$4 sm:$0xff] %v4583_v30  ;;  %s3967_s0 = scalar_lea.hbm %s4178_s12, 2 }
 0xf9f   :  { %v4603_v41 = vld.sshfl [vmem:[#allocation1] sm:$0xff pattern:$0x73625140] }
 0xfa0   :  { %2133 = vst [vmem:[#allocation1] ss:$4 sm:$0xff] %v4587_v31 }
 0xfa7   :  { %v2134_v9 = vld.sshfl [vmem:[#allocation1] sm:$0xff pattern:$0x73625140] }
 0xfa8   :  { %2135 = vrot.lane.b32.xlu2 %v2134_v9, %s4008_s5  ;;  %2162 = vst [vmem:[#allocation1] ss:$4 sm:$0xff] %v4592_v6 }
 0xfaf   :  { %v2163_v21 = vld.sshfl [vmem:[#allocation1] sm:$0xff pattern:$0x73625140] }
 0xfb0   :  { %2164 = vrot.lane.b32.xlu0 %v2163_v21, %s4008_s5  ;;  %2191 = vst [vmem:[#allocation1] ss:$4 sm:$0xff] %v4597_v20 }
 0xfb7   :  { %v4610_v23 = vld.sshfl [vmem:[#allocation1] sm:$0xff pattern:$0x73625140] }
 0xfb8   :  { %2220 = vst [vmem:[#allocation1] ss:$4 sm:$0xff] %v4583_v30 }
 0xfbf   :  { %v4613_v25 = vld.sshfl [vmem:[#allocation1] sm:$0xff pattern:$0x73625140] }
 0xfc0   :  { %2224 = vst [vmem:[#allocation1] ss:$4 sm:$0xff] %v4583_v30 }
 0xfc7   :  { %v2225_v11 = vld.sshfl [vmem:[#allocation1] sm:$0xff pattern:$0x73625140] }
 0xfc8   :  { %2252 = vst [vmem:[#allocation1] ss:$4 sm:$0xff] %v4587_v31 }
 0xfcf   :  { %v2253_v12 = vld.sshfl [vmem:[#allocation1] sm:$0xff pattern:$0x73625140] }
 0xfd0   :  { %2254 = vrot.lane.b32.xlu2 %v2253_v12, %s4010_s13  ;;  %2256 = vst [vmem:[#allocation1] ss:$4 sm:$0xff] %v4587_v31 }
 0xfd7   :  { %v2257_v14 = vld.sshfl [vmem:[#allocation1] sm:$0xff pattern:$0x73625140] }
 0xfd8   :  { %2258 = vrot.lane.b32.xlu1 %v2257_v14, %s4009_s9  ;;  %2284 = vst [vmem:[#allocation1] ss:$4 sm:$0xff] %v4592_v6 }
 0xfdf   :  { %v2285_v15 = vld.sshfl [vmem:[#allocation1] sm:$0xff pattern:$0x73625140] }
 0xfe0   :  { %2286 = vrot.lane.b32.xlu1 %v2285_v15, %s4010_s13  ;;  %2288 = vst [vmem:[#allocation1] ss:$4 sm:$0xff] %v4592_v6 }
 0xfe7   :  { %v2289_v19 = vld.sshfl [vmem:[#allocation1] sm:$0xff pattern:$0x73625140] }
 0xfe8   :  { %2290 = vrot.lane.b32.xlu0 %v2289_v19, %s4009_s9  ;;  %2316 = vst [vmem:[#allocation1] ss:$4 sm:$0xff] %v4597_v20 }
 0xfea   :  { %v1951_v22 = vpop.permute.xlu2 %1950 }
 0xfeb   :  { %3685 = vmatpush.xpose.msk.msrb.mxu3 %vm210_vm2, %v1951_v22 }
 0xfee   :  { %3686 = vmatmul.msk.f32.vlgmr.msrb.gmra.mxu3 %vm210_vm2, %v4592_v6 }
 0xfef   :  { %v4628_v24 = vld.sshfl [vmem:[#allocation1] sm:$0xff pattern:$0x73625140] }
 0xff0   :  { %2320 = vst [vmem:[#allocation1] ss:$4 sm:$0xff] %v4597_v20 }
 0xff2   :  { %v1895_v16 = vpop.permute.xlu0 %1894  ;;  %v1979_v18 = vpop.permute.xlu2 %1978 }
 0xff3   :  { %3681 = vmatpush.xpose.msk.msra.mxu0 %vm210_vm2, %v1895_v16 }
 0xff6   :  { %3682 = vmatmul.msk.f32.vlgmr.msra.gmra.mxu0 %vm210_vm2, %v4583_v30 }
 0xff7   :  { %3687 = vmatpush.xpose.msk.msrb.mxu0 %vm210_vm2, %v1979_v18  ;;  %v4635_v28 = vld.sshfl [vmem:[#allocation1] sm:$0xff pattern:$0x73625140] }
 0xff8   :  { %2448 = vst [vmem:[#allocation1] ss:$4 sm:$0xff] %v4583_v30 }
 0xffa   :  { %v1923_v32 = vpop.permute.xlu1 %1922 }
 0xffb   :  { %3683 = vmatpush.xpose.msk.msra.mxu1 %vm210_vm2, %v1923_v32 }
 0xffe   :  { %3684 = vmatmul.msk.f32.vlgmr.msra.gmra.mxu1 %vm210_vm2, %v4587_v31  ;;  %3688 = vmatmul.msk.f32.vlgmr.msrb.gmra.mxu0 %vm210_vm2, %v4597_v20 }
 0xfff   :  { %v4643_v13 = vld.sshfl [vmem:[#allocation1] sm:$0xff pattern:$0x73625140] }
0x1000   :  { %2477 = vst [vmem:[#allocation1] ss:$4 sm:$0xff] %v4587_v31 }
0x1002   :  { %v2136_v34 = vpop.permute.xlu2 %2135 }
0x1003   :  { %3691 = vmatpush.msk.msra.mxu2 %vm428_vm4, %v2136_v34 }
0x1007   :  { %v4647_v35 = vld.sshfl [vmem:[#allocation1] sm:$0xff pattern:$0x73625140] }
0x1008   :  { %2506 = vst [vmem:[#allocation1] ss:$4 sm:$0xff] %v4592_v6 }
0x100f   :  { %v4650_v36 = vld.sshfl [vmem:[#allocation1] sm:$0xff pattern:$0x73625140] }
0x1010   :  { %2535 = vst [vmem:[#allocation1] ss:$4 sm:$0xff] %v4597_v20 }
0x1022   :  { %v2165_v37 = vpop.permute.xlu0 %2164 }
0x1023   :  { %3693 = vmatpush.msk.msra.mxu3 %vm428_vm4, %v2165_v37 }
0x102a   :  { %v4667_v57 = vpop.permute.xlu2 %2254 }
0x104a   :  { %v2259_v39 = vpop.permute.xlu1 %2258 }
0x104b   :  { %3699 = vmatpush.xpose.msk.msrb.mxu2 %vm210_vm2, %v2259_v39 }
0x1052   :  { %v4665_v50 = vpop.permute.xlu1 %2286 }
0x105a   :  { %v2291_v40 = vpop.permute.xlu0 %2290 }
0x105b   :  { %3701 = vmatpush.xpose.msk.msrb.mxu3 %vm210_vm2, %v2291_v40 }
0x1071   :  { %v1973_v42 = vpop.f32.mrf.mxu3 }
0x1072   :  { %v2006_v44 = vmul.f32 0.35355338, %v1973_v42 }
0x1073   :  { %v1917_v46 = vpop.f32.mrf.mxu0 }
0x1074   :  { %v2004_v47 = vmul.f32 0.35355338, %v1917_v46  ;;  %v2014_v48 = vsel %vm4981_vm15, %v2006_v44, -inf }
0x1075   :  { %2015 = vmax.xlane.f32.xlu1 %v2014_v48 }
0x1076   :  { %v2008_v49 = vsel %vm4982_vm3, %v2004_v47, -inf }
0x1077   :  { %2009 = vmax.xlane.f32.xlu2 %v2008_v49 }
0x107b   :  { %v1945_v51 = vpop.f32.mrf.mxu1  ;;  %v2001_v43 = vpop.f32.mrf.mxu0 }
0x107c   :  { %v2005_v52 = vmul.f32 0.35355338, %v1945_v51  ;;  %v2007_v54 = vmul.f32 0.35355338, %v2001_v43 }
0x107e   :  { %v2011_v53 = vsel %vm4983_vm5, %v2005_v52, -inf  ;;  %v2017_v55 = vsel %vm4984_vm7, %v2007_v54, -inf }
0x107f   :  { %2012 = vmax.xlane.f32.xlu0 %v2011_v53 }
0x1087   :  { %2018 = vmax.xlane.f32.xlu0 %v2017_v55 }
0x108e   :  { %2226 = vrot.lane.b32.xlu1 %v2225_v11, %s4009_s9 }
0x108f   :  { %2193 = vrot.lane.b32.xlu2 %v4610_v23, %s4008_s5 }
0x109b   :  { %2106 = vrot.lane.b32.xlu0 %v4603_v41, %s4008_s5 }
0x10e8   :  { %v2016_v58 = vpop.xlane.xlu1 %2015 }
0x10e9   :  { %v2022_v56 = vsub.f32 %v2006_v44, %v2016_v58 }
0x10ea   :  { %v2010_v60 = vpop.xlane.xlu2 %2009 }
0x10eb   :  { %v2028_v63 = vmul.f32 1.442695, %v2022_v56  ;;  %v2020_v1 = vsub.f32 %v2004_v47, %v2010_v60 }
0x10ed   :  { %3883 = vpow2.f32 %v2028_v63  ;;  %v2024_v2 = vmul.f32 1.442695, %v2020_v1 }
0x10ef   :  { %3885 = vpow2.f32 %v2024_v2 }
0x10f2   :  { %v2194_v59 = vpop.permute.xlu2 %2193  ;;  %v2013_v3 = vpop.xlane.xlu0 %2012 }
0x10f3   :  { %v4669_v0 = vpop.eup %3883  ;;  %v2021_v62 = vsub.f32 %v2005_v52, %v2013_v3  ;;  %3695 = vmatpush.msk.msra.mxu0 %vm428_vm4, %v2194_v59 }
0x10f4   :  { %v2038_v61 = vsel %vm4985_vm6, %v4669_v0, 0.0 }
0x10f5   :  { %v4674_v4 = vpop.eup %3885  ;;  %v2026_v29 = vmul.f32 1.442695, %v2021_v62  ;;  %2039 = vadd.xlane.f32.xlu2 %v2038_v61 }
0x10f6   :  { %v2032_v26 = vsel %vm4986_vm8, %v4674_v4, 0.0 }
0x10f7   :  { %3887 = vpow2.f32 %v2026_v29  ;;  %2033 = vadd.xlane.f32.xlu0 %v2032_v26 }
0x10fa   :  { %v2019_v17 = vpop.xlane.xlu0 %2018 }
0x10fb   :  { %v2023_v5 = vsub.f32 %v2007_v54, %v2019_v17 }
0x10fd   :  { %v4678_v27 = vpop.eup %3887  ;;  %v2030_v33 = vmul.f32 1.442695, %v2023_v5 }
0x10fe   :  { %v2035_v7 = vsel %vm4987_vm10, %v4678_v27, 0.0 }
0x10ff   :  { %3889 = vpow2.f32 %v2030_v33  ;;  %2036 = vadd.xlane.f32.xlu1 %v2035_v7 }
0x1100   :  { %v2227_v9 = vpop.permute.xlu1 %2226 }
0x1105   :  { %v4682_v45 = vpop.eup %3889 }
0x1106   :  { %v2041_v8 = vsel %vm4988_vm11, %v4682_v45, 0.0 }
0x1107   :  { %2042 = vadd.xlane.f32.xlu1 %v2041_v8 }
0x110b   :  { %2322 = vrot.lane.b32.xlu0 %v4635_v28, %s4009_s9 }
0x110d   :  { %2222 = vrot.lane.b32.xlu2 %v4613_v25, %s4010_s13  ;;  %v2107_v41 = vpop.permute.xlu0 %2106 }
0x110e   :  { %3689 = vmatpush.msk.msrb.mxu1 %vm428_vm4, %v2107_v41 }
0x1110   :  { %3697 = vmatpush.xpose.msk.msra.mxu1 %vm210_vm2, %v2227_v9 }
0x1120   :  { %2318 = vrot.lane.b32.xlu1 %v4628_v24, %s4010_s13 }
0x1168   :  { %v2040_v21 = vpop.xlane.xlu2 %2039 }
0x1169   :  { %3891 = vrcp.f32 %v2040_v21  ;;  %v2085_v25 = vand.u32 2147483648, %v2040_v21  ;;  %v2083_v18 = vand.u32 2147483647, %v2040_v21  ;;  %vm2079_vm13 = vweird.f32 %v2040_v21 }
0x116a   :  { %v2034_v23 = vpop.xlane.xlu0 %2033 }
0x116b   :  { %3893 = vrcp.f32 %v2034_v23  ;;  %v2055_v32 = vand.u32 2147483648, %v2034_v23  ;;  %v2053_v37 = vand.u32 2147483647, %v2034_v23  ;;  %v2086_v39 = vor.u32 1.1754944e-38, %v2085_v25 }
0x116c   :  { %vm2084_vm3 = vcmp.eq.f32.partialorder %v2083_v18, 8.507059e+37  ;;  %vm2049_vm5 = vweird.f32 %v2034_v23 }
0x116d   :  { %v2056_v47 = vor.u32 1.1754944e-38, %v2055_v32  ;;  %vm2054_vm6 = vcmp.eq.f32.partialorder %v2053_v37, 8.507059e+37 }
0x116f   :  { %v3892_v11 = vpop.eup %3891 }
0x1170   :  { %v2075_v12 = vmul.f32 %v3892_v11, %v2040_v21  ;;  %vm2080_vm12 = vweird.f32 %v3892_v11 }
0x1171   :  { %v3894_v14 = vpop.eup %3893  ;;  %vm2081_vm15 = vmor %vm2079_vm13, %vm2080_vm12 }
0x1172   :  { %v2076_v15 = vsub.f32 1.0, %v2075_v12  ;;  %v2045_v19 = vmul.f32 %v3894_v14, %v2034_v23  ;;  %v2037_v22 = vpop.xlane.xlu1 %2036  ;;  %vm2050_vm14 = vweird.f32 %v3894_v14 }
0x1173   :  { %3895 = vrcp.f32 %v2037_v22  ;;  %vm2051_vm7 = vmor %vm2049_vm5, %vm2050_vm14  ;;  %v2070_v55 = vand.u32 2147483648, %v2037_v22  ;;  %v2068_v60 = vand.u32 2147483647, %v2037_v22  ;;  %vm2064_vm10 = vweird.f32 %v2037_v22 }
0x1174   :  { %v2077_v16 = vmul.f32 %v3892_v11, %v2076_v15  ;;  %v2046_v28 = vsub.f32 1.0, %v2045_v19  ;;  %vm4989_vm5 = vcmask 9216  }
0x1175   :  { %v2071_v2 = vor.u32 1.1754944e-38, %v2070_v55  ;;  %vm2069_vm12 = vcmp.eq.f32.partialorder %v2068_v60, 8.507059e+37  ;;  %v2536_v60 = vld.sshfl [vmem:[#allocation1] sm:$0xff pattern:$0x73625140] }
0x1176   :  { %v2078_v34 = vadd.f32 %v3892_v11, %v2077_v16  ;;  %v2047_v24 = vmul.f32 %v3894_v14, %v2046_v28 }
0x1178   :  { %v2082_v40 = vsel %vm2081_vm15, %v3892_v11, %v2078_v34  ;;  %v2048_v42 = vadd.f32 %v3894_v14, %v2047_v24 }
0x1179   :  { %v3896_v44 = vpop.eup %3895  ;;  %v2087_v46 = vsel %vm2084_vm3, %v2086_v39, %v2082_v40 }
0x117a   :  { %v2052_v48 = vsel %vm2051_vm7, %v3894_v14, %v2048_v42  ;;  %v2060_v49 = vmul.f32 %v3896_v44, %v2037_v22  ;;  %v2043_v51 = vpop.xlane.xlu1 %2042  ;;  %v2088_v52 = vmul.f32 %v4669_v0, %v2087_v46  ;;  %vm2065_vm8 = vweird.f32 %v3896_v44  ;;  %vm4990_vm7 = vmmov %vm4989_vm5 }
0x117b   :  { %v2057_v53 = vsel %vm2054_vm6, %v2056_v47, %v2052_v48  ;;  %3897 = vrcp.f32 %v2043_v51  ;;  %vm2066_vm11 = vmor %vm2064_vm10, %vm2065_vm8  ;;  %v2100_v29 = vand.u32 2147483648, %v2043_v51  ;;  %v2098_v17 = vand.u32 2147483647, %v2043_v51 }
0x117c   :  { %v2061_v43 = vsub.f32 1.0, %v2060_v49  ;;  %3694 = vmatmul.msk.f32.vlgmr.msra.gmra.mxu3 %vm424_vm9, %v2088_v52  ;;  %v2058_v54 = vmul.f32 %v4674_v4, %v2057_v53  ;;  %v2223_v4 = vpop.permute.xlu2 %2222  ;;  %vm2094_vm14 = vweird.f32 %v2043_v51  ;;  %vm4991_vm6 = vmmov %vm4989_vm5 }
0x117d   :  { %v2323_v58 = vpop.permute.xlu0 %2322  ;;  %v2101_v33 = vor.u32 1.1754944e-38, %v2100_v29  ;;  %vm2099_vm3 = vcmp.eq.f32.partialorder %v2098_v17, 8.507059e+37  ;;  %vm4992_vm8 = vmmov %vm4989_vm5 }
0x117e   :  { %v2062_v56 = vmul.f32 %v3896_v44, %v2061_v43  ;;  %3690 = vmatmul.msk.f32.vlgmr.msrb.gmra.mxu1 %vm424_vm9, %v2058_v54  ;;  %3703 = vmatpush.xpose.msk.msrb.mxu0 %vm210_vm2, %v2323_v58  ;;  %vm4993_vm10 = vmmov %vm4989_vm5 }
0x1180   :  { %v2063_v63 = vadd.f32 %v3896_v44, %v2062_v56 }
0x1181   :  { %v3898_v1 = vpop.eup %3897 }
0x1182   :  { %v2067_v59 = vsel %vm2066_vm11, %v3896_v44, %v2063_v63  ;;  %v2090_v3 = vmul.f32 %v3898_v1, %v2043_v51  ;;  %vm2095_vm13 = vweird.f32 %v3898_v1  ;;  %vm4994_vm11 = vmmov %vm4989_vm5 }
0x1183   :  { %v2072_v0 = vsel %vm2069_vm12, %v2071_v2, %v2067_v59  ;;  %vm2096_vm15 = vmor %vm2094_vm14, %vm2095_vm13 }
0x1184   :  { %v2091_v62 = vsub.f32 1.0, %v2090_v3  ;;  %3702 = vmatmul.msk.f32.vlgmr.msrb.gmra.mxu3 %vm210_vm2, %v4665_v50  ;;  %v2073_v61 = vmul.f32 %v4678_v27, %v2072_v0  ;;  %vm4995_vm12 = vmmov %vm4989_vm5 }
0x1185   :  { %vm4996_vm13 = vmmov %vm4989_vm5 }
0x1186   :  { %v2092_v26 = vmul.f32 %v3898_v1, %v2091_v62  ;;  %3692 = vmatmul.msk.f32.vlgmr.msra.gmra.mxu2 %vm424_vm9, %v2073_v61  ;;  %3698 = vmatmul.msk.f32.vlgmr.msra.gmra.mxu1 %vm210_vm2, %v2223_v4 }
0x1188   :  { %v2093_v5 = vadd.f32 %v3898_v1, %v2092_v26 }
0x118a   :  { %v2097_v7 = vsel %vm2096_vm15, %v3898_v1, %v2093_v5 }
0x118b   :  { %v2102_v8 = vsel %vm2099_vm3, %v2101_v33, %v2097_v7 }
0x118c   :  { %v2103_v50 = vmul.f32 %v4682_v45, %v2102_v8 }
0x118e   :  { %3696 = vmatmul.msk.f32.vlgmr.msra.gmra.mxu0 %vm424_vm9, %v2103_v50  ;;  %3700 = vmatmul.msk.f32.vlgmr.msrb.gmra.mxu2 %vm210_vm2, %v4667_v57 }
0x1192   :  { %v2319_v27 = vpop.permute.xlu1 %2318 }
0x1196   :  { %3704 = vmatmul.msk.f32.vlgmr.msrb.gmra.mxu0 %vm210_vm2, %v2319_v27 }
0x11fb   :  { %v4709_v41 = vpop.f32.mrf.mxu1 }
0x11ff   :  { %v4711_v9 = vpop.f32.mrf.mxu3 }
0x1203   :  { %v2249_v21 = vpop.f32.mrf.mxu1 }
0x1204   :  { %v2348_v23 = vmul.f32 0.35355338, %v2249_v21 }
0x1206   :  { %v2352_v11 = vsel %vm4989_vm5, %v2348_v23, -inf }
0x1207   :  { %v2313_v12 = vpop.f32.mrf.mxu3  ;;  %2353 = vmax.xlane.f32.xlu1 %v2352_v11 }
0x1208   :  { %v2350_v14 = vmul.f32 0.35355338, %v2313_v12 }
0x1209   :  { %v4714_v45 = vpop.f32.mrf.mxu2 }
0x120a   :  { %v2358_v15 = vsel %vm4990_vm7, %v2350_v14, -inf }
0x120b   :  { %2359 = vmax.xlane.f32.xlu2 %v2358_v15  ;;  %v4717_v57 = vpop.f32.mrf.mxu0 }
0x1211   :  { %v2281_v19 = vpop.f32.mrf.mxu2 }
0x1212   :  { %v2349_v22 = vmul.f32 0.35355338, %v2281_v19 }
0x1213   :  { %v2345_v16 = vpop.f32.mrf.mxu0 }
0x1214   :  { %v2355_v25 = vsel %vm4991_vm6, %v2349_v22, -inf  ;;  %v2351_v18 = vmul.f32 0.35355338, %v2345_v16 }
0x1215   :  { %2356 = vmax.xlane.f32.xlu0 %v2355_v25 }
0x1216   :  { %v2361_v28 = vsel %vm4992_vm8, %v2351_v18, -inf }
0x121d   :  { %2362 = vmax.xlane.f32.xlu0 %v2361_v28 }
0x127a   :  { %v2354_v32 = vpop.xlane.xlu1 %2353 }
0x127b   :  { %v2364_v34 = vsub.f32 %v2348_v23, %v2354_v32 }
0x127d   :  { %v2368_v24 = vmul.f32 1.442695, %v2364_v34 }
0x127e   :  { %v2360_v37 = vpop.xlane.xlu2 %2359 }
0x127f   :  { %3899 = vpow2.f32 %v2368_v24  ;;  %v2366_v39 = vsub.f32 %v2350_v14, %v2360_v37 }
0x1281   :  { %v2372_v40 = vmul.f32 1.442695, %v2366_v39 }
0x1283   :  { %3901 = vpow2.f32 %v2372_v40 }
0x1285   :  { %v4721_v42 = vpop.eup %3899 }
0x1286   :  { %v2376_v44 = vsel %vm4993_vm10, %v4721_v42, 0.0 }
0x1287   :  { %2377 = vadd.xlane.f32.xlu0 %v2376_v44 }
0x1288   :  { %v2357_v46 = vpop.xlane.xlu0 %2356 }
0x1289   :  { %v3902_v47 = vpop.eup %3901  ;;  %v2365_v48 = vsub.f32 %v2349_v22, %v2357_v46 }
0x128a   :  { %v2382_v49 = vsel %vm4994_vm11, %v3902_v47, 0.0 }
0x128b   :  { %v2370_v51 = vmul.f32 1.442695, %v2365_v48  ;;  %2383 = vadd.xlane.f32.xlu1 %v2382_v49 }
0x128d   :  { %3903 = vpow2.f32 %v2370_v51 }
0x1290   :  { %v2363_v52 = vpop.xlane.xlu0 %2362 }
0x1291   :  { %v2367_v53 = vsub.f32 %v2351_v18, %v2363_v52 }
0x1293   :  { %v4726_v43 = vpop.eup %3903  ;;  %v2374_v54 = vmul.f32 1.442695, %v2367_v53 }
0x1294   :  { %v2379_v55 = vsel %vm4995_vm12, %v4726_v43, 0.0 }
0x1295   :  { %3905 = vpow2.f32 %v2374_v54  ;;  %2380 = vadd.xlane.f32.xlu2 %v2379_v55 }
0x129b   :  { %v4730_v58 = vpop.eup %3905  ;;  %2508 = vrot.lane.b32.xlu0 %v4650_v36, %s4011_s17 }
0x129c   :  { %v2385_v56 = vsel %vm4996_vm13, %v4730_v58, 0.0 }
0x129d   :  { %2386 = vadd.xlane.f32.xlu2 %v2385_v56 }
0x12a3   :  { %2537 = vrot.lane.b32.xlu0 %v2536_v60, %s4011_s17 }
0x12a4   :  { %2479 = vrot.lane.b32.xlu1 %v4647_v35, %s4011_s17 }
0x12b5   :  { %2450 = vrot.lane.b32.xlu2 %v4643_v13, %s4011_s17 }
0x12fa   :  { %v2378_v63 = vpop.xlane.xlu0 %2377 }
0x12fb   :  { %3907 = vrcp.f32 %v2378_v63  ;;  %v2399_v50 = vand.u32 2147483648, %v2378_v63  ;;  %vm2393_vm6 = vweird.f32 %v2378_v63  ;;  %v2397_v21 = vand.u32 2147483647, %v2378_v63 }
0x12fd   :  { %v2400_v19 = vor.u32 1.1754944e-38, %v2399_v50  ;;  %vm2398_vm10 = vcmp.eq.f32.partialorder %v2397_v21, 8.507059e+37 }
0x12fe   :  { %v2384_v1 = vpop.xlane.xlu1 %2383 }
0x12ff   :  { %3909 = vrcp.f32 %v2384_v1  ;;  %v2429_v4 = vand.u32 2147483648, %v2384_v1  ;;  %v2427_v35 = vand.u32 2147483647, %v2384_v1  ;;  %vm2423_vm15 = vweird.f32 %v2384_v1 }
0x1301   :  { %v3908_v2 = vpop.eup %3907  ;;  %v2430_v13 = vor.u32 1.1754944e-38, %v2429_v4  ;;  %vm2428_vm7 = vcmp.eq.f32.partialorder %v2427_v35, 8.507059e+37 }
0x1302   :  { %v2389_v59 = vmul.f32 %v3908_v2, %v2378_v63  ;;  %vm2394_vm5 = vweird.f32 %v3908_v2  ;;  %v1885_v63 = vld [vmem:[%s4997_s19 + $0x8] sm:$0xff] }
0x1303   :  { %vm2395_vm8 = vmor %vm2393_vm6, %vm2394_vm5  ;;  %vm4998_vm6 = vcmask 9216  }
0x1304   :  { %v2390_v3 = vsub.f32 1.0, %v2389_v59 }
0x1305   :  { %v3910_v36 = vpop.eup %3909 }
0x1306   :  { %v2419_v0 = vmul.f32 %v3910_v36, %v2384_v1  ;;  %v2391_v29 = vmul.f32 %v3908_v2, %v2390_v3  ;;  %vm2424_vm14 = vweird.f32 %v3910_v36 }
0x1307   :  { %vm2425_vm3 = vmor %vm2423_vm15, %vm2424_vm14 }
0x1308   :  { %v2420_v62 = vsub.f32 1.0, %v2419_v0  ;;  %v2381_v61 = vpop.xlane.xlu2 %2380  ;;  %v2392_v33 = vadd.f32 %v3908_v2, %v2391_v29 }
0x1309   :  { %3911 = vrcp.f32 %v2381_v61  ;;  %v2414_v22 = vand.u32 2147483648, %v2381_v61  ;;  %v2412_v16 = vand.u32 2147483647, %v2381_v61  ;;  %vm2408_vm12 = vweird.f32 %v2381_v61 }
0x130a   :  { %v2421_v26 = vmul.f32 %v3910_v36, %v2420_v62  ;;  %v2396_v14 = vsel %vm2395_vm8, %v3908_v2, %v2392_v33  ;;  %vm4999_vm8 = vmmov %vm4998_vm6 }
0x130b   :  { %v2401_v18 = vsel %vm2398_vm10, %v2400_v19, %v2396_v14  ;;  %v2415_v37 = vor.u32 1.1754944e-38, %v2414_v22  ;;  %vm2413_vm14 = vcmp.eq.f32.partialorder %v2412_v16, 8.507059e+37  ;;  %vm5000_vm10 = vmmov %vm4998_vm6 }
0x130c   :  { %v2422_v17 = vadd.f32 %v3910_v36, %v2421_v26  ;;  %v2402_v46 = vmul.f32 %v4721_v42, %v2401_v18 }
0x130d   :  { %v2509_v5 = vpop.permute.xlu0 %2508 }
0x130e   :  { %v2426_v7 = vsel %vm2425_vm3, %v3910_v36, %v2422_v17  ;;  %3709 = vmatpush.msk.msra.mxu3 %vm428_vm4, %v2509_v5 }
0x130f   :  { %v3912_v8 = vpop.eup %3911  ;;  %v2431_v27 = vsel %vm2428_vm7, %v2430_v13, %v2426_v7 }
0x1310   :  { %v2404_v23 = vmul.f32 %v3912_v8, %v2381_v61  ;;  %v2387_v11 = vpop.xlane.xlu2 %2386  ;;  %v2432_v12 = vmul.f32 %v3902_v47, %v2431_v27  ;;  %vm2409_vm11 = vweird.f32 %v3912_v8 }
0x1311   :  { %3913 = vrcp.f32 %v2387_v11  ;;  %vm2410_vm13 = vmor %vm2408_vm12, %vm2409_vm11  ;;  %v2444_v51 = vand.u32 2147483648, %v2387_v11  ;;  %v2442_v53 = vand.u32 2147483647, %v2387_v11  ;;  %vm2438_vm3 = vweird.f32 %v2387_v11 }
0x1312   :  { %v2405_v15 = vsub.f32 1.0, %v2404_v23  ;;  %3710 = vmatmul.msk.f32.vlgmr.msra.gmra.mxu3 %vm424_vm9, %v2432_v12  ;;  %vm5001_vm11 = vmmov %vm4998_vm6 }
0x1313   :  { %v2445_v42 = vor.u32 1.1754944e-38, %v2444_v51  ;;  %vm2443_vm7 = vcmp.eq.f32.partialorder %v2442_v53, 8.507059e+37  ;;  %vm5002_vm12 = vmmov %vm4998_vm6 }
0x1314   :  { %v2406_v25 = vmul.f32 %v3912_v8, %v2405_v15 }
0x1315   :  { %v2538_v28 = vpop.permute.xlu0 %2537 }
0x1316   :  { %v2407_v32 = vadd.f32 %v3912_v8, %v2406_v25  ;;  %v2480_v34 = vpop.permute.xlu1 %2479  ;;  %3711 = vmatpush.msk.msra.mxu0 %vm428_vm4, %v2538_v28 }
0x1317   :  { %v3914_v24 = vpop.eup %3913  ;;  %3707 = vmatpush.msk.msra.mxu2 %vm428_vm4, %v2480_v34 }
0x1318   :  { %v2411_v39 = vsel %vm2410_vm13, %v3912_v8, %v2407_v32  ;;  %v2434_v40 = vmul.f32 %v3914_v24, %v2387_v11  ;;  %v2451_v44 = vpop.permute.xlu2 %2450  ;;  %vm2439_vm15 = vweird.f32 %v3914_v24  ;;  %vm5003_vm13 = vmmov %vm4998_vm6 }
0x1319   :  { %v2416_v47 = vsel %vm2413_vm14, %v2415_v37, %v2411_v39  ;;  %3705 = vmatpush.msk.msrb.mxu1 %vm428_vm4, %v2451_v44  ;;  %vm2440_vm5 = vmor %vm2438_vm3, %vm2439_vm15 }
0x131a   :  { %v2435_v48 = vsub.f32 1.0, %v2434_v40  ;;  %3706 = vmatmul.msk.f32.vlgmr.msrb.gmra.mxu1 %vm424_vm9, %v2402_v46  ;;  %v2417_v49 = vmul.f32 %v4726_v43, %v2416_v47  ;;  %v1884_v43 = vld [vmem:[%s4997_s19] sm:$0xff]  ;;  %vm5004_vm14 = vmmov %vm4998_vm6 }
0x131b   :  { %2593 = vmatpush.msra.mxu1 %v1885_v63  ;;  %2627 = vmatpush.msrb.mxu2 %v1884_v43  ;;  %vm5005_vm15 = vmmov %vm4998_vm6 }
0x131c   :  { %v2436_v52 = vmul.f32 %v3914_v24, %v2435_v48  ;;  %3708 = vmatmul.msk.f32.vlgmr.msra.gmra.mxu2 %vm424_vm9, %v2417_v49 }
0x131e   :  { %v2437_v54 = vadd.f32 %v3914_v24, %v2436_v52 }
0x1320   :  { %v2441_v55 = vsel %vm2440_vm5, %v3914_v24, %v2437_v54 }
0x1321   :  { %v2446_v56 = vsel %vm2443_vm7, %v2445_v42, %v2441_v55 }
0x1322   :  { %v2447_v60 = vmul.f32 %v4730_v58, %v2446_v56 }
0x1324   :  { %3712 = vmatmul.msk.f32.vlgmr.msra.gmra.mxu0 %vm424_vm9, %v2447_v60 }
0x1395   :  { %v2532_v1 = vpop.f32.mrf.mxu3 }
0x1396   :  { %2572 = vst [vmem:[#allocation1 + $0x2] ss:$4 sm:$0xff] %v2532_v1 }
0x1397   :  { %v2474_v2 = vpop.f32.mrf.mxu1 }
0x1398   :  { %2568 = vst [vmem:[#allocation1] ss:$4 sm:$0xff] %v2474_v2 }
0x139f   :  { %v2503_v59 = vpop.f32.mrf.mxu2 }
0x13a0   :  { %2570 = vst [vmem:[#allocation1 + $0x1] ss:$4 sm:$0xff] %v2503_v59 }
0x13a1   :  { %v2561_v36 = vpop.f32.mrf.mxu0 }
0x13a2   :  { %2574 = vst [vmem:[#allocation1 + $0x3] ss:$4 sm:$0xff] %v2561_v36 }
0x13a9   :  { %v2575_v3 = vld.sshfl [vmem:[#allocation1] sm:$0xff pattern:$0x73625140] }
0x13aa   :  { %3713 = vmatmul.msk.f32.vlgmr.msra.gmra.mxu1 %vm210_vm2, %v2575_v3  ;;  %2602 = vst [vmem:[#allocation1] ss:$4 sm:$0xff] %v4709_v41 }
0x13ab   :  { %2604 = vst [vmem:[#allocation1 + $0x1] ss:$4 sm:$0xff] %v4714_v45 }
0x13ac   :  { %2606 = vst [vmem:[#allocation1 + $0x2] ss:$4 sm:$0xff] %v4711_v9 }
0x13ad   :  { %2608 = vst [vmem:[#allocation1 + $0x3] ss:$4 sm:$0xff] %v4717_v57 }
0x13b4   :  { %v2609_v58 = vld.sshfl [vmem:[#allocation1] sm:$0xff pattern:$0x73625140] }
0x13b5   :  { %3714 = vmatmul.msk.f32.vlgmr.msrb.gmra.mxu2 %vm210_vm2, %v2609_v58  ;;  %2632 = vst [vmem:[#allocation1] ss:$4 sm:$0xff] %v4583_v30 }
0x13bc   :  { %v2633_v0 = vld.sshfl [vmem:[#allocation1] sm:$0xff pattern:$0x73625140] }
0x13bd   :  { %2634 = vrot.lane.b32.xlu0 %v2633_v0, %s4012_s21  ;;  %2636 = vst [vmem:[#allocation1] ss:$4 sm:$0xff] %v4583_v30 }
0x13c4   :  { %v2637_v62 = vld.sshfl [vmem:[#allocation1] sm:$0xff pattern:$0x73625140] }
0x13c5   :  { %2638 = vrot.lane.b32.xlu1 %v2637_v62, %s4013_s25  ;;  %2664 = vst [vmem:[#allocation1] ss:$4 sm:$0xff] %v4587_v31 }
0x13cc   :  { %v2665_v41 = vld.sshfl [vmem:[#allocation1] sm:$0xff pattern:$0x73625140] }
0x13cd   :  { %2668 = vst [vmem:[#allocation1] ss:$4 sm:$0xff] %v4587_v31 }
0x13d4   :  { %v2669_v9 = vld.sshfl [vmem:[#allocation1] sm:$0xff pattern:$0x73625140] }
0x13d5   :  { %2696 = vst [vmem:[#allocation1] ss:$4 sm:$0xff] %v4592_v6 }
0x13dc   :  { %v2697_v45 = vld.sshfl [vmem:[#allocation1] sm:$0xff pattern:$0x73625140] }
0x13dd   :  { %2700 = vst [vmem:[#allocation1] ss:$4 sm:$0xff] %v4592_v6 }
0x13e4   :  { %v2701_v57 = vld.sshfl [vmem:[#allocation1] sm:$0xff pattern:$0x73625140] }
0x13e5   :  { %2702 = vrot.lane.b32.xlu0 %v2701_v57, %s4013_s25  ;;  %2728 = vst [vmem:[#allocation1] ss:$4 sm:$0xff] %v4597_v20 }
0x13ec   :  { %v2729_v61 = vld.sshfl [vmem:[#allocation1] sm:$0xff pattern:$0x73625140] }
0x13ed   :  { %2730 = vrot.lane.b32.xlu1 %v2729_v61, %s4012_s21  ;;  %2732 = vst [vmem:[#allocation1] ss:$4 sm:$0xff] %v4597_v20 }
0x13f4   :  { %v2733_v4 = vld.sshfl [vmem:[#allocation1] sm:$0xff pattern:$0x73625140] }
0x13f5   :  { %2666 = vrot.lane.b32.xlu1 %v2665_v41, %s4012_s21  ;;  %2734 = vrot.lane.b32.xlu2 %v2733_v4, %s4013_s25  ;;  %2860 = vst [vmem:[#allocation1] ss:$4 sm:$0xff] %v4583_v30 }
0x13fc   :  { %v2861_v29 = vld.sshfl [vmem:[#allocation1] sm:$0xff pattern:$0x73625140] }
0x13fd   :  { %2670 = vrot.lane.b32.xlu2 %v2669_v9, %s4013_s25  ;;  %2889 = vst [vmem:[#allocation1] ss:$4 sm:$0xff] %v4587_v31 }
0x1404   :  { %v4777_v26 = vld.sshfl [vmem:[#allocation1] sm:$0xff pattern:$0x73625140] }
0x1405   :  { %2698 = vrot.lane.b32.xlu2 %v2697_v45, %s4012_s21  ;;  %2918 = vst [vmem:[#allocation1] ss:$4 sm:$0xff] %v4592_v6 }
0x140c   :  { %v4781_v35 = vld.sshfl [vmem:[#allocation1] sm:$0xff pattern:$0x73625140] }
0x140d   :  { %2947 = vst [vmem:[#allocation1] ss:$4 sm:$0xff] %v4597_v20 }
0x1414   :  { %v2948_v59 = vld.sshfl [vmem:[#allocation1] sm:$0xff pattern:$0x73625140] }
0x1427   :  { %v4793_v12 = vpop.f32.mrf.mxu1 }
0x142f   :  { %v2635_v13 = vpop.permute.xlu0 %2634 }
0x1437   :  { %v2639_v17 = vpop.permute.xlu1 %2638 }
0x1438   :  { %3715 = vmatpush.xpose.msk.msrb.mxu3 %vm210_vm2, %v2639_v17  ;;  %v4795_v14 = vpop.f32.mrf.mxu2 }
0x143b   :  { %3716 = vmatmul.msk.f32.vlgmr.msrb.gmra.mxu3 %vm210_vm2, %v2635_v13 }
0x144f   :  { %v2735_v5 = vpop.permute.xlu2 %2734 }
0x1450   :  { %3721 = vmatpush.xpose.msk.msra.mxu2 %vm210_vm2, %v2735_v5 }
0x1457   :  { %v2703_v33 = vpop.permute.xlu0 %2702  ;;  %v2671_v7 = vpop.permute.xlu2 %2670 }
0x1458   :  { %3717 = vmatpush.xpose.msk.msrb.mxu0 %vm210_vm2, %v2671_v7  ;;  %3719 = vmatpush.xpose.msk.msrb.mxu1 %vm210_vm2, %v2703_v33 }
0x145f   :  { %v2731_v8 = vpop.permute.xlu1 %2730  ;;  %v2699_v50 = vpop.permute.xlu2 %2698 }
0x1460   :  { %3720 = vmatmul.msk.f32.vlgmr.msrb.gmra.mxu1 %vm210_vm2, %v2699_v50  ;;  %3722 = vmatmul.msk.f32.vlgmr.msra.gmra.mxu2 %vm210_vm2, %v2731_v8 }
0x1467   :  { %v2667_v27 = vpop.permute.xlu1 %2666 }
0x1468   :  { %3718 = vmatmul.msk.f32.vlgmr.msrb.gmra.mxu0 %vm210_vm2, %v2667_v27 }
0x14be   :  { %v2661_v21 = vpop.f32.mrf.mxu3 }
0x14bf   :  { %v2760_v23 = vmul.f32 0.35355338, %v2661_v21 }
0x14c1   :  { %v2764_v11 = vsel %vm4998_vm6, %v2760_v23, -inf }
0x14c2   :  { %2765 = vmax.xlane.f32.xlu0 %v2764_v11 }
0x14dd   :  { %v2725_v15 = vpop.f32.mrf.mxu1 }
0x14de   :  { %v2762_v19 = vmul.f32 0.35355338, %v2725_v15 }
0x14e0   :  { %v2770_v22 = vsel %vm4999_vm8, %v2762_v19, -inf }
0x14e1   :  { %2771 = vmax.xlane.f32.xlu0 %v2770_v22 }
0x14e3   :  { %v2757_v25 = vpop.f32.mrf.mxu2 }
0x14e4   :  { %v2763_v16 = vmul.f32 0.35355338, %v2757_v25 }
0x14e5   :  { %v2693_v18 = vpop.f32.mrf.mxu0 }
0x14e6   :  { %v2761_v28 = vmul.f32 0.35355338, %v2693_v18  ;;  %v2773_v32 = vsel %vm5000_vm10, %v2763_v16, -inf }
0x14e7   :  { %2774 = vmax.xlane.f32.xlu1 %v2773_v32 }
0x14e8   :  { %v2767_v34 = vsel %vm5001_vm11, %v2761_v28, -inf }
0x14e9   :  { %2768 = vmax.xlane.f32.xlu2 %v2767_v34 }
0x1501   :  { %2862 = vrot.lane.b32.xlu2 %v2861_v29, %s4014_s15 }
0x1535   :  { %v2766_v24 = vpop.xlane.xlu0 %2765 }
0x1536   :  { %v2776_v37 = vsub.f32 %v2760_v23, %v2766_v24 }
0x1538   :  { %v2780_v39 = vmul.f32 1.442695, %v2776_v37 }
0x153a   :  { %3915 = vpow2.f32 %v2780_v39 }
0x1540   :  { %v3916_v40 = vpop.eup %3915 }
0x1541   :  { %v2788_v44 = vsel %vm5002_vm12, %v3916_v40, 0.0 }
0x1542   :  { %2789 = vadd.xlane.f32.xlu1 %v2788_v44 }
0x1554   :  { %v2772_v46 = vpop.xlane.xlu0 %2771 }
0x1555   :  { %v2778_v47 = vsub.f32 %v2762_v19, %v2772_v46 }
0x1557   :  { %v2784_v48 = vmul.f32 1.442695, %v2778_v47 }
0x1559   :  { %3917 = vpow2.f32 %v2784_v48 }
0x155a   :  { %v2775_v49 = vpop.xlane.xlu1 %2774 }
0x155b   :  { %v2779_v51 = vsub.f32 %v2763_v16, %v2775_v49 }
0x155c   :  { %v2769_v52 = vpop.xlane.xlu2 %2768 }
0x155d   :  { %v2786_v53 = vmul.f32 1.442695, %v2779_v51  ;;  %v2777_v54 = vsub.f32 %v2761_v28, %v2769_v52 }
0x155f   :  { %v4802_v42 = vpop.eup %3917  ;;  %3919 = vpow2.f32 %v2786_v53  ;;  %v2782_v55 = vmul.f32 1.442695, %v2777_v54 }
0x1560   :  { %v2794_v56 = vsel %vm5003_vm13, %v4802_v42, 0.0 }
0x1561   :  { %3921 = vpow2.f32 %v2782_v55  ;;  %2795 = vadd.xlane.f32.xlu1 %v2794_v56 }
0x1564   :  { %v2863_v60 = vpop.permute.xlu2 %2862 }
0x1565   :  { %v4806_v63 = vpop.eup %3919  ;;  %3723 = vmatpush.msk.msra.mxu3 %vm428_vm4, %v2863_v60 }
0x1566   :  { %v2797_v43 = vsel %vm5004_vm14, %v4806_v63, 0.0 }
0x1567   :  { %v4811_v1 = vpop.eup %3921  ;;  %2798 = vadd.xlane.f32.xlu2 %v2797_v43 }
0x1568   :  { %v2791_v2 = vsel %vm5005_vm15, %v4811_v1, 0.0 }
0x1569   :  { %2792 = vadd.xlane.f32.xlu0 %v2791_v2  ;;  %v1886_v2 = vld [vmem:[%s4997_s19 + $0x10] sm:$0xff] }
0x156a   :  { %3005 = vmatpush.msrb.mxu3 %v1886_v2 }
0x157a   :  { %2891 = vrot.lane.b32.xlu1 %v4777_v26, %s4014_s15 }
0x157d   :  { %2949 = vrot.lane.b32.xlu0 %v2948_v59, %s4014_s15 }
0x157f   :  { %2920 = vrot.lane.b32.xlu2 %v4781_v35, %s4014_s15 }
0x15b5   :  { %v2790_v36 = vpop.xlane.xlu1 %2789 }
0x15b6   :  { %3923 = vrcp.f32 %v2790_v36  ;;  %v2811_v62 = vand.u32 2147483648, %v2790_v36  ;;  %v2809_v9 = vand.u32 2147483647, %v2790_v36  ;;  %vm2805_vm5 = vweird.f32 %v2790_v36 }
0x15b8   :  { %v2812_v57 = vor.u32 1.1754944e-38, %v2811_v62  ;;  %vm2810_vm6 = vcmp.eq.f32.partialorder %v2809_v9, 8.507059e+37 }
0x15bc   :  { %v3924_v3 = vpop.eup %3923 }
0x15bd   :  { %v2801_v58 = vmul.f32 %v3924_v3, %v2790_v36  ;;  %vm2806_vm3 = vweird.f32 %v3924_v3 }
0x15be   :  { %vm2807_vm7 = vmor %vm2805_vm5, %vm2806_vm3 }
0x15bf   :  { %v2802_v0 = vsub.f32 1.0, %v2801_v58 }
0x15c1   :  { %v2803_v41 = vmul.f32 %v3924_v3, %v2802_v0 }
0x15c3   :  { %v2804_v45 = vadd.f32 %v3924_v3, %v2803_v41 }
0x15c5   :  { %v2808_v61 = vsel %vm2807_vm7, %v3924_v3, %v2804_v45 }
0x15c6   :  { %v2813_v4 = vsel %vm2810_vm6, %v2812_v57, %v2808_v61 }
0x15c7   :  { %v2814_v29 = vmul.f32 %v3916_v40, %v2813_v4 }
0x15c9   :  { %3724 = vmatmul.msk.f32.vlgmr.msra.gmra.mxu3 %vm424_vm9, %v2814_v29 }
0x15d4   :  { %v2796_v26 = vpop.xlane.xlu1 %2795 }
0x15d5   :  { %3925 = vrcp.f32 %v2796_v26  ;;  %v2841_v7 = vand.u32 2147483648, %v2796_v26  ;;  %v2839_v50 = vand.u32 2147483647, %v2796_v26  ;;  %vm2835_vm10 = vweird.f32 %v2796_v26 }
0x15d7   :  { %v2842_v19 = vor.u32 1.1754944e-38, %v2841_v7  ;;  %vm2840_vm12 = vcmp.eq.f32.partialorder %v2839_v50, 8.507059e+37 }
0x15da   :  { %v2799_v35 = vpop.xlane.xlu2 %2798 }
0x15db   :  { %v3926_v17 = vpop.eup %3925  ;;  %3927 = vrcp.f32 %v2799_v35  ;;  %v2856_v28 = vand.u32 2147483648, %v2799_v35  ;;  %vm2850_vm14 = vweird.f32 %v2799_v35  ;;  %v2854_v37 = vand.u32 2147483647, %v2799_v35 }
0x15dc   :  { %v2831_v13 = vmul.f32 %v3926_v17, %v2796_v26  ;;  %v2793_v5 = vpop.xlane.xlu0 %2792  ;;  %vm2836_vm8 = vweird.f32 %v3926_v17 }
0x15dd   :  { %3929 = vrcp.f32 %v2793_v5  ;;  %vm2837_vm11 = vmor %vm2835_vm10, %vm2836_vm8  ;;  %v2826_v39 = vand.u32 2147483648, %v2793_v5  ;;  %v2824_v46 = vand.u32 2147483647, %v2793_v5  ;;  %v2857_v48 = vor.u32 1.1754944e-38, %v2856_v28 }
0x15de   :  { %v2832_v33 = vsub.f32 1.0, %v2831_v13  ;;  %vm2820_vm5 = vweird.f32 %v2793_v5  ;;  %vm2855_vm7 = vcmp.eq.f32.partialorder %v2854_v37, 8.507059e+37  ;;  %vm5006_vm10 = vcmask 9216  }
0x15df   :  { %v2827_v51 = vor.u32 1.1754944e-38, %v2826_v39  ;;  %vm2825_vm8 = vcmp.eq.f32.partialorder %v2824_v46, 8.507059e+37 }
0x15e0   :  { %v2833_v8 = vmul.f32 %v3926_v17, %v2832_v33 }
0x15e1   :  { %v3928_v27 = vpop.eup %3927 }
0x15e2   :  { %v2834_v21 = vadd.f32 %v3926_v17, %v2833_v8  ;;  %v2846_v23 = vmul.f32 %v3928_v27, %v2799_v35  ;;  %v2921_v11 = vpop.permute.xlu2 %2920  ;;  %vm2851_vm13 = vweird.f32 %v3928_v27 }
0x15e3   :  { %v3930_v15 = vpop.eup %3929  ;;  %3727 = vmatpush.msk.msra.mxu1 %vm428_vm4, %v2921_v11  ;;  %vm2852_vm3 = vmor %vm2850_vm14, %vm2851_vm13 }
0x15e4   :  { %v2838_v22 = vsel %vm2837_vm11, %v3926_v17, %v2834_v21  ;;  %v2847_v25 = vsub.f32 1.0, %v2846_v23  ;;  %v2816_v16 = vmul.f32 %v3930_v15, %v2793_v5  ;;  %vm2821_vm15 = vweird.f32 %v3930_v15  ;;  %vm5007_vm11 = vmmov %vm5006_vm10 }
0x15e5   :  { %v2843_v18 = vsel %vm2840_vm12, %v2842_v19, %v2838_v22  ;;  %vm2822_vm6 = vmor %vm2820_vm5, %vm2821_vm15 }
0x15e6   :  { %v2848_v32 = vmul.f32 %v3928_v27, %v2847_v25  ;;  %v2817_v34 = vsub.f32 1.0, %v2816_v16  ;;  %v2844_v24 = vmul.f32 %v4802_v42, %v2843_v18  ;;  %vm5008_vm12 = vmmov %vm5006_vm10 }
0x15e7   :  { %vm5009_vm13 = vmmov %vm5006_vm10 }
0x15e8   :  { %v2849_v40 = vadd.f32 %v3928_v27, %v2848_v32  ;;  %v2818_v44 = vmul.f32 %v3930_v15, %v2817_v34  ;;  %3728 = vmatmul.msk.f32.vlgmr.msra.gmra.mxu1 %vm424_vm9, %v2844_v24  ;;  %vm5010_vm14 = vmmov %vm5006_vm10 }
0x15e9   :  { %vm5011_vm15 = vmmov %vm5006_vm10 }
0x15ea   :  { %v2853_v47 = vsel %vm2852_vm3, %v3928_v27, %v2849_v40  ;;  %v2819_v49 = vadd.f32 %v3930_v15, %v2818_v44  ;;  %vm5012_vm3 = vmmov %vm5006_vm10 }
0x15eb   :  { %v2858_v52 = vsel %vm2855_vm7, %v2857_v48, %v2853_v47  ;;  %vm5013_vm5 = vmmov %vm5012_vm3 }
0x15ec   :  { %v2823_v53 = vsel %vm2822_vm6, %v3930_v15, %v2819_v49  ;;  %v2892_v54 = vpop.permute.xlu1 %2891  ;;  %v2859_v60 = vmul.f32 %v4806_v63, %v2858_v52 }
0x15ed   :  { %v2828_v42 = vsel %vm2825_vm8, %v2827_v51, %v2823_v53  ;;  %3725 = vmatpush.msk.msra.mxu0 %vm428_vm4, %v2892_v54 }
0x15ee   :  { %v2829_v55 = vmul.f32 %v4811_v1, %v2828_v42 }
0x15ef   :  { %v2950_v56 = vpop.permute.xlu0 %2949 }
0x15f0   :  { %3726 = vmatmul.msk.f32.vlgmr.msra.gmra.mxu0 %vm424_vm9, %v2829_v55  ;;  %3729 = vmatpush.msk.msrb.mxu2 %vm428_vm4, %v2950_v56 }
0x15f1   :  { %3730 = vmatmul.msk.f32.vlgmr.msrb.gmra.mxu2 %vm424_vm9, %v2859_v60 }
0x164c   :  { %v2886_v43 = vpop.f32.mrf.mxu3 }
0x164d   :  { %2980 = vst [vmem:[#allocation1] ss:$4 sm:$0xff] %v2886_v43 }
0x1665   :  { %v2944_v59 = vpop.f32.mrf.mxu1 }
0x1666   :  { %2984 = vst [vmem:[#allocation1 + $0x2] ss:$4 sm:$0xff] %v2944_v59 }
0x166d   :  { %v2915_v36 = vpop.f32.mrf.mxu0 }
0x166e   :  { %2982 = vst [vmem:[#allocation1 + $0x1] ss:$4 sm:$0xff] %v2915_v36 }
0x1674   :  { %v2973_v3 = vpop.f32.mrf.mxu2 }
0x1675   :  { %2986 = vst [vmem:[#allocation1 + $0x3] ss:$4 sm:$0xff] %v2973_v3 }
0x167c   :  { %v2987_v1 = vld.sshfl [vmem:[#allocation1] sm:$0xff pattern:$0x73625140] }
0x167d   :  { %3731 = vmatmul.msk.f32.vlgmr.msrb.gmra.mxu3 %vm210_vm2, %v2987_v1  ;;  %3011 = vst [vmem:[#allocation1] ss:$4 sm:$0xff] %v4583_v30 }
0x1684   :  { %v3012_v63 = vld.sshfl [vmem:[#allocation1] sm:$0xff pattern:$0x73625140] }
0x1685   :  { %3015 = vst [vmem:[#allocation1] ss:$4 sm:$0xff] %v4583_v30 }
0x168c   :  { %v3016_v58 = vld.sshfl [vmem:[#allocation1] sm:$0xff pattern:$0x73625140] }
0x168d   :  { %3043 = vst [vmem:[#allocation1] ss:$4 sm:$0xff] %v4587_v31 }
0x1694   :  { %v3044_v0 = vld.sshfl [vmem:[#allocation1] sm:$0xff pattern:$0x73625140] }
0x1695   :  { %3047 = vst [vmem:[#allocation1] ss:$4 sm:$0xff] %v4587_v31 }
0x169c   :  { %v3048_v62 = vld.sshfl [vmem:[#allocation1] sm:$0xff pattern:$0x73625140] }
0x169d   :  { %3075 = vst [vmem:[#allocation1] ss:$4 sm:$0xff] %v4592_v6 }
0x16a4   :  { %v3076_v41 = vld.sshfl [vmem:[#allocation1] sm:$0xff pattern:$0x73625140] }
0x16a5   :  { %3079 = vst [vmem:[#allocation1] ss:$4 sm:$0xff] %v4592_v6 }
0x16ac   :  { %v3080_v9 = vld.sshfl [vmem:[#allocation1] sm:$0xff pattern:$0x73625140] }
0x16ad   :  { %3081 = vrot.lane.b32.xlu0 %v3080_v9, %s4016_s18  ;;  %3107 = vst [vmem:[#allocation1] ss:$4 sm:$0xff] %v4597_v20 }
0x16b4   :  { %v3108_v45 = vld.sshfl [vmem:[#allocation1] sm:$0xff pattern:$0x73625140] }
0x16b5   :  { %3077 = vrot.lane.b32.xlu0 %v3076_v41, %s4015_s16  ;;  %3109 = vrot.lane.b32.xlu1 %v3108_v45, %s4015_s16  ;;  %3111 = vst [vmem:[#allocation1] ss:$4 sm:$0xff] %v4597_v20 }
0x16bc   :  { %v3112_v57 = vld.sshfl [vmem:[#allocation1] sm:$0xff pattern:$0x73625140] }
0x16bd   :  { %3049 = vrot.lane.b32.xlu0 %v3048_v62, %s4016_s18  ;;  %3013 = vrot.lane.b32.xlu1 %v3012_v63, %s4015_s16  ;;  %3239 = vst [vmem:[#allocation1] ss:$4 sm:$0xff] %v4583_v30 }
0x16be   :  { %3113 = vrot.lane.b32.xlu2 %v3112_v57, %s4016_s18 }
0x16c4   :  { %v4847_v61 = vld.sshfl [vmem:[#allocation1] sm:$0xff pattern:$0x73625140] }
0x16c5   :  { %3268 = vst [vmem:[#allocation1] ss:$4 sm:$0xff] %v4587_v31 }
0x16c6   :  { %3017 = vrot.lane.b32.xlu2 %v3016_v58, %s4016_s18 }
0x16cc   :  { %v4851_v4 = vld.sshfl [vmem:[#allocation1] sm:$0xff pattern:$0x73625140] }
0x16cd   :  { %3297 = vst [vmem:[#allocation1] ss:$4 sm:$0xff] %v4592_v6 }
0x16ce   :  { %3045 = vrot.lane.b32.xlu2 %v3044_v0, %s4015_s16 }
0x16d4   :  { %v4855_v29 = vld.sshfl [vmem:[#allocation1] sm:$0xff pattern:$0x73625140] }
0x16d5   :  { %3326 = vst [vmem:[#allocation1] ss:$4 sm:$0xff] %v4597_v20 }
0x16dc   :  { %v3327_v56 = vld.sshfl [vmem:[#allocation1] sm:$0xff pattern:$0x73625140] }
0x1700   :  { %v4866_v5 = vpop.f32.mrf.mxu3 }
0x1718   :  { %v3114_v26 = vpop.permute.xlu2 %3113 }
0x1719   :  { %3738 = vmatpush.xpose.msk.msra.mxu3 %vm210_vm2, %v3114_v26 }
0x171f   :  { %v3082_v30 = vpop.permute.xlu0 %3081 }
0x1720   :  { %v3018_v35 = vpop.permute.xlu2 %3017  ;;  %3736 = vmatpush.xpose.msk.msra.mxu2 %vm210_vm2, %v3082_v30 }
0x1721   :  { %3732 = vmatpush.xpose.msk.msrb.mxu0 %vm210_vm2, %v3018_v35 }
0x1727   :  { %v3078_v31 = vpop.permute.xlu0 %3077  ;;  %v3110_v17 = vpop.permute.xlu1 %3109 }
0x1728   :  { %3737 = vmatmul.msk.f32.vlgmr.msra.gmra.mxu2 %vm210_vm2, %v3078_v31  ;;  %3739 = vmatmul.msk.f32.vlgmr.msra.gmra.mxu3 %vm210_vm2, %v3110_v17  ;;  %v3046_v20 = vpop.permute.xlu2 %3045 }
0x172f   :  { %v3050_v6 = vpop.permute.xlu0 %3049  ;;  %v3014_v13 = vpop.permute.xlu1 %3013 }
0x1730   :  { %3733 = vmatmul.msk.f32.vlgmr.msrb.gmra.mxu0 %vm210_vm2, %v3014_v13  ;;  %3734 = vmatpush.xpose.msk.msrb.mxu1 %vm210_vm2, %v3050_v6 }
0x1733   :  { %3735 = vmatmul.msk.f32.vlgmr.msrb.gmra.mxu1 %vm210_vm2, %v3046_v20 }
0x17ab   :  { %v3104_v33 = vpop.f32.mrf.mxu2  ;;  %v3136_v7 = vpop.f32.mrf.mxu3 }
0x17ac   :  { %v3141_v8 = vmul.f32 0.35355338, %v3104_v33  ;;  %v3142_v50 = vmul.f32 0.35355338, %v3136_v7 }
0x17ad   :  { %v3040_v27 = vpop.f32.mrf.mxu0 }
0x17ae   :  { %v3139_v21 = vmul.f32 0.35355338, %v3040_v27  ;;  %v3149_v23 = vsel %vm5006_vm10, %v3141_v8, -inf  ;;  %v3152_v11 = vsel %vm5007_vm11, %v3142_v50, -inf }
0x17af   :  { %3150 = vmax.xlane.f32.xlu0 %v3149_v23  ;;  %3153 = vmax.xlane.f32.xlu1 %v3152_v11 }
0x17b0   :  { %v3072_v15 = vpop.f32.mrf.mxu1  ;;  %v3143_v19 = vsel %vm5008_vm12, %v3139_v21, -inf }
0x17b1   :  { %3144 = vmax.xlane.f32.xlu2 %v3143_v19  ;;  %v3140_v22 = vmul.f32 0.35355338, %v3072_v15 }
0x17b3   :  { %v3146_v25 = vsel %vm5009_vm13, %v3140_v22, -inf }
0x17b7   :  { %3147 = vmax.xlane.f32.xlu0 %v3146_v25 }
0x1822   :  { %v3151_v16 = vpop.xlane.xlu0 %3150  ;;  %v3154_v18 = vpop.xlane.xlu1 %3153 }
0x1823   :  { %v3158_v28 = vsub.f32 %v3142_v50, %v3154_v18  ;;  %v3157_v44 = vsub.f32 %v3141_v8, %v3151_v16 }
0x1824   :  { %v3145_v32 = vpop.xlane.xlu2 %3144 }
0x1825   :  { %v3165_v34 = vmul.f32 1.442695, %v3158_v28  ;;  %v3155_v24 = vsub.f32 %v3139_v21, %v3145_v32  ;;  %v3163_v52 = vmul.f32 1.442695, %v3157_v44 }
0x1827   :  { %v3159_v37 = vmul.f32 1.442695, %v3155_v24  ;;  %3931 = vpow2.f32 %v3165_v34 }
0x1829   :  { %3933 = vpow2.f32 %v3159_v37 }
0x182a   :  { %v3148_v39 = vpop.xlane.xlu0 %3147 }
0x182b   :  { %v3156_v40 = vsub.f32 %v3140_v22, %v3148_v39 }
0x182d   :  { %v3161_v46 = vmul.f32 1.442695, %v3156_v40  ;;  %v3932_v47 = vpop.eup %3931 }
0x182e   :  { %v3176_v49 = vsel %vm5010_vm14, %v3932_v47, 0.0 }
0x182f   :  { %v4872_v48 = vpop.eup %3933  ;;  %3935 = vpow2.f32 %v3161_v46  ;;  %3177 = vadd.xlane.f32.xlu2 %v3176_v49 }
0x1830   :  { %v3167_v51 = vsel %vm5011_vm15, %v4872_v48, 0.0  ;;  %3937 = vpow2.f32 %v3163_v52  ;;  %v1887_v52 = vld [vmem:[%s4997_s19 + $0x18] sm:$0xff] }
0x1831   :  { %3168 = vadd.xlane.f32.xlu0 %v3167_v51 }
0x1835   :  { %v4877_v53 = vpop.eup %3935 }
0x1836   :  { %v3170_v54 = vsel %vm5012_vm3, %v4877_v53, 0.0  ;;  %v4881_v42 = vpop.eup %3937 }
0x1837   :  { %3171 = vadd.xlane.f32.xlu1 %v3170_v54  ;;  %v3173_v55 = vsel %vm5013_vm5, %v4881_v42, 0.0 }
0x183f   :  { %3174 = vadd.xlane.f32.xlu1 %v3173_v55 }
0x1845   :  { %3328 = vrot.lane.b32.xlu0 %v3327_v56, %s4017_s22 }
0x1847   :  { %3299 = vrot.lane.b32.xlu2 %v4855_v29, %s4017_s22 }
0x184d   :  { %3270 = vrot.lane.b32.xlu0 %v4851_v4, %s4017_s22 }
0x1858   :  { %3241 = vrot.lane.b32.xlu1 %v4847_v61, %s4017_s22 }
0x18a2   :  { %v3178_v60 = vpop.xlane.xlu2 %3177 }
0x18a3   :  { %3939 = vrcp.f32 %v3178_v60  ;;  %v3235_v63 = vand.u32 2147483648, %v3178_v60  ;;  %v3233_v0 = vand.u32 2147483647, %v3178_v60  ;;  %vm3229_vm6 = vweird.f32 %v3178_v60 }
0x18a4   :  { %v4892_v43 = vpop.xlane.xlu0 %3168 }
0x18a5   :  { %3941 = vrcp.f32 %v4892_v43  ;;  %v3236_v45 = vor.u32 1.1754944e-38, %v3235_v63  ;;  %vm3234_vm10 = vcmp.eq.f32.partialorder %v3233_v0, 8.507059e+37  ;;  %v3190_v32 = vand.u32 2147483648, %v4892_v43  ;;  %v3431_v0 = vld [vmem:[%s5015_s30 + $0x18] sm:$0xff] }
0x18a6   :  { %v3188_v24 = vand.u32 2147483647, %v4892_v43 }
0x18a7   :  { %v3191_v46 = vor.u32 1.1754944e-38, %v3190_v32 }
0x18a9   :  { %v3940_v2 = vpop.eup %3939 }
0x18aa   :  { %v3172_v59 = vpop.xlane.xlu1 %3171  ;;  %v3225_v36 = vmul.f32 %v3940_v2, %v3178_v60  ;;  %v3300_v3 = vpop.permute.xlu2 %3299  ;;  %vm3230_vm7 = vweird.f32 %v3940_v2 }
0x18ab   :  { %3943 = vrcp.f32 %v3172_v59  ;;  %3744 = vmatpush.msk.msrb.mxu2 %vm428_vm4, %v3300_v3  ;;  %v3942_v62 = vpop.eup %3941  ;;  %vm3231_vm8 = vmor %vm3229_vm6, %vm3230_vm7  ;;  %v3205_v31 = vand.u32 2147483648, %v3172_v59  ;;  %v3203_v17 = vand.u32 2147483647, %v3172_v59  ;;  %vm3199_vm12 = vweird.f32 %v3172_v59 }
0x18ac   :  { %v3226_v1 = vsub.f32 1.0, %v3225_v36  ;;  %v3180_v26 = vmul.f32 %v3942_v62, %v4892_v43  ;;  %vm3185_vm3 = vweird.f32 %v3942_v62  ;;  %vm3184_vm6 = vweird.f32 %v4892_v43  ;;  %v3805_v43 = vld [vmem:[%s5014_s24] ss:$0 sm:$0xff] }
0x18ad   :  { %v3206_v50 = vor.u32 1.1754944e-38, %v3205_v31  ;;  %vm3204_vm14 = vcmp.eq.f32.partialorder %v3203_v17, 8.507059e+37 }
0x18ae   :  { %v3227_v58 = vmul.f32 %v3940_v2, %v3226_v1  ;;  %v3181_v20 = vsub.f32 1.0, %v3180_v26 }
0x18b0   :  { %v3228_v9 = vadd.f32 %v3940_v2, %v3227_v58  ;;  %v3182_v21 = vmul.f32 %v3942_v62, %v3181_v20 }
0x18b1   :  { %v3944_v41 = vpop.eup %3943 }
0x18b2   :  { %v3195_v57 = vmul.f32 %v3944_v41, %v3172_v59  ;;  %v3175_v61 = vpop.xlane.xlu1 %3174  ;;  %v3232_v4 = vsel %vm3231_vm8, %v3940_v2, %v3228_v9  ;;  %vm3200_vm11 = vweird.f32 %v3944_v41  ;;  %v3183_v18 = vadd.f32 %v3942_v62, %v3182_v21  ;;  %v3467_v9 = vld [vmem:[%s5016_s6 + $0x38] sm:$0xff] }
0x18b3   :  { %3945 = vrcp.f32 %v3175_v61  ;;  %v3237_v29 = vsel %vm3234_vm10, %v3236_v45, %v3232_v4  ;;  %vm3201_vm13 = vmor %vm3199_vm12, %vm3200_vm11  ;;  %v3220_v15 = vand.u32 2147483648, %v3175_v61  ;;  %v3218_v22 = vand.u32 2147483647, %v3175_v61  ;;  %v3466_v45 = vld [vmem:[%s5016_s6 + $0x30] sm:$0xff]  ;;  %3483 = vmatpush.msra.mxu2 %v3467_v9 }
0x18b4   :  { %v3196_v30 = vsub.f32 1.0, %v3195_v57  ;;  %v3238_v13 = vmul.f32 %v3932_v47, %v3237_v29  ;;  %vm3214_vm5 = vweird.f32 %v3175_v61  ;;  %vm3186_vm10 = vmor %vm3184_vm6, %vm3185_vm3  ;;  %vm3189_vm11 = vcmp.eq.f32.partialorder %v3188_v24, 8.507059e+37  ;;  %v3465_v57 = vld [vmem:[%s5016_s6 + $0x28] sm:$0xff]  ;;  %v3464_v29 = vld [vmem:[%s5016_s6 + $0x20] sm:$0xff] }
0x18b5   :  { %v3221_v34 = vor.u32 1.1754944e-38, %v3220_v15  ;;  %vm3219_vm8 = vcmp.eq.f32.partialorder %v3218_v22, 8.507059e+37  ;;  %v3187_v40 = vsel %vm3186_vm10, %v3942_v62, %v3183_v18  ;;  %v3430_v62 = vld [vmem:[%s5015_s30 + $0x10] sm:$0xff]  ;;  %3484 = vmatpush.msra.mxu2 %v3466_v45  ;;  %v3460_v15 = vld [vmem:[%s5016_s6] sm:$0xff] }
0x18b6   :  { %v3197_v35 = vmul.f32 %v3944_v41, %v3196_v30  ;;  %v3192_v47 = vsel %vm3189_vm11, %v3191_v46, %v3187_v40  ;;  %v3463_v30 = vld [vmem:[%s5016_s6 + $0x18] sm:$0xff]  ;;  %v3809_v18 = vld [vmem:[%s5020_s1] ss:$0 sm:$0xff] }
0x18b7   :  { %v3329_v6 = vpop.permute.xlu0 %3328  ;;  %v3193_v51 = vmul.f32 %v4872_v48, %v3192_v47  ;;  %v2630_v48 = vadd.f32 %v4795_v14, %v4793_v12  ;;  %3485 = vmatpush.msra.mxu2 %v3465_v57  ;;  %v3531_v47 = vld [vmem:[%s4168_s27 + $0x18] sm:$0xff] }
0x18b8   :  { %v3198_v33 = vadd.f32 %v3944_v41, %v3197_v35  ;;  %3746 = vmatpush.msk.msrb.mxu3 %vm428_vm4, %v3329_v6 }
0x18b9   :  { %v3946_v7 = vpop.eup %3945  ;;  %3747 = vmatmul.msk.f32.vlgmr.msrb.gmra.mxu3 %vm424_vm9, %v3238_v13  ;;  %v3010_v60 = vadd.f32 %v4866_v5, %v2630_v48  ;;  %3486 = vmatpush.msra.mxu2 %v3464_v29 }
0x18ba   :  { %v3202_v8 = vsel %vm3201_vm13, %v3944_v41, %v3198_v33  ;;  %v3210_v27 = vmul.f32 %v3946_v7, %v3175_v61  ;;  %vm3215_vm15 = vweird.f32 %v3946_v7  ;;  %v3428_v41 = vld [vmem:[%s5015_s30] sm:$0xff]  ;;  %3552 = vmatpush.msra.mxu3 %v3531_v47 }
0x18bb   :  { %v3207_v23 = vsel %vm3204_vm14, %v3206_v50, %v3202_v8  ;;  %vm3216_vm7 = vmor %vm3214_vm5, %vm3215_vm15  ;;  %3487 = vmatpush.msra.mxu2 %v3463_v30  ;;  %v3806_v33 = vld [vmem:[%s5017_s23] ss:$0 sm:$0xff]  ;;  %vm3560_vm14 = vcmask 58368  }
0x18bc   :  { %v3211_v11 = vsub.f32 1.0, %v3210_v27  ;;  %v3208_v16 = vmul.f32 %v4877_v53, %v3207_v23  ;;  %v3807_v50 = vld [vmem:[%s5018_s26] ss:$0 sm:$0xff]  ;;  %v3462_v23 = vld [vmem:[%s5016_s6 + $0x10] sm:$0xff] }
0x18bd   :  { %3488 = vmatpush.msra.mxu2 %v3462_v23 }
0x18be   :  { %v3212_v19 = vmul.f32 %v3946_v7, %v3211_v11  ;;  %v3461_v11 = vld [vmem:[%s5016_s6 + $0x8] sm:$0xff] }
0x18bf   :  { %v3271_v25 = vpop.permute.xlu0 %3270  ;;  %3489 = vmatpush.msra.mxu2 %v3461_v11 }
0x18c0   :  { %v3213_v28 = vadd.f32 %v3946_v7, %v3212_v19  ;;  %3742 = vmatpush.msk.msra.mxu1 %vm428_vm4, %v3271_v25  ;;  %v3808_v19 = vld [vmem:[%s5019_s28] ss:$0 sm:$0xff] }
0x18c1   :  { %3743 = vmatmul.msk.f32.vlgmr.msra.gmra.mxu1 %vm424_vm9, %v3208_v16  ;;  %3490 = vmatpush.msra.mxu2 %v3460_v15 }
0x18c2   :  { %v3217_v37 = vsel %vm3216_vm7, %v3946_v7, %v3213_v28  ;;  %3451 = vmatpush.msrb.mxu1 %v3431_v0 }
0x18c3   :  { %v3222_v39 = vsel %vm3219_vm8, %v3221_v34, %v3217_v37 }
0x18c4   :  { %v3223_v44 = vmul.f32 %v4881_v42, %v3222_v39  ;;  %3452 = vmatpush.msrb.mxu1 %v3430_v62 }
0x18c6   :  { %3745 = vmatmul.msk.f32.vlgmr.msrb.gmra.mxu2 %vm424_vm9, %v3223_v44 }
0x18ca   :  { %v3242_v49 = vpop.permute.xlu1 %3241 }
0x18cb   :  { %3740 = vmatpush.msk.msra.mxu0 %vm428_vm4, %v3242_v49  ;;  %v3530_v49 = vld [vmem:[%s4168_s27 + $0x10] sm:$0xff] }
0x18cc   :  { %3741 = vmatmul.msk.f32.vlgmr.msra.gmra.mxu0 %vm424_vm9, %v3193_v51  ;;  %v3529_v51 = vld [vmem:[%s4168_s27 + $0x8] sm:$0xff]  ;;  %3553 = vmatpush.msra.mxu3 %v3530_v49 }
0x18cd   :  { %3384 = vmatpush.msrb.mxu0 %v1887_v52  ;;  %v3528_v52 = vld [vmem:[%s4168_s27] sm:$0xff]  ;;  %s4019_s27 = smov [#allocation2]  }
0x18ce   :  { %3554 = vmatpush.msra.mxu3 %v3529_v51  ;;  %s3567_s7 = sshll.u32 %s4019_s27, 4  ;;  %s3568_s7 = int_to_ptr.vmem [resolvable:$true] %s3567_s7 }
0x18d0   :  { %3555 = vmatpush.msra.mxu3 %v3528_v52 }
0x193c   :  { %v3352_v53 = vpop.f32.mrf.mxu3 }
0x193d   :  { %3365 = vst [vmem:[#allocation1 + $0x3] ss:$4 sm:$0xff] %v3352_v53 }
0x193e   :  { %v3294_v54 = vpop.f32.mrf.mxu1 }
0x193f   :  { %3361 = vst [vmem:[#allocation1 + $0x1] ss:$4 sm:$0xff] %v3294_v54 }
0x1949   :  { %v3265_v42 = vpop.f32.mrf.mxu0  ;;  %v3323_v55 = vpop.f32.mrf.mxu2 }
0x194a   :  { %3359 = vst [vmem:[#allocation1] ss:$4 sm:$0xff] %v3265_v42 }
0x194b   :  { %3363 = vst [vmem:[#allocation1 + $0x2] ss:$4 sm:$0xff] %v3323_v55 }
0x1952   :  { %v3366_v56 = vld.sshfl [vmem:[#allocation1] sm:$0xff pattern:$0x73625140] }
0x1953   :  { %3748 = vmatmul.msk.f32.vlgmr.msrb.gmra.mxu0 %vm210_vm2, %v3366_v56 }
0x19d0   :  { %v3386_v2 = vpop.f32.mrf.mxu0 }
0x19d1   :  { %v3389_v59 = vadd.f32 %v3386_v2, %v3010_v60 }
0x19d3   :  { %v3394_v36 = vadd.f32 %v3805_v43, %v3389_v59  ;;  %v3810_v59 = vld [vmem:[%s5021_s2] ss:$0 sm:$0xff] }
0x19d5   :  { %v3395_v3 = vadd.f32 %v3394_v36, %v4578_v38  ;;  %v3429_v38 = vld [vmem:[%s5015_s30 + $0x8] sm:$0xff] }
0x19d6   :  { %3453 = vmatpush.msrb.mxu1 %v3429_v38 }
0x19d7   :  { %v3398_v1 = vsel %vm174_vm1, %v3395_v3, 0.0 }
0x19d8   :  { %3399 = vadd.xlane.f32.xlu2 %v3398_v1  ;;  %3454 = vmatpush.msrb.mxu1 %v3428_v41  ;;  %v3811_v1 = vld [vmem:[%s4163_s20] ss:$0 sm:$0xff]  ;;  %s3965_s20 = scalar_lea.hbm %s3964_s11, 2 }
0x19d9   :  { %p3966_p0 = scmp.ne.s32.totalorder %s3964_s11, %s3965_s20  ;;  %p3969_p2 = scmp.lt.s32.totalorder %s3967_s0, %s3965_s20 }
0x19db   :  { %p3970_p3 = por %p3969_p2, %p3968_p1 }
0x19dd   :  { %p3971_p4 = pnand %p3970_p3, %p3966_p0 }
0x1a4b   :  { %v3400_v63 = vpop.xlane.xlu2 %3399 }
0x1a4c   :  { %v3401_v58 = vmul.f32 %v3400_v63, %v4545_v10 }
0x1a4e   :  { %v3402_v12 = vsub.f32 %v3395_v3, %v3401_v58 }
0x1a50   :  { %v3403_v14 = vmul.f32 %v3402_v12, %v3402_v12 }
0x1a52   :  { %v3404_v5 = vsel %vm174_vm1, %v3403_v14, 0.0 }
0x1a53   :  { %3405 = vadd.xlane.f32.xlu1 %v3404_v5 }
0x1ac6   :  { %v3406_v61 = vpop.xlane.xlu1 %3405 }
0x1ac7   :  { %v3407_v4 = vmul.f32 %v3406_v61, %v4545_v10 }
0x1ac9   :  { %v3408_v26 = vadd.f32 1e-05, %v3407_v4 }
0x1acb   :  { %3947 = vrsqrt.f32 %v3408_v26  ;;  %vm3415_vm4 = vweird.f32 %v3408_v26 }
0x1ad1   :  { %v3948_v35 = vpop.eup %3947 }
0x1ad2   :  { %v3410_v31 = vmul.f32 %v3948_v35, %v3408_v26  ;;  %vm3416_vm2 = vweird.f32 %v3948_v35 }
0x1ad3   :  { %vm3417_vm9 = vmor %vm3415_vm4, %vm3416_vm2 }
0x1ad4   :  { %v3411_v17 = vmul.f32 %v3948_v35, %v3410_v31 }
0x1ad6   :  { %v3412_v6 = vmul.f32 0.5, %v3411_v17 }
0x1ad8   :  { %v3413_v13 = vsub.f32 1.5, %v3412_v6 }
0x1ada   :  { %v3414_v20 = vmul.f32 %v3948_v35, %v3413_v13 }
0x1adc   :  { %v3418_v7 = vsel %vm3417_vm9, %v3948_v35, %v3414_v20 }
0x1add   :  { %v3419_v8 = vmul.f32 %v3418_v7, %v3402_v12  ;;  %v3812_v12 = vld [vmem:[%s4173_s4] ss:$0 sm:$0xff] }
0x1adf   :  { %v3423_v27 = vmul.f32 %v3806_v33, %v3419_v8 }
0x1ae1   :  { %v3427_v21 = vadd.f32 %v3807_v50, %v3423_v27 }
0x1ae3   :  { %3749 = vmatmul.msk.f32.vlgmr.msrb.gmra.mxu1 %vm174_vm1, %v3427_v21 }
0x1b60   :  { %v3456_v22 = vpop.f32.mrf.mxu1 }
0x1b61   :  { %v3457_v25 = vadd.f32 %v3808_v19, %v3456_v22 }
0x1b63   :  { %v3459_v16 = vmax.f32 %v3457_v25, 0.0 }
0x1b65   :  { %3750 = vmatmul.msk.f32.vlgmr.msra.gmra.mxu2 %vm140_vm0, %v3459_v16 }
0x1be8   :  { %v3492_v28 = vpop.f32.mrf.mxu2 }
0x1be9   :  { %v3493_v32 = vadd.f32 %v3809_v18, %v3492_v28 }
0x1beb   :  { %v3495_v34 = vadd.f32 %v3493_v32, %v3427_v21 }
0x1bed   :  { %v3498_v24 = vsel %vm174_vm1, %v3495_v34, 0.0 }
0x1bee   :  { %3499 = vadd.xlane.f32.xlu0 %v3498_v24 }
0x1c61   :  { %v3500_v37 = vpop.xlane.xlu0 %3499 }
0x1c62   :  { %v3501_v39 = vmul.f32 %v3500_v37, %v4545_v10 }
0x1c64   :  { %v3502_v40 = vsub.f32 %v3495_v34, %v3501_v39 }
0x1c66   :  { %v3503_v44 = vmul.f32 %v3502_v40, %v3502_v40 }
0x1c68   :  { %v3504_v46 = vsel %vm174_vm1, %v3503_v44, 0.0 }
0x1c69   :  { %3505 = vadd.xlane.f32.xlu2 %v3504_v46 }
0x1cdc   :  { %v3506_v53 = vpop.xlane.xlu2 %3505 }
0x1cdd   :  { %v3507_v54 = vmul.f32 %v3506_v53, %v4545_v10 }
0x1cdf   :  { %v3508_v42 = vadd.f32 1e-05, %v3507_v54 }
0x1ce1   :  { %3949 = vrsqrt.f32 %v3508_v42  ;;  %vm3515_vm12 = vweird.f32 %v3508_v42 }
0x1ce7   :  { %v3950_v55 = vpop.eup %3949 }
0x1ce8   :  { %v3510_v56 = vmul.f32 %v3950_v55, %v3508_v42  ;;  %vm3516_vm0 = vweird.f32 %v3950_v55 }
0x1ce9   :  { %vm3517_vm13 = vmor %vm3515_vm12, %vm3516_vm0 }
0x1cea   :  { %v3511_v48 = vmul.f32 %v3950_v55, %v3510_v56 }
0x1cec   :  { %v3512_v60 = vmul.f32 0.5, %v3511_v48 }
0x1cee   :  { %v3513_v43 = vsub.f32 1.5, %v3512_v60 }
0x1cf0   :  { %v3514_v2 = vmul.f32 %v3950_v55, %v3513_v43 }
0x1cf2   :  { %v3518_v36 = vsel %vm3517_vm13, %v3950_v55, %v3514_v2 }
0x1cf3   :  { %v3519_v3 = vmul.f32 %v3518_v36, %v3502_v40 }
0x1cf5   :  { %v3523_v63 = vmul.f32 %v3810_v59, %v3519_v3 }
0x1cf7   :  { %v3527_v58 = vadd.f32 %v3811_v1, %v3523_v63 }
0x1cf9   :  { %v3537_v10 = vrot.slane %v3527_v58, 6 }
0x1cfb   :  { %3751 = vmatmul.msk.f32.vlgmr.msra.gmra.mxu3 %vm174_vm1, %v3537_v10 }
0x1d7e   :  { %v3557_v14 = vpop.f32.mrf.mxu3 }
0x1d7f   :  { %v3558_v5 = vadd.f32 %v3812_v12, %v3557_v14 }
0x1d81   :  { %3561 = vst.msk [vmem:[#allocation2] sm:$0x3] %vm3560_vm14, %v3558_v5 }
0x1d82   :  { %3974 = shalt.err (!%p3971_p4)
}
0x1d83   :  { %3572 = dma.vmem_to_hbm [thread:$0]  %s3568_s7, 32, %s3570_s10, [#allocation3]  }
0x1d84   :  { %3975 = dma.done.wait [#allocation3], 32  }
0x1d85   :  { %3976 = vsyncadd [#allocation3], 4294967264 }
0x1d86   :  { %3577 = vsyncpa [#allocation3], 1 }

</bundles_post_ra>
